<compile_context>
chip_gen: v5e
topology: v5e:2x2
jax: 0.10.0
libtpu: 0.0.40
codegen_flags: <defaults>
</compile_context>

<pallas_src>
import jax
import jax.numpy as jnp
from jax.experimental import pallas as pl
from jax.experimental.pallas import tpu as pltpu

IMG_SIZE = 16
N_QUBITS = 4
K = 2                            # int(sqrt(N_QUBITS)): conv kernel size and pool size
S_OUT = (IMG_SIZE - 1) // K      # 7   (= floor((IMG_SIZE-1)/sqrt(N_QUBITS)))
P = S_OUT * S_OUT                # 49 pooled positions per channel
OUT_DIM = N_QUBITS * P           # 196
N_CLASSES = 2
N_SHIFT = 2 * K - 1              # 3 distinct row/col shifts -> 9 distinct sub-grids


# ---------------------------------------------------------------------------
# Fused Pallas kernel: conv + relu + maxpool + linear + log_softmax
# ---------------------------------------------------------------------------
def _fused_kernel(pm_ref, wq_ref, bq_ref, w1_ref, b1_ref, out_ref):
    # pm_ref : (9, P, TB)  VMEM bf16  shifted stride-2 sub-grids, batch on lanes
    #          pm[sr*3+sc, i*7+j, b] = image[b, 2i+sr, 2j+sc]
    # wq_ref : (4, 4)      SMEM f32   conv1.weight.reshape(4, 4)   (f = dy*2+dx)
    # bq_ref : (4,)        SMEM f32   conv1.bias
    # w1_ref : (8, P, 1)   VMEM f32   linear1.weight, row = cls*4 + channel
    # b1_ref : (2,)        SMEM f32   linear1.bias
    # out_ref: (2, TB)     VMEM f32   log-probabilities, class-major, batch on lanes
    tb = out_ref.shape[1]

    # bf16 transport -> one bulk upcast per sub-grid; all compute below is f32 (v5e-safe).
    pm = [pm_ref[s].astype(jnp.float32) for s in range(N_SHIFT * N_SHIFT)]  # 9 x (P, TB)

    acc0 = jnp.zeros((P, tb), jnp.float32)
    acc1 = jnp.zeros((P, tb), jnp.float32)
    for c in range(N_QUBITS):
        pooled = None
        for p in range(K):
            for q in range(K):
                # Conv2d(1,4,2,stride=1) at pool-window offset (p, q):
                # 4 scalar-broadcast FMAs on the VPU, weights/bias read from SMEM.
                z = (wq_ref[c, 0] * pm[p * N_SHIFT + q]
                     + wq_ref[c, 1] * pm[p * N_SHIFT + (q + 1)]
                     + wq_ref[c, 2] * pm[(p + 1) * N_SHIFT + q]
                     + wq_ref[c, 3] * pm[(p + 1) * N_SHIFT + (q + 1)]
                     ) + bq_ref[c]
                z = jnp.maximum(z, 0.0)                       # ReLU
                pooled = z if pooled is None else jnp.maximum(pooled, z)   # max_pool2d(2)
        # Linear(196, 2): per-class weighted features (channel-major flatten); w1 row is
        # (P, 1) so the multiply lane-broadcasts against the (P, TB) pooled tile.
        acc0 = acc0 + pooled * w1_ref[c]
        acc1 = acc1 + pooled * w1_ref[N_QUBITS + c]

    l0 = jnp.sum(acc0, axis=0, keepdims=True) + b1_ref[0]     # (1, TB)
    l1 = jnp.sum(acc1, axis=0, keepdims=True) + b1_ref[1]     # (1, TB)
    # Numerically-stable 2-class log_softmax.
    m = jnp.maximum(l0, l1)
    lse = m + jnp.log(jnp.exp(l0 - m) + jnp.exp(l1 - m))
    # Single lane-dense store of both classes.
    out_ref[...] = jnp.concatenate([l0 - lse, l1 - lse], axis=0)


# ---------------------------------------------------------------------------
# Wrapper
# ---------------------------------------------------------------------------
def classical_trial_forward(x, params):
    """ClassicalTrial.forward: conv1 -> ReLU -> max_pool2d(2) -> flatten -> linear1 -> log_softmax."""
    wc, bc, w1, b1 = params
    xv = x.reshape(-1, IMG_SIZE, IMG_SIZE).astype(jnp.float32)   # x.view(-1, IMG_SIZE, IMG_SIZE)
    B = xv.shape[0]

    # Batch tile on the lane axis: multiple of 128, capped at 512 rows per grid step.
    TB = min(512, 128 * pl.cdiv(B, 128))
    Bp = TB * pl.cdiv(B, TB)

    # TODO(synk): the stride-2 window gather (9 shifted sub-grids) stays as tiny XLA glue;
    # stride-2 slicing on both spatial axes has no clean, portable in-kernel equivalent.
    xt = jnp.transpose(xv, (1, 2, 0))                            # (16, 16, B) batch -> lanes
    if Bp != B:
        xt = jnp.pad(xt, ((0, 0), (0, 0), (0, Bp - B)))
    slabs = [xt[sr:sr + K * S_OUT:K, sc:sc + K * S_OUT:K, :]     # (7, 7, Bp) each
             for sr in range(N_SHIFT) for sc in range(N_SHIFT)]
    pm9 = jnp.stack(slabs, 0).reshape(N_SHIFT * N_SHIFT, P, Bp).astype(jnp.bfloat16)

    wq = wc.reshape(N_QUBITS, K * K).astype(jnp.float32)                       # (4, 4)
    w1r = w1.reshape(N_CLASSES * N_QUBITS, P, 1).astype(jnp.float32)           # (8, 49, 1)

    out = pl.pallas_call(
        _fused_kernel,
        out_shape=jax.ShapeDtypeStruct((N_CLASSES, Bp), jnp.float32),
        grid=(Bp // TB,),
        in_specs=[
            pl.BlockSpec((N_SHIFT * N_SHIFT, P, TB), lambda i: (0, 0, i)),     # pm (pipelined)
            pl.BlockSpec(memory_space=pltpu.MemorySpace.SMEM),                 # conv weight
            pl.BlockSpec(memory_space=pltpu.MemorySpace.SMEM),                 # conv bias
            pl.BlockSpec((N_CLASSES * N_QUBITS, P, 1), lambda i: (0, 0, 0)),   # linear weight
            pl.BlockSpec(memory_space=pltpu.MemorySpace.SMEM),                 # linear bias
        ],
        out_specs=pl.BlockSpec((N_CLASSES, TB), lambda i: (0, i)),
        compiler_params=pltpu.CompilerParams(
            dimension_semantics=("parallel",),          # batch axis -> both TCs on v7x
            vmem_limit_bytes=32 * 1024 * 1024,
        ),
    )(pm9, wq, bc.astype(jnp.float32), w1r, b1.astype(jnp.float32))

    return out[:, :B].T                                          # (B, 2)


# ---------------------------------------------------------------------------
# Pure-JAX reference for validation
# ---------------------------------------------------------------------------
def reference_forward(x, params):
    wc, bc, w1, b1 = params
    xv = x.reshape(-1, IMG_SIZE, IMG_SIZE)
    B = xv.shape[0]
    cout = IMG_SIZE - K + 1                                            # 15
    cols = jnp.stack([xv[:, dy:dy + cout, dx:dx + cout]
                      for dy in range(K) for dx in range(K)], 1)       # (B, 4, 15, 15)
    conv = jnp.einsum('cf,bfhw->bchw', wc.reshape(N_QUBITS, K * K), cols,
                      precision=jax.lax.Precision.HIGHEST) + bc[None, :, None, None]
    act = jnp.maximum(conv, 0.0)
    t = K * S_OUT                                                      # 14
    pooled = act[:, :, :t, :t].reshape(B, N_QUBITS, S_OUT, K, S_OUT, K).max(axis=(3, 5))
    feat = pooled.reshape(B, OUT_DIM)
    logits = jnp.dot(feat, w1.T, precision=jax.lax.Precision.HIGHEST) + b1
    return jax.nn.log_softmax(logits, -1)


if __name__ == "__main__":
    key = jax.random.PRNGKey(0)
    kx, kwc, kbc, kw1, kb1 = jax.random.split(key, 5)
    B = 2
    x = jax.random.normal(kx, (B, 1, IMG_SIZE, IMG_SIZE), jnp.float32)

    # Deterministic synthetic parameters (shapes from the module __init__)
    wc = 0.5 * jax.random.normal(kwc, (N_QUBITS, 1, K, K), jnp.float32)    # conv1.weight
    bc = 0.1 * jax.random.normal(kbc, (N_QUBITS,), jnp.float32)            # conv1.bias
    w1 = 0.1 * jax.random.normal(kw1, (N_CLASSES, OUT_DIM), jnp.float32)   # linear1.weight
    b1 = 0.1 * jax.random.normal(kb1, (N_CLASSES,), jnp.float32)           # linear1.bias
    params = (wc, bc, w1, b1)

    fwd = jax.jit(classical_trial_forward)

    # Small-batch check (single grid step).
    out = jax.block_until_ready(fwd(x, params))
    ref = reference_forward(x, params)
    assert out.shape == (B, N_CLASSES), out.shape
    # bf16 transport of the input patches -> slightly looser tolerance than pure f32.
    assert jnp.allclose(out, ref, atol=2e-2, rtol=2e-2), (out, ref)

    # Larger batch: exercises the multi-step pipelined grid (2 x TB=512) + lane padding.
    B2 = 520
    x2 = jax.random.normal(kx, (B2, 1, IMG_SIZE, IMG_SIZE), jnp.float32)
    out2 = jax.block_until_ready(fwd(x2, params))
    ref2 = reference_forward(x2, params)
    assert out2.shape == (B2, N_CLASSES), out2.shape
    assert jnp.allclose(out2, ref2, atol=2e-2, rtol=2e-2)

    print("KERNEL_OK")
</pallas_src>

<mosaic_0001>
module attributes {stable_mosaic.version = 11 : i64} {
  func.func @_fused_kernel(%arg0: i32, %arg1: memref<9x49x128xbf16, #tpu.memory_space<vmem>>, %arg2: memref<4x4xf32, #tpu.memory_space<smem>>, %arg3: memref<4xf32, #tpu.memory_space<smem>>, %arg4: memref<8x49x1xf32, #tpu.memory_space<vmem>>, %arg5: memref<2xf32, #tpu.memory_space<smem>>, %arg6: memref<2x128xf32, #tpu.memory_space<vmem>>) attributes {dimension_semantics = [#tpu.dimension_semantics<parallel>], iteration_bounds = array<i64: 1>, scalar_prefetch = 0 : i64, scratch_operands = 0 : i64, tpu.core_type = #tpu.core_type<tc>, window_params = [{transform_indices = @transform_0, window_bounds = array<i64: 9, 49, 128>}, {transform_indices = @transform_1, window_bounds = array<i64: 4, 4>}, {transform_indices = @transform_2, window_bounds = array<i64: 4>}, {pipeline_mode = #tpu.pipeline_mode<synchronous>, transform_indices = @transform_3, window_bounds = array<i64: 8, 49, 1>}, {transform_indices = @transform_4, window_bounds = array<i64: 2>}, {transform_indices = @transform_5, window_bounds = array<i64: 2, 128>}]} {
    %c0 = arith.constant 0 : index
    %c0_0 = arith.constant 0 : index
    %c0_1 = arith.constant 0 : index
    %0 = vector.load %arg1[%c0, %c0_0, %c0_1] : memref<9x49x128xbf16, #tpu.memory_space<vmem>>, vector<1x49x128xbf16>
    %1 = vector.shape_cast %0 : vector<1x49x128xbf16> to vector<49x128xbf16>
    %2 = arith.extf %1 : vector<49x128xbf16> to vector<49x128xf32>
    %c1 = arith.constant 1 : index
    %c0_2 = arith.constant 0 : index
    %c0_3 = arith.constant 0 : index
    %3 = vector.load %arg1[%c1, %c0_2, %c0_3] : memref<9x49x128xbf16, #tpu.memory_space<vmem>>, vector<1x49x128xbf16>
    %4 = vector.shape_cast %3 : vector<1x49x128xbf16> to vector<49x128xbf16>
    %5 = arith.extf %4 : vector<49x128xbf16> to vector<49x128xf32>
    %c2 = arith.constant 2 : index
    %c0_4 = arith.constant 0 : index
    %c0_5 = arith.constant 0 : index
    %6 = vector.load %arg1[%c2, %c0_4, %c0_5] : memref<9x49x128xbf16, #tpu.memory_space<vmem>>, vector<1x49x128xbf16>
    %7 = vector.shape_cast %6 : vector<1x49x128xbf16> to vector<49x128xbf16>
    %8 = arith.extf %7 : vector<49x128xbf16> to vector<49x128xf32>
    %c3 = arith.constant 3 : index
    %c0_6 = arith.constant 0 : index
    %c0_7 = arith.constant 0 : index
    %9 = vector.load %arg1[%c3, %c0_6, %c0_7] : memref<9x49x128xbf16, #tpu.memory_space<vmem>>, vector<1x49x128xbf16>
    %10 = vector.shape_cast %9 : vector<1x49x128xbf16> to vector<49x128xbf16>
    %11 = arith.extf %10 : vector<49x128xbf16> to vector<49x128xf32>
    %c4 = arith.constant 4 : index
    %c0_8 = arith.constant 0 : index
    %c0_9 = arith.constant 0 : index
    %12 = vector.load %arg1[%c4, %c0_8, %c0_9] : memref<9x49x128xbf16, #tpu.memory_space<vmem>>, vector<1x49x128xbf16>
    %13 = vector.shape_cast %12 : vector<1x49x128xbf16> to vector<49x128xbf16>
    %14 = arith.extf %13 : vector<49x128xbf16> to vector<49x128xf32>
    %c5 = arith.constant 5 : index
    %c0_10 = arith.constant 0 : index
    %c0_11 = arith.constant 0 : index
    %15 = vector.load %arg1[%c5, %c0_10, %c0_11] : memref<9x49x128xbf16, #tpu.memory_space<vmem>>, vector<1x49x128xbf16>
    %16 = vector.shape_cast %15 : vector<1x49x128xbf16> to vector<49x128xbf16>
    %17 = arith.extf %16 : vector<49x128xbf16> to vector<49x128xf32>
    %c6 = arith.constant 6 : index
    %c0_12 = arith.constant 0 : index
    %c0_13 = arith.constant 0 : index
    %18 = vector.load %arg1[%c6, %c0_12, %c0_13] : memref<9x49x128xbf16, #tpu.memory_space<vmem>>, vector<1x49x128xbf16>
    %19 = vector.shape_cast %18 : vector<1x49x128xbf16> to vector<49x128xbf16>
    %20 = arith.extf %19 : vector<49x128xbf16> to vector<49x128xf32>
    %c7 = arith.constant 7 : index
    %c0_14 = arith.constant 0 : index
    %c0_15 = arith.constant 0 : index
    %21 = vector.load %arg1[%c7, %c0_14, %c0_15] : memref<9x49x128xbf16, #tpu.memory_space<vmem>>, vector<1x49x128xbf16>
    %22 = vector.shape_cast %21 : vector<1x49x128xbf16> to vector<49x128xbf16>
    %23 = arith.extf %22 : vector<49x128xbf16> to vector<49x128xf32>
    %c8 = arith.constant 8 : index
    %c0_16 = arith.constant 0 : index
    %c0_17 = arith.constant 0 : index
    %24 = vector.load %arg1[%c8, %c0_16, %c0_17] : memref<9x49x128xbf16, #tpu.memory_space<vmem>>, vector<1x49x128xbf16>
    %25 = vector.shape_cast %24 : vector<1x49x128xbf16> to vector<49x128xbf16>
    %26 = arith.extf %25 : vector<49x128xbf16> to vector<49x128xf32>
    %cst = arith.constant 0.000000e+00 : f32
    %27 = vector.broadcast %cst : f32 to vector<49x128xf32>
    %cst_18 = arith.constant 0.000000e+00 : f32
    %28 = vector.broadcast %cst_18 : f32 to vector<49x128xf32>
    %c0_19 = arith.constant 0 : index
    %c0_20 = arith.constant 0 : index
    %29 = memref.load %arg2[%c0_19, %c0_20] : memref<4x4xf32, #tpu.memory_space<smem>>
    %30 = vector.broadcast %29 : f32 to vector<49x128xf32>
    %31 = arith.mulf %30, %2 : vector<49x128xf32>
    %c0_21 = arith.constant 0 : index
    %c1_22 = arith.constant 1 : index
    %32 = memref.load %arg2[%c0_21, %c1_22] : memref<4x4xf32, #tpu.memory_space<smem>>
    %33 = vector.broadcast %32 : f32 to vector<49x128xf32>
    %34 = arith.mulf %33, %5 : vector<49x128xf32>
    %35 = arith.addf %31, %34 : vector<49x128xf32>
    %c0_23 = arith.constant 0 : index
    %c2_24 = arith.constant 2 : index
    %36 = memref.load %arg2[%c0_23, %c2_24] : memref<4x4xf32, #tpu.memory_space<smem>>
    %37 = vector.broadcast %36 : f32 to vector<49x128xf32>
    %38 = arith.mulf %37, %11 : vector<49x128xf32>
    %39 = arith.addf %35, %38 : vector<49x128xf32>
    %c0_25 = arith.constant 0 : index
    %c3_26 = arith.constant 3 : index
    %40 = memref.load %arg2[%c0_25, %c3_26] : memref<4x4xf32, #tpu.memory_space<smem>>
    %41 = vector.broadcast %40 : f32 to vector<49x128xf32>
    %42 = arith.mulf %41, %14 : vector<49x128xf32>
    %43 = arith.addf %39, %42 : vector<49x128xf32>
    %c0_27 = arith.constant 0 : index
    %44 = memref.load %arg3[%c0_27] : memref<4xf32, #tpu.memory_space<smem>>
    %45 = vector.broadcast %44 : f32 to vector<49x128xf32>
    %46 = arith.addf %43, %45 : vector<49x128xf32>
    %cst_28 = arith.constant 0.000000e+00 : f32
    %47 = vector.broadcast %cst_28 : f32 to vector<49x128xf32>
    %48 = arith.maximumf %46, %47 : vector<49x128xf32>
    %c0_29 = arith.constant 0 : index
    %c0_30 = arith.constant 0 : index
    %49 = memref.load %arg2[%c0_29, %c0_30] : memref<4x4xf32, #tpu.memory_space<smem>>
    %50 = vector.broadcast %49 : f32 to vector<49x128xf32>
    %51 = arith.mulf %50, %5 : vector<49x128xf32>
    %c0_31 = arith.constant 0 : index
    %c1_32 = arith.constant 1 : index
    %52 = memref.load %arg2[%c0_31, %c1_32] : memref<4x4xf32, #tpu.memory_space<smem>>
    %53 = vector.broadcast %52 : f32 to vector<49x128xf32>
    %54 = arith.mulf %53, %8 : vector<49x128xf32>
    %55 = arith.addf %51, %54 : vector<49x128xf32>
    %c0_33 = arith.constant 0 : index
    %c2_34 = arith.constant 2 : index
    %56 = memref.load %arg2[%c0_33, %c2_34] : memref<4x4xf32, #tpu.memory_space<smem>>
    %57 = vector.broadcast %56 : f32 to vector<49x128xf32>
    %58 = arith.mulf %57, %14 : vector<49x128xf32>
    %59 = arith.addf %55, %58 : vector<49x128xf32>
    %c0_35 = arith.constant 0 : index
    %c3_36 = arith.constant 3 : index
    %60 = memref.load %arg2[%c0_35, %c3_36] : memref<4x4xf32, #tpu.memory_space<smem>>
    %61 = vector.broadcast %60 : f32 to vector<49x128xf32>
    %62 = arith.mulf %61, %17 : vector<49x128xf32>
    %63 = arith.addf %59, %62 : vector<49x128xf32>
    %c0_37 = arith.constant 0 : index
    %64 = memref.load %arg3[%c0_37] : memref<4xf32, #tpu.memory_space<smem>>
    %65 = vector.broadcast %64 : f32 to vector<49x128xf32>
    %66 = arith.addf %63, %65 : vector<49x128xf32>
    %cst_38 = arith.constant 0.000000e+00 : f32
    %67 = vector.broadcast %cst_38 : f32 to vector<49x128xf32>
    %68 = arith.maximumf %66, %67 : vector<49x128xf32>
    %69 = arith.maximumf %48, %68 : vector<49x128xf32>
    %c0_39 = arith.constant 0 : index
    %c0_40 = arith.constant 0 : index
    %70 = memref.load %arg2[%c0_39, %c0_40] : memref<4x4xf32, #tpu.memory_space<smem>>
    %71 = vector.broadcast %70 : f32 to vector<49x128xf32>
    %72 = arith.mulf %71, %11 : vector<49x128xf32>
    %c0_41 = arith.constant 0 : index
    %c1_42 = arith.constant 1 : index
    %73 = memref.load %arg2[%c0_41, %c1_42] : memref<4x4xf32, #tpu.memory_space<smem>>
    %74 = vector.broadcast %73 : f32 to vector<49x128xf32>
    %75 = arith.mulf %74, %14 : vector<49x128xf32>
    %76 = arith.addf %72, %75 : vector<49x128xf32>
    %c0_43 = arith.constant 0 : index
    %c2_44 = arith.constant 2 : index
    %77 = memref.load %arg2[%c0_43, %c2_44] : memref<4x4xf32, #tpu.memory_space<smem>>
    %78 = vector.broadcast %77 : f32 to vector<49x128xf32>
    %79 = arith.mulf %78, %20 : vector<49x128xf32>
    %80 = arith.addf %76, %79 : vector<49x128xf32>
    %c0_45 = arith.constant 0 : index
    %c3_46 = arith.constant 3 : index
    %81 = memref.load %arg2[%c0_45, %c3_46] : memref<4x4xf32, #tpu.memory_space<smem>>
    %82 = vector.broadcast %81 : f32 to vector<49x128xf32>
    %83 = arith.mulf %82, %23 : vector<49x128xf32>
    %84 = arith.addf %80, %83 : vector<49x128xf32>
    %c0_47 = arith.constant 0 : index
    %85 = memref.load %arg3[%c0_47] : memref<4xf32, #tpu.memory_space<smem>>
    %86 = vector.broadcast %85 : f32 to vector<49x128xf32>
    %87 = arith.addf %84, %86 : vector<49x128xf32>
    %cst_48 = arith.constant 0.000000e+00 : f32
    %88 = vector.broadcast %cst_48 : f32 to vector<49x128xf32>
    %89 = arith.maximumf %87, %88 : vector<49x128xf32>
    %90 = arith.maximumf %69, %89 : vector<49x128xf32>
    %c0_49 = arith.constant 0 : index
    %c0_50 = arith.constant 0 : index
    %91 = memref.load %arg2[%c0_49, %c0_50] : memref<4x4xf32, #tpu.memory_space<smem>>
    %92 = vector.broadcast %91 : f32 to vector<49x128xf32>
    %93 = arith.mulf %92, %14 : vector<49x128xf32>
    %c0_51 = arith.constant 0 : index
    %c1_52 = arith.constant 1 : index
    %94 = memref.load %arg2[%c0_51, %c1_52] : memref<4x4xf32, #tpu.memory_space<smem>>
    %95 = vector.broadcast %94 : f32 to vector<49x128xf32>
    %96 = arith.mulf %95, %17 : vector<49x128xf32>
    %97 = arith.addf %93, %96 : vector<49x128xf32>
    %c0_53 = arith.constant 0 : index
    %c2_54 = arith.constant 2 : index
    %98 = memref.load %arg2[%c0_53, %c2_54] : memref<4x4xf32, #tpu.memory_space<smem>>
    %99 = vector.broadcast %98 : f32 to vector<49x128xf32>
    %100 = arith.mulf %99, %23 : vector<49x128xf32>
    %101 = arith.addf %97, %100 : vector<49x128xf32>
    %c0_55 = arith.constant 0 : index
    %c3_56 = arith.constant 3 : index
    %102 = memref.load %arg2[%c0_55, %c3_56] : memref<4x4xf32, #tpu.memory_space<smem>>
    %103 = vector.broadcast %102 : f32 to vector<49x128xf32>
    %104 = arith.mulf %103, %26 : vector<49x128xf32>
    %105 = arith.addf %101, %104 : vector<49x128xf32>
    %c0_57 = arith.constant 0 : index
    %106 = memref.load %arg3[%c0_57] : memref<4xf32, #tpu.memory_space<smem>>
    %107 = vector.broadcast %106 : f32 to vector<49x128xf32>
    %108 = arith.addf %105, %107 : vector<49x128xf32>
    %cst_58 = arith.constant 0.000000e+00 : f32
    %109 = vector.broadcast %cst_58 : f32 to vector<49x128xf32>
    %110 = arith.maximumf %108, %109 : vector<49x128xf32>
    %111 = arith.maximumf %90, %110 : vector<49x128xf32>
    %c0_59 = arith.constant 0 : index
    %c0_60 = arith.constant 0 : index
    %c0_61 = arith.constant 0 : index
    %112 = vector.load %arg4[%c0_59, %c0_60, %c0_61] : memref<8x49x1xf32, #tpu.memory_space<vmem>>, vector<1x49x1xf32>
    %113 = vector.shape_cast %112 : vector<1x49x1xf32> to vector<49x1xf32>
    %114 = vector.broadcast %113 : vector<49x1xf32> to vector<49x128xf32>
    %115 = arith.mulf %111, %114 : vector<49x128xf32>
    %116 = arith.addf %27, %115 : vector<49x128xf32>
    %c4_62 = arith.constant 4 : index
    %c0_63 = arith.constant 0 : index
    %c0_64 = arith.constant 0 : index
    %117 = vector.load %arg4[%c4_62, %c0_63, %c0_64] : memref<8x49x1xf32, #tpu.memory_space<vmem>>, vector<1x49x1xf32>
    %118 = vector.shape_cast %117 : vector<1x49x1xf32> to vector<49x1xf32>
    %119 = vector.broadcast %118 : vector<49x1xf32> to vector<49x128xf32>
    %120 = arith.mulf %111, %119 : vector<49x128xf32>
    %121 = arith.addf %28, %120 : vector<49x128xf32>
    %c1_65 = arith.constant 1 : index
    %c0_66 = arith.constant 0 : index
    %122 = memref.load %arg2[%c1_65, %c0_66] : memref<4x4xf32, #tpu.memory_space<smem>>
    %123 = vector.broadcast %122 : f32 to vector<49x128xf32>
    %124 = arith.mulf %123, %2 : vector<49x128xf32>
    %c1_67 = arith.constant 1 : index
    %c1_68 = arith.constant 1 : index
    %125 = memref.load %arg2[%c1_67, %c1_68] : memref<4x4xf32, #tpu.memory_space<smem>>
    %126 = vector.broadcast %125 : f32 to vector<49x128xf32>
    %127 = arith.mulf %126, %5 : vector<49x128xf32>
    %128 = arith.addf %124, %127 : vector<49x128xf32>
    %c1_69 = arith.constant 1 : index
    %c2_70 = arith.constant 2 : index
    %129 = memref.load %arg2[%c1_69, %c2_70] : memref<4x4xf32, #tpu.memory_space<smem>>
    %130 = vector.broadcast %129 : f32 to vector<49x128xf32>
    %131 = arith.mulf %130, %11 : vector<49x128xf32>
    %132 = arith.addf %128, %131 : vector<49x128xf32>
    %c1_71 = arith.constant 1 : index
    %c3_72 = arith.constant 3 : index
    %133 = memref.load %arg2[%c1_71, %c3_72] : memref<4x4xf32, #tpu.memory_space<smem>>
    %134 = vector.broadcast %133 : f32 to vector<49x128xf32>
    %135 = arith.mulf %134, %14 : vector<49x128xf32>
    %136 = arith.addf %132, %135 : vector<49x128xf32>
    %c1_73 = arith.constant 1 : index
    %137 = memref.load %arg3[%c1_73] : memref<4xf32, #tpu.memory_space<smem>>
    %138 = vector.broadcast %137 : f32 to vector<49x128xf32>
    %139 = arith.addf %136, %138 : vector<49x128xf32>
    %cst_74 = arith.constant 0.000000e+00 : f32
    %140 = vector.broadcast %cst_74 : f32 to vector<49x128xf32>
    %141 = arith.maximumf %139, %140 : vector<49x128xf32>
    %c1_75 = arith.constant 1 : index
    %c0_76 = arith.constant 0 : index
    %142 = memref.load %arg2[%c1_75, %c0_76] : memref<4x4xf32, #tpu.memory_space<smem>>
    %143 = vector.broadcast %142 : f32 to vector<49x128xf32>
    %144 = arith.mulf %143, %5 : vector<49x128xf32>
    %c1_77 = arith.constant 1 : index
    %c1_78 = arith.constant 1 : index
    %145 = memref.load %arg2[%c1_77, %c1_78] : memref<4x4xf32, #tpu.memory_space<smem>>
    %146 = vector.broadcast %145 : f32 to vector<49x128xf32>
    %147 = arith.mulf %146, %8 : vector<49x128xf32>
    %148 = arith.addf %144, %147 : vector<49x128xf32>
    %c1_79 = arith.constant 1 : index
    %c2_80 = arith.constant 2 : index
    %149 = memref.load %arg2[%c1_79, %c2_80] : memref<4x4xf32, #tpu.memory_space<smem>>
    %150 = vector.broadcast %149 : f32 to vector<49x128xf32>
    %151 = arith.mulf %150, %14 : vector<49x128xf32>
    %152 = arith.addf %148, %151 : vector<49x128xf32>
    %c1_81 = arith.constant 1 : index
    %c3_82 = arith.constant 3 : index
    %153 = memref.load %arg2[%c1_81, %c3_82] : memref<4x4xf32, #tpu.memory_space<smem>>
    %154 = vector.broadcast %153 : f32 to vector<49x128xf32>
    %155 = arith.mulf %154, %17 : vector<49x128xf32>
    %156 = arith.addf %152, %155 : vector<49x128xf32>
    %c1_83 = arith.constant 1 : index
    %157 = memref.load %arg3[%c1_83] : memref<4xf32, #tpu.memory_space<smem>>
    %158 = vector.broadcast %157 : f32 to vector<49x128xf32>
    %159 = arith.addf %156, %158 : vector<49x128xf32>
    %cst_84 = arith.constant 0.000000e+00 : f32
    %160 = vector.broadcast %cst_84 : f32 to vector<49x128xf32>
    %161 = arith.maximumf %159, %160 : vector<49x128xf32>
    %162 = arith.maximumf %141, %161 : vector<49x128xf32>
    %c1_85 = arith.constant 1 : index
    %c0_86 = arith.constant 0 : index
    %163 = memref.load %arg2[%c1_85, %c0_86] : memref<4x4xf32, #tpu.memory_space<smem>>
    %164 = vector.broadcast %163 : f32 to vector<49x128xf32>
    %165 = arith.mulf %164, %11 : vector<49x128xf32>
    %c1_87 = arith.constant 1 : index
    %c1_88 = arith.constant 1 : index
    %166 = memref.load %arg2[%c1_87, %c1_88] : memref<4x4xf32, #tpu.memory_space<smem>>
    %167 = vector.broadcast %166 : f32 to vector<49x128xf32>
    %168 = arith.mulf %167, %14 : vector<49x128xf32>
    %169 = arith.addf %165, %168 : vector<49x128xf32>
    %c1_89 = arith.constant 1 : index
    %c2_90 = arith.constant 2 : index
    %170 = memref.load %arg2[%c1_89, %c2_90] : memref<4x4xf32, #tpu.memory_space<smem>>
    %171 = vector.broadcast %170 : f32 to vector<49x128xf32>
    %172 = arith.mulf %171, %20 : vector<49x128xf32>
    %173 = arith.addf %169, %172 : vector<49x128xf32>
    %c1_91 = arith.constant 1 : index
    %c3_92 = arith.constant 3 : index
    %174 = memref.load %arg2[%c1_91, %c3_92] : memref<4x4xf32, #tpu.memory_space<smem>>
    %175 = vector.broadcast %174 : f32 to vector<49x128xf32>
    %176 = arith.mulf %175, %23 : vector<49x128xf32>
    %177 = arith.addf %173, %176 : vector<49x128xf32>
    %c1_93 = arith.constant 1 : index
    %178 = memref.load %arg3[%c1_93] : memref<4xf32, #tpu.memory_space<smem>>
    %179 = vector.broadcast %178 : f32 to vector<49x128xf32>
    %180 = arith.addf %177, %179 : vector<49x128xf32>
    %cst_94 = arith.constant 0.000000e+00 : f32
    %181 = vector.broadcast %cst_94 : f32 to vector<49x128xf32>
    %182 = arith.maximumf %180, %181 : vector<49x128xf32>
    %183 = arith.maximumf %162, %182 : vector<49x128xf32>
    %c1_95 = arith.constant 1 : index
    %c0_96 = arith.constant 0 : index
    %184 = memref.load %arg2[%c1_95, %c0_96] : memref<4x4xf32, #tpu.memory_space<smem>>
    %185 = vector.broadcast %184 : f32 to vector<49x128xf32>
    %186 = arith.mulf %185, %14 : vector<49x128xf32>
    %c1_97 = arith.constant 1 : index
    %c1_98 = arith.constant 1 : index
    %187 = memref.load %arg2[%c1_97, %c1_98] : memref<4x4xf32, #tpu.memory_space<smem>>
    %188 = vector.broadcast %187 : f32 to vector<49x128xf32>
    %189 = arith.mulf %188, %17 : vector<49x128xf32>
    %190 = arith.addf %186, %189 : vector<49x128xf32>
    %c1_99 = arith.constant 1 : index
    %c2_100 = arith.constant 2 : index
    %191 = memref.load %arg2[%c1_99, %c2_100] : memref<4x4xf32, #tpu.memory_space<smem>>
    %192 = vector.broadcast %191 : f32 to vector<49x128xf32>
    %193 = arith.mulf %192, %23 : vector<49x128xf32>
    %194 = arith.addf %190, %193 : vector<49x128xf32>
    %c1_101 = arith.constant 1 : index
    %c3_102 = arith.constant 3 : index
    %195 = memref.load %arg2[%c1_101, %c3_102] : memref<4x4xf32, #tpu.memory_space<smem>>
    %196 = vector.broadcast %195 : f32 to vector<49x128xf32>
    %197 = arith.mulf %196, %26 : vector<49x128xf32>
    %198 = arith.addf %194, %197 : vector<49x128xf32>
    %c1_103 = arith.constant 1 : index
    %199 = memref.load %arg3[%c1_103] : memref<4xf32, #tpu.memory_space<smem>>
    %200 = vector.broadcast %199 : f32 to vector<49x128xf32>
    %201 = arith.addf %198, %200 : vector<49x128xf32>
    %cst_104 = arith.constant 0.000000e+00 : f32
    %202 = vector.broadcast %cst_104 : f32 to vector<49x128xf32>
    %203 = arith.maximumf %201, %202 : vector<49x128xf32>
    %204 = arith.maximumf %183, %203 : vector<49x128xf32>
    %c1_105 = arith.constant 1 : index
    %c0_106 = arith.constant 0 : index
    %c0_107 = arith.constant 0 : index
    %205 = vector.load %arg4[%c1_105, %c0_106, %c0_107] : memref<8x49x1xf32, #tpu.memory_space<vmem>>, vector<1x49x1xf32>
    %206 = vector.shape_cast %205 : vector<1x49x1xf32> to vector<49x1xf32>
    %207 = vector.broadcast %206 : vector<49x1xf32> to vector<49x128xf32>
    %208 = arith.mulf %204, %207 : vector<49x128xf32>
    %209 = arith.addf %116, %208 : vector<49x128xf32>
    %c5_108 = arith.constant 5 : index
    %c0_109 = arith.constant 0 : index
    %c0_110 = arith.constant 0 : index
    %210 = vector.load %arg4[%c5_108, %c0_109, %c0_110] : memref<8x49x1xf32, #tpu.memory_space<vmem>>, vector<1x49x1xf32>
    %211 = vector.shape_cast %210 : vector<1x49x1xf32> to vector<49x1xf32>
    %212 = vector.broadcast %211 : vector<49x1xf32> to vector<49x128xf32>
    %213 = arith.mulf %204, %212 : vector<49x128xf32>
    %214 = arith.addf %121, %213 : vector<49x128xf32>
    %c2_111 = arith.constant 2 : index
    %c0_112 = arith.constant 0 : index
    %215 = memref.load %arg2[%c2_111, %c0_112] : memref<4x4xf32, #tpu.memory_space<smem>>
    %216 = vector.broadcast %215 : f32 to vector<49x128xf32>
    %217 = arith.mulf %216, %2 : vector<49x128xf32>
    %c2_113 = arith.constant 2 : index
    %c1_114 = arith.constant 1 : index
    %218 = memref.load %arg2[%c2_113, %c1_114] : memref<4x4xf32, #tpu.memory_space<smem>>
    %219 = vector.broadcast %218 : f32 to vector<49x128xf32>
    %220 = arith.mulf %219, %5 : vector<49x128xf32>
    %221 = arith.addf %217, %220 : vector<49x128xf32>
    %c2_115 = arith.constant 2 : index
    %c2_116 = arith.constant 2 : index
    %222 = memref.load %arg2[%c2_115, %c2_116] : memref<4x4xf32, #tpu.memory_space<smem>>
    %223 = vector.broadcast %222 : f32 to vector<49x128xf32>
    %224 = arith.mulf %223, %11 : vector<49x128xf32>
    %225 = arith.addf %221, %224 : vector<49x128xf32>
    %c2_117 = arith.constant 2 : index
    %c3_118 = arith.constant 3 : index
    %226 = memref.load %arg2[%c2_117, %c3_118] : memref<4x4xf32, #tpu.memory_space<smem>>
    %227 = vector.broadcast %226 : f32 to vector<49x128xf32>
    %228 = arith.mulf %227, %14 : vector<49x128xf32>
    %229 = arith.addf %225, %228 : vector<49x128xf32>
    %c2_119 = arith.constant 2 : index
    %230 = memref.load %arg3[%c2_119] : memref<4xf32, #tpu.memory_space<smem>>
    %231 = vector.broadcast %230 : f32 to vector<49x128xf32>
    %232 = arith.addf %229, %231 : vector<49x128xf32>
    %cst_120 = arith.constant 0.000000e+00 : f32
    %233 = vector.broadcast %cst_120 : f32 to vector<49x128xf32>
    %234 = arith.maximumf %232, %233 : vector<49x128xf32>
    %c2_121 = arith.constant 2 : index
    %c0_122 = arith.constant 0 : index
    %235 = memref.load %arg2[%c2_121, %c0_122] : memref<4x4xf32, #tpu.memory_space<smem>>
    %236 = vector.broadcast %235 : f32 to vector<49x128xf32>
    %237 = arith.mulf %236, %5 : vector<49x128xf32>
    %c2_123 = arith.constant 2 : index
    %c1_124 = arith.constant 1 : index
    %238 = memref.load %arg2[%c2_123, %c1_124] : memref<4x4xf32, #tpu.memory_space<smem>>
    %239 = vector.broadcast %238 : f32 to vector<49x128xf32>
    %240 = arith.mulf %239, %8 : vector<49x128xf32>
    %241 = arith.addf %237, %240 : vector<49x128xf32>
    %c2_125 = arith.constant 2 : index
    %c2_126 = arith.constant 2 : index
    %242 = memref.load %arg2[%c2_125, %c2_126] : memref<4x4xf32, #tpu.memory_space<smem>>
    %243 = vector.broadcast %242 : f32 to vector<49x128xf32>
    %244 = arith.mulf %243, %14 : vector<49x128xf32>
    %245 = arith.addf %241, %244 : vector<49x128xf32>
    %c2_127 = arith.constant 2 : index
    %c3_128 = arith.constant 3 : index
    %246 = memref.load %arg2[%c2_127, %c3_128] : memref<4x4xf32, #tpu.memory_space<smem>>
    %247 = vector.broadcast %246 : f32 to vector<49x128xf32>
    %248 = arith.mulf %247, %17 : vector<49x128xf32>
    %249 = arith.addf %245, %248 : vector<49x128xf32>
    %c2_129 = arith.constant 2 : index
    %250 = memref.load %arg3[%c2_129] : memref<4xf32, #tpu.memory_space<smem>>
    %251 = vector.broadcast %250 : f32 to vector<49x128xf32>
    %252 = arith.addf %249, %251 : vector<49x128xf32>
    %cst_130 = arith.constant 0.000000e+00 : f32
    %253 = vector.broadcast %cst_130 : f32 to vector<49x128xf32>
    %254 = arith.maximumf %252, %253 : vector<49x128xf32>
    %255 = arith.maximumf %234, %254 : vector<49x128xf32>
    %c2_131 = arith.constant 2 : index
    %c0_132 = arith.constant 0 : index
    %256 = memref.load %arg2[%c2_131, %c0_132] : memref<4x4xf32, #tpu.memory_space<smem>>
    %257 = vector.broadcast %256 : f32 to vector<49x128xf32>
    %258 = arith.mulf %257, %11 : vector<49x128xf32>
    %c2_133 = arith.constant 2 : index
    %c1_134 = arith.constant 1 : index
    %259 = memref.load %arg2[%c2_133, %c1_134] : memref<4x4xf32, #tpu.memory_space<smem>>
    %260 = vector.broadcast %259 : f32 to vector<49x128xf32>
    %261 = arith.mulf %260, %14 : vector<49x128xf32>
    %262 = arith.addf %258, %261 : vector<49x128xf32>
    %c2_135 = arith.constant 2 : index
    %c2_136 = arith.constant 2 : index
    %263 = memref.load %arg2[%c2_135, %c2_136] : memref<4x4xf32, #tpu.memory_space<smem>>
    %264 = vector.broadcast %263 : f32 to vector<49x128xf32>
    %265 = arith.mulf %264, %20 : vector<49x128xf32>
    %266 = arith.addf %262, %265 : vector<49x128xf32>
    %c2_137 = arith.constant 2 : index
    %c3_138 = arith.constant 3 : index
    %267 = memref.load %arg2[%c2_137, %c3_138] : memref<4x4xf32, #tpu.memory_space<smem>>
    %268 = vector.broadcast %267 : f32 to vector<49x128xf32>
    %269 = arith.mulf %268, %23 : vector<49x128xf32>
    %270 = arith.addf %266, %269 : vector<49x128xf32>
    %c2_139 = arith.constant 2 : index
    %271 = memref.load %arg3[%c2_139] : memref<4xf32, #tpu.memory_space<smem>>
    %272 = vector.broadcast %271 : f32 to vector<49x128xf32>
    %273 = arith.addf %270, %272 : vector<49x128xf32>
    %cst_140 = arith.constant 0.000000e+00 : f32
    %274 = vector.broadcast %cst_140 : f32 to vector<49x128xf32>
    %275 = arith.maximumf %273, %274 : vector<49x128xf32>
    %276 = arith.maximumf %255, %275 : vector<49x128xf32>
    %c2_141 = arith.constant 2 : index
    %c0_142 = arith.constant 0 : index
    %277 = memref.load %arg2[%c2_141, %c0_142] : memref<4x4xf32, #tpu.memory_space<smem>>
    %278 = vector.broadcast %277 : f32 to vector<49x128xf32>
    %279 = arith.mulf %278, %14 : vector<49x128xf32>
    %c2_143 = arith.constant 2 : index
    %c1_144 = arith.constant 1 : index
    %280 = memref.load %arg2[%c2_143, %c1_144] : memref<4x4xf32, #tpu.memory_space<smem>>
    %281 = vector.broadcast %280 : f32 to vector<49x128xf32>
    %282 = arith.mulf %281, %17 : vector<49x128xf32>
    %283 = arith.addf %279, %282 : vector<49x128xf32>
    %c2_145 = arith.constant 2 : index
    %c2_146 = arith.constant 2 : index
    %284 = memref.load %arg2[%c2_145, %c2_146] : memref<4x4xf32, #tpu.memory_space<smem>>
    %285 = vector.broadcast %284 : f32 to vector<49x128xf32>
    %286 = arith.mulf %285, %23 : vector<49x128xf32>
    %287 = arith.addf %283, %286 : vector<49x128xf32>
    %c2_147 = arith.constant 2 : index
    %c3_148 = arith.constant 3 : index
    %288 = memref.load %arg2[%c2_147, %c3_148] : memref<4x4xf32, #tpu.memory_space<smem>>
    %289 = vector.broadcast %288 : f32 to vector<49x128xf32>
    %290 = arith.mulf %289, %26 : vector<49x128xf32>
    %291 = arith.addf %287, %290 : vector<49x128xf32>
    %c2_149 = arith.constant 2 : index
    %292 = memref.load %arg3[%c2_149] : memref<4xf32, #tpu.memory_space<smem>>
    %293 = vector.broadcast %292 : f32 to vector<49x128xf32>
    %294 = arith.addf %291, %293 : vector<49x128xf32>
    %cst_150 = arith.constant 0.000000e+00 : f32
    %295 = vector.broadcast %cst_150 : f32 to vector<49x128xf32>
    %296 = arith.maximumf %294, %295 : vector<49x128xf32>
    %297 = arith.maximumf %276, %296 : vector<49x128xf32>
    %c2_151 = arith.constant 2 : index
    %c0_152 = arith.constant 0 : index
    %c0_153 = arith.constant 0 : index
    %298 = vector.load %arg4[%c2_151, %c0_152, %c0_153] : memref<8x49x1xf32, #tpu.memory_space<vmem>>, vector<1x49x1xf32>
    %299 = vector.shape_cast %298 : vector<1x49x1xf32> to vector<49x1xf32>
    %300 = vector.broadcast %299 : vector<49x1xf32> to vector<49x128xf32>
    %301 = arith.mulf %297, %300 : vector<49x128xf32>
    %302 = arith.addf %209, %301 : vector<49x128xf32>
    %c6_154 = arith.constant 6 : index
    %c0_155 = arith.constant 0 : index
    %c0_156 = arith.constant 0 : index
    %303 = vector.load %arg4[%c6_154, %c0_155, %c0_156] : memref<8x49x1xf32, #tpu.memory_space<vmem>>, vector<1x49x1xf32>
    %304 = vector.shape_cast %303 : vector<1x49x1xf32> to vector<49x1xf32>
    %305 = vector.broadcast %304 : vector<49x1xf32> to vector<49x128xf32>
    %306 = arith.mulf %297, %305 : vector<49x128xf32>
    %307 = arith.addf %214, %306 : vector<49x128xf32>
    %c3_157 = arith.constant 3 : index
    %c0_158 = arith.constant 0 : index
    %308 = memref.load %arg2[%c3_157, %c0_158] : memref<4x4xf32, #tpu.memory_space<smem>>
    %309 = vector.broadcast %308 : f32 to vector<49x128xf32>
    %310 = arith.mulf %309, %2 : vector<49x128xf32>
    %c3_159 = arith.constant 3 : index
    %c1_160 = arith.constant 1 : index
    %311 = memref.load %arg2[%c3_159, %c1_160] : memref<4x4xf32, #tpu.memory_space<smem>>
    %312 = vector.broadcast %311 : f32 to vector<49x128xf32>
    %313 = arith.mulf %312, %5 : vector<49x128xf32>
    %314 = arith.addf %310, %313 : vector<49x128xf32>
    %c3_161 = arith.constant 3 : index
    %c2_162 = arith.constant 2 : index
    %315 = memref.load %arg2[%c3_161, %c2_162] : memref<4x4xf32, #tpu.memory_space<smem>>
    %316 = vector.broadcast %315 : f32 to vector<49x128xf32>
    %317 = arith.mulf %316, %11 : vector<49x128xf32>
    %318 = arith.addf %314, %317 : vector<49x128xf32>
    %c3_163 = arith.constant 3 : index
    %c3_164 = arith.constant 3 : index
    %319 = memref.load %arg2[%c3_163, %c3_164] : memref<4x4xf32, #tpu.memory_space<smem>>
    %320 = vector.broadcast %319 : f32 to vector<49x128xf32>
    %321 = arith.mulf %320, %14 : vector<49x128xf32>
    %322 = arith.addf %318, %321 : vector<49x128xf32>
    %c3_165 = arith.constant 3 : index
    %323 = memref.load %arg3[%c3_165] : memref<4xf32, #tpu.memory_space<smem>>
    %324 = vector.broadcast %323 : f32 to vector<49x128xf32>
    %325 = arith.addf %322, %324 : vector<49x128xf32>
    %cst_166 = arith.constant 0.000000e+00 : f32
    %326 = vector.broadcast %cst_166 : f32 to vector<49x128xf32>
    %327 = arith.maximumf %325, %326 : vector<49x128xf32>
    %c3_167 = arith.constant 3 : index
    %c0_168 = arith.constant 0 : index
    %328 = memref.load %arg2[%c3_167, %c0_168] : memref<4x4xf32, #tpu.memory_space<smem>>
    %329 = vector.broadcast %328 : f32 to vector<49x128xf32>
    %330 = arith.mulf %329, %5 : vector<49x128xf32>
    %c3_169 = arith.constant 3 : index
    %c1_170 = arith.constant 1 : index
    %331 = memref.load %arg2[%c3_169, %c1_170] : memref<4x4xf32, #tpu.memory_space<smem>>
    %332 = vector.broadcast %331 : f32 to vector<49x128xf32>
    %333 = arith.mulf %332, %8 : vector<49x128xf32>
    %334 = arith.addf %330, %333 : vector<49x128xf32>
    %c3_171 = arith.constant 3 : index
    %c2_172 = arith.constant 2 : index
    %335 = memref.load %arg2[%c3_171, %c2_172] : memref<4x4xf32, #tpu.memory_space<smem>>
    %336 = vector.broadcast %335 : f32 to vector<49x128xf32>
    %337 = arith.mulf %336, %14 : vector<49x128xf32>
    %338 = arith.addf %334, %337 : vector<49x128xf32>
    %c3_173 = arith.constant 3 : index
    %c3_174 = arith.constant 3 : index
    %339 = memref.load %arg2[%c3_173, %c3_174] : memref<4x4xf32, #tpu.memory_space<smem>>
    %340 = vector.broadcast %339 : f32 to vector<49x128xf32>
    %341 = arith.mulf %340, %17 : vector<49x128xf32>
    %342 = arith.addf %338, %341 : vector<49x128xf32>
    %c3_175 = arith.constant 3 : index
    %343 = memref.load %arg3[%c3_175] : memref<4xf32, #tpu.memory_space<smem>>
    %344 = vector.broadcast %343 : f32 to vector<49x128xf32>
    %345 = arith.addf %342, %344 : vector<49x128xf32>
    %cst_176 = arith.constant 0.000000e+00 : f32
    %346 = vector.broadcast %cst_176 : f32 to vector<49x128xf32>
    %347 = arith.maximumf %345, %346 : vector<49x128xf32>
    %348 = arith.maximumf %327, %347 : vector<49x128xf32>
    %c3_177 = arith.constant 3 : index
    %c0_178 = arith.constant 0 : index
    %349 = memref.load %arg2[%c3_177, %c0_178] : memref<4x4xf32, #tpu.memory_space<smem>>
    %350 = vector.broadcast %349 : f32 to vector<49x128xf32>
    %351 = arith.mulf %350, %11 : vector<49x128xf32>
    %c3_179 = arith.constant 3 : index
    %c1_180 = arith.constant 1 : index
    %352 = memref.load %arg2[%c3_179, %c1_180] : memref<4x4xf32, #tpu.memory_space<smem>>
    %353 = vector.broadcast %352 : f32 to vector<49x128xf32>
    %354 = arith.mulf %353, %14 : vector<49x128xf32>
    %355 = arith.addf %351, %354 : vector<49x128xf32>
    %c3_181 = arith.constant 3 : index
    %c2_182 = arith.constant 2 : index
    %356 = memref.load %arg2[%c3_181, %c2_182] : memref<4x4xf32, #tpu.memory_space<smem>>
    %357 = vector.broadcast %356 : f32 to vector<49x128xf32>
    %358 = arith.mulf %357, %20 : vector<49x128xf32>
    %359 = arith.addf %355, %358 : vector<49x128xf32>
    %c3_183 = arith.constant 3 : index
    %c3_184 = arith.constant 3 : index
    %360 = memref.load %arg2[%c3_183, %c3_184] : memref<4x4xf32, #tpu.memory_space<smem>>
    %361 = vector.broadcast %360 : f32 to vector<49x128xf32>
    %362 = arith.mulf %361, %23 : vector<49x128xf32>
    %363 = arith.addf %359, %362 : vector<49x128xf32>
    %c3_185 = arith.constant 3 : index
    %364 = memref.load %arg3[%c3_185] : memref<4xf32, #tpu.memory_space<smem>>
    %365 = vector.broadcast %364 : f32 to vector<49x128xf32>
    %366 = arith.addf %363, %365 : vector<49x128xf32>
    %cst_186 = arith.constant 0.000000e+00 : f32
    %367 = vector.broadcast %cst_186 : f32 to vector<49x128xf32>
    %368 = arith.maximumf %366, %367 : vector<49x128xf32>
    %369 = arith.maximumf %348, %368 : vector<49x128xf32>
    %c3_187 = arith.constant 3 : index
    %c0_188 = arith.constant 0 : index
    %370 = memref.load %arg2[%c3_187, %c0_188] : memref<4x4xf32, #tpu.memory_space<smem>>
    %371 = vector.broadcast %370 : f32 to vector<49x128xf32>
    %372 = arith.mulf %371, %14 : vector<49x128xf32>
    %c3_189 = arith.constant 3 : index
    %c1_190 = arith.constant 1 : index
    %373 = memref.load %arg2[%c3_189, %c1_190] : memref<4x4xf32, #tpu.memory_space<smem>>
    %374 = vector.broadcast %373 : f32 to vector<49x128xf32>
    %375 = arith.mulf %374, %17 : vector<49x128xf32>
    %376 = arith.addf %372, %375 : vector<49x128xf32>
    %c3_191 = arith.constant 3 : index
    %c2_192 = arith.constant 2 : index
    %377 = memref.load %arg2[%c3_191, %c2_192] : memref<4x4xf32, #tpu.memory_space<smem>>
    %378 = vector.broadcast %377 : f32 to vector<49x128xf32>
    %379 = arith.mulf %378, %23 : vector<49x128xf32>
    %380 = arith.addf %376, %379 : vector<49x128xf32>
    %c3_193 = arith.constant 3 : index
    %c3_194 = arith.constant 3 : index
    %381 = memref.load %arg2[%c3_193, %c3_194] : memref<4x4xf32, #tpu.memory_space<smem>>
    %382 = vector.broadcast %381 : f32 to vector<49x128xf32>
    %383 = arith.mulf %382, %26 : vector<49x128xf32>
    %384 = arith.addf %380, %383 : vector<49x128xf32>
    %c3_195 = arith.constant 3 : index
    %385 = memref.load %arg3[%c3_195] : memref<4xf32, #tpu.memory_space<smem>>
    %386 = vector.broadcast %385 : f32 to vector<49x128xf32>
    %387 = arith.addf %384, %386 : vector<49x128xf32>
    %cst_196 = arith.constant 0.000000e+00 : f32
    %388 = vector.broadcast %cst_196 : f32 to vector<49x128xf32>
    %389 = arith.maximumf %387, %388 : vector<49x128xf32>
    %390 = arith.maximumf %369, %389 : vector<49x128xf32>
    %c3_197 = arith.constant 3 : index
    %c0_198 = arith.constant 0 : index
    %c0_199 = arith.constant 0 : index
    %391 = vector.load %arg4[%c3_197, %c0_198, %c0_199] : memref<8x49x1xf32, #tpu.memory_space<vmem>>, vector<1x49x1xf32>
    %392 = vector.shape_cast %391 : vector<1x49x1xf32> to vector<49x1xf32>
    %393 = vector.broadcast %392 : vector<49x1xf32> to vector<49x128xf32>
    %394 = arith.mulf %390, %393 : vector<49x128xf32>
    %395 = arith.addf %302, %394 : vector<49x128xf32>
    %c7_200 = arith.constant 7 : index
    %c0_201 = arith.constant 0 : index
    %c0_202 = arith.constant 0 : index
    %396 = vector.load %arg4[%c7_200, %c0_201, %c0_202] : memref<8x49x1xf32, #tpu.memory_space<vmem>>, vector<1x49x1xf32>
    %397 = vector.shape_cast %396 : vector<1x49x1xf32> to vector<49x1xf32>
    %398 = vector.broadcast %397 : vector<49x1xf32> to vector<49x128xf32>
    %399 = arith.mulf %390, %398 : vector<49x128xf32>
    %400 = arith.addf %307, %399 : vector<49x128xf32>
    %cst_203 = arith.constant dense<0.000000e+00> : vector<128xf32>
    %401 = vector.multi_reduction <add>, %395, %cst_203 [0] : vector<49x128xf32> to vector<128xf32>
    %402 = vector.shape_cast %401 : vector<128xf32> to vector<1x128xf32>
    %c0_204 = arith.constant 0 : index
    %403 = memref.load %arg5[%c0_204] : memref<2xf32, #tpu.memory_space<smem>>
    %404 = vector.broadcast %403 : f32 to vector<1x128xf32>
    %405 = arith.addf %402, %404 : vector<1x128xf32>
    %cst_205 = arith.constant dense<0.000000e+00> : vector<128xf32>
    %406 = vector.multi_reduction <add>, %400, %cst_205 [0] : vector<49x128xf32> to vector<128xf32>
    %407 = vector.shape_cast %406 : vector<128xf32> to vector<1x128xf32>
    %c1_206 = arith.constant 1 : index
    %408 = memref.load %arg5[%c1_206] : memref<2xf32, #tpu.memory_space<smem>>
    %409 = vector.broadcast %408 : f32 to vector<1x128xf32>
    %410 = arith.addf %407, %409 : vector<1x128xf32>
    %411 = arith.maximumf %405, %410 : vector<1x128xf32>
    %412 = arith.subf %405, %411 : vector<1x128xf32>
    %413 = math.exp %412 : vector<1x128xf32>
    %414 = arith.subf %410, %411 : vector<1x128xf32>
    %415 = math.exp %414 : vector<1x128xf32>
    %416 = arith.addf %413, %415 : vector<1x128xf32>
    %417 = math.log %416 : vector<1x128xf32>
    %418 = arith.addf %411, %417 : vector<1x128xf32>
    %419 = arith.subf %405, %418 : vector<1x128xf32>
    %420 = arith.subf %410, %418 : vector<1x128xf32>
    %421 = tpu.concatenate %419, %420 in 0 : vector<1x128xf32>, vector<1x128xf32> -> vector<2x128xf32>
    %c0_207 = arith.constant 0 : index
    %c0_208 = arith.constant 0 : index
    %422 = vector.load %arg6[%c0_207, %c0_208] : memref<2x128xf32, #tpu.memory_space<vmem>>, vector<2x128xf32>
    tpu.vector_store %arg6[%c0_207, %c0_208], %421 {strides = array<i32>} : memref<2x128xf32, #tpu.memory_space<vmem>>, vector<2x128xf32>,
    return
  }
  func.func @transform_0(%arg0: i32) -> (i32, i32, i32) {
    %c0_i32 = arith.constant 0 : i32
    %c0_i32_0 = arith.constant 0 : i32
    %c0_i32_1 = arith.constant 0 : i32
    return %c0_i32, %c0_i32_0, %arg0 : i32, i32, i32
  }
  func.func @transform_1(%arg0: i32) -> (i32, i32) {
    %c0_i32 = arith.constant 0 : i32
    %c0_i32_0 = arith.constant 0 : i32
    %c0_i32_1 = arith.constant 0 : i32
    return %c0_i32, %c0_i32_0 : i32, i32
  }
  func.func @transform_2(%arg0: i32) -> i32 {
    %c0_i32 = arith.constant 0 : i32
    %c0_i32_0 = arith.constant 0 : i32
    return %c0_i32 : i32
  }
  func.func @transform_3(%arg0: i32) -> (i32, i32, i32) {
    %c0_i32 = arith.constant 0 : i32
    %c0_i32_0 = arith.constant 0 : i32
    %c0_i32_1 = arith.constant 0 : i32
    %c0_i32_2 = arith.constant 0 : i32
    return %c0_i32, %c0_i32_0, %c0_i32_1 : i32, i32, i32
  }
  func.func @transform_4(%arg0: i32) -> i32 {
    %c0_i32 = arith.constant 0 : i32
    %c0_i32_0 = arith.constant 0 : i32
    return %c0_i32 : i32
  }
  func.func @transform_5(%arg0: i32) -> (i32, i32) {
    %c0_i32 = arith.constant 0 : i32
    %c0_i32_0 = arith.constant 0 : i32
    return %c0_i32, %arg0 : i32, i32
  }
}

</mosaic_0001>

<bundles_post_ra>
// kernel: classical_trial_forward.1
= control target key start
LH: loop header
LB: loop body
LE: loop exit
PB: predicated region body
PF: predicated region fallthrough
CT: control target
= control target key end

     0   :  { %10 = vsyncpa [#allocation3], 0  ;;  %s4041_s0 = inlined_call_operand.vmem [shape: bf16[9,49,128], index: 0, kind: input, shape index: {}]   ;;  %s4042_s1 = inlined_call_operand.vmem [shape: f32[4,4], index: 1, kind: input, shape index: {}]   ;;  %s4043_s2 = inlined_call_operand.vmem [shape: f32[4], index: 2, kind: input, shape index: {}]   ;;  %s4044_s3 = inlined_call_operand.vmem [shape: f32[8,49,1], index: 3, kind: input, shape index: {}]   ;;  %s4045_s4 = inlined_call_operand.vmem [shape: f32[2], index: 4, kind: input, shape index: {}]   ;;  %s4046_s5 = inlined_call_operand.vmem [shape: f32[2,128], index: 5, kind: output, shape index: {}]  }
   0x1   :  { %11 = vsyncpa [#allocation5], 0  ;;  %s28_s20 = sshll.u32 %s4043_s2, 4  ;;  %s19_s23 = sshll.u32 %s4042_s1, 4  ;;  %s29_s20 = int_to_ptr.vmem [resolvable:$true] %s28_s20  ;;  %s20_s23 = int_to_ptr.vmem [resolvable:$true] %s19_s23 }
   0x2   :  { %s2122_s24 = smov [#allocation4]   ;;  %s2123_s25 = smov [#allocation2]  }
   0x3   :  { %31 = dma.vmem_to_smem %s29_s20, 16, %s2122_s24, [#allocation5]  }
   0x4   :  { %22 = dma.vmem_to_smem %s20_s23, 64, %s2123_s25, [#allocation3]  }
   0x5   :  { %s39_s28 = sshll.u32 %s4045_s4, 4  ;;  %s2124_s29 = smov [#allocation6]   ;;  %s40_s28 = int_to_ptr.vmem [resolvable:$true] %s39_s28 }
   0x6   :  { %42 = dma.vmem_to_smem %s40_s28, 16, %s2124_s29, [#allocation5]  }
   0x7   :  { %2118 = dma.done.wait [#allocation3], 64  }
   0x8   :  { %2119 = vsyncadd [#allocation3], 4294967232 }
   0x9   :  { %2120 = dma.done.wait [#allocation5], 32  }
   0xa   :  { %2121 = vsyncadd [#allocation5], 4294967264 }
   0xb   :  { %55 = sfence }
   0xc   :  { %v477_v0 = vld [vmem:[%s4044_s3 + $0x20] sm:$0xff]  ;;  %v475_v1 = vld [vmem:[%s4044_s3 + $0x10] sm:$0xff]  ;;  %v2125_v3 = vmov 0   ;;  %v478_v4 = vld [vmem:[%s4044_s3 + $0x28] sm:$0xff]  ;;  %s190_s16 = sld [smem:[#allocation2]]  ;;  %vm1782_vm0 = vcmask 1040384  }
   0xd   :  { %v473_v2 = vld [vmem:[%s4044_s3] sm:$0xff]  ;;  %2075 = vset.pattern.permute.xlu2 %v2125_v3  ;;  %2074 = vset.pattern.permute.xlu1 %v2125_v3  ;;  %v476_v5 = vld [vmem:[%s4044_s3 + $0x18] sm:$0xff]  ;;  %v474_v6 = vld [vmem:[%s4044_s3 + $0x8] sm:$0xff]  ;;  %s1887_s17 = sld [smem:[#allocation2 + $0x1]] }
   0xe   :  { %2073 = vset.pattern.permute.xlu0 %v2125_v3  ;;  %502 = vperm.xlu2 %2075, %v477_v0   ;;  %v1891_v7 = vld [vmem:[%s4044_s3 + $0xe8] sm:$0xff]  ;;  %v1890_v8 = vld [vmem:[%s4044_s3 + $0xe0] sm:$0xff]  ;;  %v479_v9 = vld [vmem:[%s4044_s3 + $0x30] sm:$0x1]  ;;  %s1888_s20 = sld [smem:[#allocation2 + $0x2]] }
   0xf   :  { %492 = vperm.xlu1 %2074, %v475_v1   ;;  %482 = vperm.xlu0 %2073, %v473_v2   ;;  %v1894_v10 = vld [vmem:[%s4044_s3 + $0x100] sm:$0xff]  ;;  %v1893_v11 = vld [vmem:[%s4044_s3 + $0xf8] sm:$0xff]  ;;  %v1892_v12 = vld [vmem:[%s4044_s3 + $0xf0] sm:$0xff]  ;;  %s2237_s25 = sld [smem:[#allocation2 + $0x3]] }
  0x10   :  { %v1902_v13 = vld [vmem:[%s4044_s3 + $0x38] sm:$0xff]  ;;  %v1896_v14 = vld [vmem:[%s4044_s3 + $0x110] sm:$0x1]  ;;  %v1895_v15 = vld [vmem:[%s4044_s3 + $0x108] sm:$0xff]  ;;  %s2277_s10 = sld [smem:[#allocation4]] }
  0x11   :  { %v1905_v16 = vld [vmem:[%s4044_s3 + $0x50] sm:$0xff]  ;;  %v1904_v17 = vld [vmem:[%s4044_s3 + $0x48] sm:$0xff]  ;;  %v1903_v18 = vld [vmem:[%s4044_s3 + $0x40] sm:$0xff]  ;;  %s2709_s13 = sld [smem:[#allocation2 + $0x80]] }
  0x12   :  { %v1908_v19 = vld [vmem:[%s4044_s3 + $0x68] sm:$0x1]  ;;  %v1907_v20 = vld [vmem:[%s4044_s3 + $0x60] sm:$0xff]  ;;  %v1906_v21 = vld [vmem:[%s4044_s3 + $0x58] sm:$0xff]  ;;  %v2275_v34 = vstv %s190_s16  ;;  %s2716_s14 = sld [smem:[#allocation2 + $0x81]] }
  0x13   :  { %v1911_v22 = vld [vmem:[%s4044_s3 + $0x128] sm:$0xff]  ;;  %v1910_v23 = vld [vmem:[%s4044_s3 + $0x120] sm:$0xff]  ;;  %v1909_v24 = vld [vmem:[%s4044_s3 + $0x118] sm:$0xff]  ;;  %v2296_v40 = vstv %s1887_s17  ;;  %s2729_s18 = sld [smem:[#allocation2 + $0x82]] }
  0x14   :  { %v2048_v25 = vld [vmem:[%s4041_s0 + $0x10] sm:$0xff]   ;;  %v2245_v26 = vld [vmem:[%s4041_s0 + $0x28] sm:$0xff]   ;;  %v2263_v31 = vld [vmem:[%s4041_s0 + $0x60] sm:$0xff]   ;;  %v2308_v45 = vstv %s1888_s20  ;;  %s2743_s23 = sld [smem:[#allocation2 + $0x83]] }
  0x15   :  { %v2250_v27 = vld [vmem:[%s4041_s0 + $0x48] sm:$0xff]   ;;  %v2252_v28 = vunpack.c.l.bf16 %v2048_v25  ;;  %v2255_v29 = vunpack.c.h.bf16 %v2245_v26  ;;  %v2268_v32 = vld [vmem:[%s4041_s0 + $0x80] sm:$0xff]   ;;  %v2273_v33 = vld [vmem:[%s4041_s0 + $0x98] sm:$0xff]   ;;  %v2280_v35 = vunpack.c.h.bf16 %v2263_v31  ;;  %v2326_v51 = vstv %s2237_s25  ;;  %s2749_s20 = sld [smem:[#allocation4 + $0x1]] }
  0x16   :  { %507 = vperm.xlu2 %2075, %v478_v4   ;;  %v2258_v30 = vunpack.c.l.bf16 %v2250_v27  ;;  %v2283_v36 = vunpack.c.l.bf16 %v2268_v32  ;;  %v2286_v37 = vunpack.c.h.bf16 %v2273_v33  ;;  %v2063_v38 = vld [vmem:[%s4041_s0 + $0xb8] sm:$0xff]   ;;  %v2294_v39 = vld [vmem:[%s4041_s0 + $0xd0] sm:$0xff]   ;;  %v1914_v41 = vld [vmem:[%s4044_s3 + $0x140] sm:$0xff]  ;;  %s3226_s8 = sld [smem:[#allocation2 + $0x101]] }
  0x17   :  { %497 = vperm.xlu1 %2074, %v476_v5   ;;  %487 = vperm.xlu0 %2073, %v474_v6   ;;  %4190 = vst [vmem:[#allocation9_spill] sm:$0xff] %v2252_v28  ;;  %v2301_v42 = vunpack.c.l.bf16 %v2063_v38  ;;  %v2304_v43 = vunpack.c.h.bf16 %v2294_v39  ;;  %v196_v44 = vmul.f32 %v2252_v28, %v2275_v34  ;;  %v1913_v46 = vld [vmem:[%s4044_s3 + $0x138] sm:$0xff]  ;;  %v1912_v47 = vld [vmem:[%s4044_s3 + $0x130] sm:$0xff]  ;;  %v205_v49 = vmul.f32 %v2255_v29, %v2296_v40  ;;  %v1850_v5 = vld [vmem:[%s4041_s0 + $0x68] sm:$0xf]  ;;  %s3232_s4 = sld [smem:[#allocation2 + $0x102]] }
  0x18   :  { %4191 = vst [vmem:[#allocation10_spill] sm:$0xff] %v2255_v29  ;;  %v2319_v48 = vld [vmem:[%s4041_s0 + $0xf0] sm:$0xff]   ;;  %v221_v50 = vmul.f32 %v2280_v35, %v2308_v45  ;;  %v237_v52 = vmul.f32 %v2283_v36, %v2326_v51  ;;  %v267_v53 = vmul.f32 %v2255_v29, %v2275_v34  ;;  %v274_v54 = vmul.f32 %v2258_v30, %v2296_v40  ;;  %s3241_s9 = sld [smem:[#allocation2 + $0x103]] }
  0x19   :  { %4192 = vst [vmem:[#allocation11_spill] sm:$0xff] %v2258_v30  ;;  %v288_v55 = vmul.f32 %v2283_v36, %v2308_v45  ;;  %v212_v56 = vadd.f32 %v205_v49, %v196_v44  ;;  %v302_v57 = vmul.f32 %v2286_v37, %v2326_v51  ;;  %v337_v58 = vmul.f32 %v2280_v35, %v2275_v34  ;;  %v1836_v4 = vld [vmem:[%s4041_s0 + $0x30] sm:$0xf]  ;;  %s3497_s11 = sld [smem:[#allocation2 + $0x180]] }
  0x1a   :  { %4193 = vst [vmem:[#allocation12_spill] sm:$0xff] %v2280_v35  ;;  %v344_v59 = vmul.f32 %v2283_v36, %v2296_v40  ;;  %v2343_v60 = vunpack.c.l.bf16 %v2319_v48  ;;  %v281_v61 = vadd.f32 %v274_v54, %v267_v53  ;;  %v358_v62 = vmul.f32 %v2301_v42, %v2308_v45  ;;  %s3503_s12 = sld [smem:[#allocation2 + $0x181]] }
  0x1b   :  { %4194 = vst [vmem:[#allocation13_spill] sm:$0xff] %v2283_v36  ;;  %v372_v63 = vmul.f32 %v2304_v43, %v2326_v51  ;;  %v228_v0 = vadd.f32 %v221_v50, %v212_v56  ;;  %v407_v2 = vmul.f32 %v2283_v36, %v2275_v34  ;;  %v414_v3 = vmul.f32 %v2286_v37, %v2296_v40  ;;  %s3555_s15 = sld [smem:[#allocation4 + $0x3]] }
  0x1c   :  { %4195 = vst [vmem:[#allocation14_spill] sm:$0xff] %v2286_v37  ;;  %v351_v1 = vadd.f32 %v344_v59, %v337_v58  ;;  %v2360_v6 = vstv %s2277_s10  ;;  %v2393_v44 = vunpack.c.h.bf16 %v2268_v32  ;;  %s3245_s10 = sld [smem:[#allocation4 + $0x2]] }
  0x1d   :  { %4196 = vst [vmem:[#allocation15_spill] sm:$0xff] %v2301_v42  ;;  %s1954_s16 = sld [smem:[#allocation6 + $0x1]] }
  0x1e   :  { %544 = vperm.xlu2 %2075, %v1891_v7   ;;  %4197 = vst [vmem:[#allocation16_spill] sm:$0xff] %v2304_v43  ;;  %v295_v7 = vadd.f32 %v288_v55, %v281_v61  ;;  %v238_v58 = vmul.f32 %v2393_v44, %v2326_v51  ;;  %v289_v59 = vmul.f32 %v2393_v44, %v2308_v45 }
  0x1f   :  { %539 = vperm.xlu1 %2074, %v1890_v8   ;;  %512 = vperm.xlu0 %2073, %v479_v9   ;;  %4198 = vst [vmem:[#allocation17_spill] sm:$0xff] %v2343_v60  ;;  %v428_v8 = vmul.f32 %v2304_v43, %v2308_v45  ;;  %v244_v9 = vadd.f32 %v237_v52, %v228_v0 }
  0x20   :  { %4203 = vst [vmem:[#allocation22_spill] sm:$0xff] %v2393_v44  ;;  %v345_v0 = vmul.f32 %v2393_v44, %v2296_v40 }
  0x26   :  { %559 = vperm.xlu2 %2075, %v1894_v10   ;;  %v365_v10 = vadd.f32 %v358_v62, %v351_v1  ;;  %v1925_v1 = vld [vmem:[%s4044_s3 + $0x90] sm:$0xff] }
  0x27   :  { %554 = vperm.xlu1 %2074, %v1893_v11   ;;  %549 = vperm.xlu0 %2073, %v1892_v12   ;;  %v421_v11 = vadd.f32 %v414_v3, %v407_v2  ;;  %v2364_v12 = vunpack.c.h.bf16 %v2048_v25  ;;  %v1878_v25 = vld [vmem:[%s4041_s0 + $0xd8] sm:$0xf]  ;;  %v2428_v2 = vunpack.c.h.bf16 %v2319_v48  ;;  %v408_v48 = vmul.f32 %v2393_v44, %v2275_v34 }
  0x28   :  { %v2401_v50 = vunpack.c.l.bf16 %v1878_v25  ;;  %v2458_v25 = vld [vmem:[%s4041_s0 + $0x20] sm:$0xff]  }
  0x29   :  { %4199 = vst [vmem:[#allocation18_spill] sm:$0xff] %v2364_v12  ;;  %v197_v49 = vmul.f32 %v2364_v12, %v2275_v34 }
  0x2a   :  { %4206 = vst [vmem:[#allocation25_spill] sm:$0xff] %v2401_v50 }
  0x2b   :  { %4207 = vst [vmem:[#allocation26_spill] sm:$0xff] %v2428_v2 }
  0x2e   :  { %879 = vperm.xlu2 %2075, %v1902_v13   ;;  %v1922_v13 = vld [vmem:[%s4044_s3 + $0x78] sm:$0xff] }
  0x2f   :  { %569 = vperm.xlu1 %2074, %v1896_v14   ;;  %564 = vperm.xlu0 %2073, %v1895_v15   ;;  %v309_v14 = vadd.f32 %v302_v57, %v295_v7  ;;  %v442_v15 = vmul.f32 %v2343_v60, %v2326_v51  ;;  %v1924_v7 = vld [vmem:[%s4044_s3 + $0x88] sm:$0xff] }
  0x36   :  { %894 = vperm.xlu2 %2075, %v1905_v16   ;;  %v2371_v16 = vunpack.c.l.bf16 %v1836_v4 }
  0x37   :  { %889 = vperm.xlu1 %2074, %v1904_v17   ;;  %884 = vperm.xlu0 %2073, %v1903_v18   ;;  %v2373_v17 = vunpack.c.l.bf16 %v1850_v5  ;;  %v1864_v18 = vld [vmem:[%s4041_s0 + $0xa0] sm:$0xf]  ;;  %v373_v5 = vmul.f32 %v2326_v51, %v2401_v50 }
  0x38   :  { %4200 = vst [vmem:[#allocation19_spill] sm:$0xff] %v2371_v16  ;;  %v206_v52 = vmul.f32 %v2296_v40, %v2371_v16 }
  0x39   :  { %4201 = vst [vmem:[#allocation20_spill] sm:$0xff] %v2373_v17  ;;  %v222_v32 = vmul.f32 %v2308_v45, %v2373_v17 }
  0x3a   :  { %v213_v57 = vadd.f32 %v206_v52, %v197_v49  ;;  %v2468_v49 = vld [vmem:[%s4041_s0 + $0x8] sm:$0xff]  }
  0x3c   :  { %v229_v3 = vadd.f32 %v222_v32, %v213_v57  ;;  %v2475_v32 = vunpack.c.l.bf16 %v2458_v25  ;;  %v2486_v57 = vld [vmem:[%s4041_s0 + $0x38] sm:$0xff]  }
  0x3e   :  { %909 = vperm.xlu2 %2075, %v1908_v19   ;;  %v1921_v19 = vld [vmem:[%s4044_s3 + $0x70] sm:$0xff]  ;;  %4209 = vst [vmem:[#allocation28_spill] sm:$0xff] %v2475_v32 }
  0x3f   :  { %904 = vperm.xlu1 %2074, %v1907_v20   ;;  %899 = vperm.xlu0 %2073, %v1906_v21   ;;  %v1915_v20 = vld [vmem:[%s4044_s3 + $0x148] sm:$0x1]  ;;  %v253_v21 = vadd.f32 %v2360_v6, %v244_v9 }
  0x46   :  { %946 = vperm.xlu2 %2075, %v1911_v22   ;;  %v379_v22 = vadd.f32 %v372_v63, %v365_v10  ;;  %v338_v63 = vmul.f32 %v2275_v34, %v2373_v17 }
  0x47   :  { %941 = vperm.xlu1 %2074, %v1910_v23   ;;  %936 = vperm.xlu0 %2073, %v1909_v24   ;;  %v435_v23 = vadd.f32 %v428_v8, %v421_v11  ;;  %v2386_v24 = vunpack.c.h.bf16 %v2250_v27  ;;  %v260_v27 = vmax.f32 %v253_v21, 0.0  ;;  %v1923_v8 = vld [vmem:[%s4044_s3 + $0x80] sm:$0xff] }
  0x48   :  { %v2408_v53 = vadd.f32 %v379_v22, %v2360_v6  ;;  %v352_v10 = vadd.f32 %v345_v0, %v338_v63  ;;  %v2503_v63 = vld [vmem:[%s4041_s0 + $0x90] sm:$0xff]   ;;  %v2508_v0 = vld [vmem:[%s4041_s0 + $0xa8] sm:$0xff]  }
  0x49   :  { %4202 = vst [vmem:[#allocation21_spill] sm:$0xff] %v2386_v24  ;;  %v449_v54 = vadd.f32 %v442_v15, %v435_v23  ;;  %v275_v55 = vmul.f32 %v2386_v24, %v2296_v40  ;;  %v245_v15 = vadd.f32 %v238_v58, %v229_v3  ;;  %v2491_v58 = vld [vmem:[%s4041_s0 + $0x70] sm:$0xff]   ;;  %v2621_v35 = vunpack.c.h.bf16 %v2503_v63 }
  0x4b   :  { %4222 = vst [vmem:[#allocation41_spill] sm:$0xff] %v2621_v35 }
  0x4e   :  { %961 = vperm.xlu2 %2075, %v1914_v41   ;;  %v316_v41 = vadd.f32 %v309_v14, %v2360_v6  ;;  %v2446_v14 = vadd.f32 %v449_v54, %v2360_v6 }
  0x4f   :  { %956 = vperm.xlu1 %2074, %v1913_v46   ;;  %951 = vperm.xlu0 %2073, %v1912_v47   ;;  %v2395_v46 = vunpack.c.l.bf16 %v1864_v18  ;;  %v2397_v47 = vunpack.c.h.bf16 %v2063_v38  ;;  %v268_v38 = vmul.f32 %v2275_v34, %v2371_v16  ;;  %v429_v18 = vmul.f32 %v2308_v45, %v2401_v50 }
  0x50   :  { %v323_v56 = vmax.f32 %v316_v41, 0.0  ;;  %v2463_v41 = vld [vmem:[%s4041_s0 + $0x58] sm:$0xff]  }
  0x51   :  { %4204 = vst [vmem:[#allocation23_spill] sm:$0xff] %v2395_v46  ;;  %v282_v61 = vadd.f32 %v275_v55, %v268_v38  ;;  %v303_v62 = vmul.f32 %v2326_v51, %v2395_v46  ;;  %v359_v4 = vmul.f32 %v2397_v47, %v2308_v45  ;;  %v415_v11 = vmul.f32 %v2296_v40, %v2395_v46 }
  0x52   :  { %4205 = vst [vmem:[#allocation24_spill] sm:$0xff] %v2397_v47 }
  0x53   :  { %v296_v9 = vadd.f32 %v289_v59, %v282_v61  ;;  %v366_v22 = vadd.f32 %v359_v4, %v352_v10  ;;  %v422_v23 = vadd.f32 %v415_v11, %v408_v48  ;;  %v463_v59 = vmax.f32 %v2446_v14, 0.0  ;;  %v2526_v10 = vld [vmem:[%s4041_s0 + $0xc8] sm:$0xff]  }
  0x54   :  { %v2495_v61 = vunpack.c.h.bf16 %v2486_v57  ;;  %v202_v11 = vmul.f32 %v2475_v32, %v2296_v40 }
  0x55   :  { %v310_v21 = vadd.f32 %v303_v62, %v296_v9  ;;  %v380_v38 = vadd.f32 %v373_v5, %v366_v22  ;;  %v436_v55 = vadd.f32 %v429_v18, %v422_v23  ;;  %v2498_v62 = vunpack.c.h.bf16 %v2491_v58  ;;  %v1926_v18 = vld [vmem:[%s4044_s3 + $0x98] sm:$0xff] }
  0x56   :  { %1281 = vperm.xlu2 %2075, %v1922_v13   ;;  %v393_v13 = vmax.f32 %v2408_v53, 0.0  ;;  %v2478_v53 = vunpack.c.l.bf16 %v2463_v41  ;;  %4211 = vst [vmem:[#allocation30_spill] sm:$0xff] %v2495_v61  ;;  %v2514_v5 = vunpack.c.l.bf16 %v2503_v63  ;;  %v2541_v23 = vunpack.c.l.bf16 %v2526_v10  ;;  %v2636_v63 = vld [vmem:[%s4041_s0 + $0xe8] sm:$0xff]  }
  0x57   :  { %1276 = vperm.xlu1 %2074, %v1921_v19   ;;  %966 = vperm.xlu0 %2073, %v1915_v20   ;;  %v2453_v19 = vld [vmem:[%s4041_s0] sm:$0xff]   ;;  %v330_v20 = vmax.f32 %v260_v27, %v323_v56  ;;  %v254_v27 = vadd.f32 %v2360_v6, %v245_v15  ;;  %v317_v54 = vadd.f32 %v310_v21, %v2360_v6 }
  0x58   :  { %v2472_v52 = vunpack.c.h.bf16 %v2453_v19  ;;  %4210 = vst [vmem:[#allocation29_spill] sm:$0xff] %v2478_v53  ;;  %v443_v56 = vmul.f32 %v2428_v2, %v2326_v51  ;;  %v387_v9 = vadd.f32 %v380_v38, %v2360_v6  ;;  %v218_v14 = vmul.f32 %v2478_v53, %v2308_v45  ;;  %v1927_v15 = vld [vmem:[%s4044_s3 + $0xa0] sm:$0x1] }
  0x59   :  { %4212 = vst [vmem:[#allocation31_spill] sm:$0xff] %v2498_v62  ;;  %v261_v3 = vmax.f32 %v254_v27, 0.0  ;;  %v324_v4 = vmax.f32 %v317_v54, 0.0  ;;  %v400_v21 = vmax.f32 %v330_v20, %v393_v13  ;;  %v264_v27 = vmul.f32 %v2475_v32, %v2275_v34 }
  0x5a   :  { %4208 = vst [vmem:[#allocation27_spill] sm:$0xff] %v2472_v52  ;;  %v193_v48 = vmul.f32 %v2472_v52, %v2275_v34  ;;  %v450_v22 = vadd.f32 %v443_v56, %v436_v55  ;;  %v234_v38 = vmul.f32 %v2498_v62, %v2326_v51  ;;  %v271_v60 = vmul.f32 %v2495_v61, %v2296_v40 }
  0x5b   :  { %4213 = vst [vmem:[#allocation32_spill] sm:$0xff] %v2514_v5  ;;  %v285_v43 = vmul.f32 %v2498_v62, %v2308_v45  ;;  %v331_v42 = vmax.f32 %v261_v3, %v324_v4  ;;  %v299_v13 = vmul.f32 %v2514_v5, %v2326_v51  ;;  %v334_v20 = vmul.f32 %v2478_v53, %v2275_v34  ;;  %v2563_v3 = vld [vmem:[%s4041_s0 + $0xe0] sm:$0xff]  }
  0x5c   :  { %4215 = vst [vmem:[#allocation34_spill] sm:$0xff] %v2541_v23  ;;  %v209_v54 = vadd.f32 %v202_v11, %v193_v48  ;;  %v341_v55 = vmul.f32 %v2498_v62, %v2296_v40  ;;  %v394_v56 = vmax.f32 %v387_v9, 0.0  ;;  %v278_v11 = vadd.f32 %v271_v60, %v264_v27 }
  0x5d   :  { %v369_v30 = vmul.f32 %v2541_v23, %v2326_v51  ;;  %v2570_v9 = vunpack.c.h.bf16 %v2563_v3  ;;  %v2579_v27 = vmax.f32 %v400_v21, %v463_v59  ;;  %v412_v53 = vmul.f32 %v2621_v35, %v2296_v40 }
  0x5e   :  { %1296 = vperm.xlu2 %2075, %v1925_v1   ;;  %v2511_v1 = vunpack.c.l.bf16 %v2468_v49  ;;  %v225_v48 = vadd.f32 %v218_v14, %v209_v54  ;;  %v348_v4 = vadd.f32 %v341_v55, %v334_v20  ;;  %v292_v14 = vadd.f32 %v285_v43, %v278_v11  ;;  %v2589_v43 = vld [vmem:[%s4041_s0 + $0x78] sm:$0xff]  }
  0x5f   :  { %1291 = vperm.xlu1 %2074, %v1924_v7   ;;  %1286 = vperm.xlu0 %2073, %v1923_v8   ;;  %v2517_v7 = vunpack.c.h.bf16 %v2508_v0  ;;  %v1928_v8 = vld [vmem:[%s4044_s3 + $0x150] sm:$0xff]  ;;  %4216 = vst [vmem:[#allocation35_spill] sm:$0xff] %v2570_v9  ;;  %v425_v20 = vmul.f32 %v2541_v23, %v2308_v45  ;;  %v2584_v55 = vunpack.c.h.bf16 %v2458_v25  ;;  %v2598_v11 = vunpack.c.h.bf16 %v2463_v41 }
  0x60   :  { %v241_v60 = vadd.f32 %v234_v38, %v225_v48  ;;  %4217 = vst [vmem:[#allocation36_spill] sm:$0xff] %v2579_v27  ;;  %v1931_v48 = vld [vmem:[%s4044_s3 + $0x168] sm:$0xff]  ;;  %v2603_v25 = vld [vmem:[%s4041_s0 + $0xb0] sm:$0xff]   ;;  %v401_v27 = vmax.f32 %v331_v42, %v394_v56  ;;  %v2618_v36 = vunpack.c.l.bf16 %v2589_v43  ;;  %v2691_v32 = vunpack.c.l.bf16 %v2453_v19 }
  0x61   :  { %4214 = vst [vmem:[#allocation33_spill] sm:$0xff] %v2517_v7  ;;  %v355_v37 = vmul.f32 %v2517_v7, %v2308_v45  ;;  %v2624_v42 = vunpack.c.l.bf16 %v2603_v25  ;;  %v203_v56 = vmul.f32 %v2584_v55, %v2296_v40  ;;  %v1831_v7 = vld [vmem:[%s4041_s0 + $0x1c] sm:$0xf]  ;;  %v2704_v19 = vunpack.c.l.bf16 %v2486_v57 }
  0x62   :  { %v250_v59 = vadd.f32 %v2360_v6, %v241_v60  ;;  %4219 = vst [vmem:[#allocation38_spill] sm:$0xff] %v2598_v11  ;;  %v286_v29 = vmul.f32 %v2618_v36, %v2308_v45  ;;  %v405_v23 = vmul.f32 %v2618_v36, %v2275_v34  ;;  %v2693_v52 = vunpack.c.l.bf16 %v1831_v7  ;;  %v1873_v7 = vld [vmem:[%s4041_s0 + $0xc4] sm:$0xf]  ;;  %v1942_v57 = vld [vmem:[%s4044_s3 + $0xb8] sm:$0xff] }
  0x63   :  { %v362_v54 = vadd.f32 %v355_v37, %v348_v4  ;;  %v306_v37 = vadd.f32 %v299_v13, %v292_v14  ;;  %v1930_v4 = vld [vmem:[%s4044_s3 + $0x160] sm:$0xff]  ;;  %4221 = vst [vmem:[#allocation40_spill] sm:$0xff] %v2618_v36  ;;  %v2804_v2 = vstv %s2743_s23 }
  0x64   :  { %4223 = vst [vmem:[#allocation42_spill] sm:$0xff] %v2624_v42 }
  0x65   :  { %v376_v13 = vadd.f32 %v369_v30, %v362_v54  ;;  %v313_v41 = vadd.f32 %v306_v37, %v2360_v6  ;;  %v194_v30 = vmul.f32 %v2511_v1, %v2275_v34  ;;  %4227 = vst [vmem:[#allocation46_spill] sm:$0xff] %v2691_v32 }
  0x66   :  { %1333 = vperm.xlu2 %2075, %v1928_v8   ;;  %v457_v8 = vadd.f32 %v450_v22, %v2360_v6  ;;  %v2577_v22 = vld [vmem:[%s4041_s0 + $0x40] sm:$0xff]   ;;  %4228 = vst [vmem:[#allocation47_spill] sm:$0xff] %v2693_v52 }
  0x67   :  { %1306 = vperm.xlu1 %2074, %v1927_v15   ;;  %1301 = vperm.xlu0 %2073, %v1926_v18   ;;  %v404_v15 = vmul.f32 %v2498_v62, %v2275_v34  ;;  %v411_v18 = vmul.f32 %v2514_v5, %v2296_v40  ;;  %v320_v54 = vmax.f32 %v313_v41, 0.0  ;;  %v210_v37 = vadd.f32 %v203_v56, %v194_v30 }
  0x68   :  { %v2591_v38 = vpop.permute.xlu2 %502  ;;  %v464_v60 = vmax.f32 %v457_v8, 0.0  ;;  %v257_v8 = vmax.f32 %v250_v59, 0.0  ;;  %v2647_v41 = vunpack.c.h.bf16 %v2526_v10  ;;  %v300_v56 = vmul.f32 %v2621_v35, %v2326_v51  ;;  %4230 = vst [vmem:[#allocation49_spill] sm:$0xff] %v2704_v19 }
  0x69   :  { %4218 = vst [vmem:[#allocation37_spill] sm:$0xff] %v2591_v38  ;;  %v418_v21 = vadd.f32 %v411_v18, %v404_v15  ;;  %v1929_v38 = vld [vmem:[%s4044_s3 + $0x158] sm:$0xff]  ;;  %v2612_v15 = vunpack.c.l.bf16 %v2577_v22  ;;  %v439_v18 = vmul.f32 %v2570_v9, %v2326_v51  ;;  %v335_v9 = vmul.f32 %v2598_v11, %v2275_v34 }
  0x6a   :  { %v2644_v59 = vmax.f32 %v401_v27, %v464_v60  ;;  %4224 = vst [vmem:[#allocation43_spill] sm:$0xff] %v2647_v41  ;;  %v1941_v27 = vld [vmem:[%s4044_s3 + $0xb0] sm:$0xff]  ;;  %v342_v10 = vmul.f32 %v2618_v36, %v2296_v40  ;;  %v370_v62 = vmul.f32 %v2647_v41, %v2326_v51 }
  0x6b   :  { %4220 = vst [vmem:[#allocation39_spill] sm:$0xff] %v2612_v15  ;;  %v432_v14 = vadd.f32 %v425_v20, %v418_v21  ;;  %v383_v20 = vadd.f32 %v376_v13, %v2360_v6  ;;  %v235_v21 = vmul.f32 %v2618_v36, %v2326_v51 }
  0x6c   :  { %v349_v61 = vadd.f32 %v342_v10, %v335_v9  ;;  %v419_v10 = vadd.f32 %v412_v53, %v405_v23 }
  0x6d   :  { %v446_v13 = vadd.f32 %v439_v18, %v432_v14  ;;  %v390_v60 = vmax.f32 %v383_v20, 0.0  ;;  %v2659_v14 = vunpack.c.l.bf16 %v2636_v63  ;;  %v356_v18 = vmul.f32 %v2624_v42, %v2308_v45 }
  0x6e   :  { %1348 = vperm.xlu2 %2075, %v1931_v48   ;;  %v219_v48 = vmul.f32 %v2598_v11, %v2308_v45 }
  0x6f   :  { %1343 = vperm.xlu1 %2074, %v1930_v4   ;;  %1338 = vperm.xlu0 %2073, %v1929_v38   ;;  %v265_v4 = vmul.f32 %v2584_v55, %v2275_v34  ;;  %v272_v38 = vmul.f32 %v2612_v15, %v2296_v40  ;;  %4225 = vst [vmem:[#allocation44_spill] sm:$0xff] %v2659_v14 }
  0x70   :  { %v226_v28 = vadd.f32 %v219_v48, %v210_v37  ;;  %v1940_v48 = vld [vmem:[%s4044_s3 + $0xa8] sm:$0xff]  ;;  %v1932_v37 = vld [vmem:[%s4044_s3 + $0x170] sm:$0xff]  ;;  %v508_v5 = vpop.permute.xlu2 %507 }
  0x71   :  { %v279_v30 = vadd.f32 %v272_v38, %v265_v4  ;;  %v327_v4 = vmax.f32 %v257_v8, %v320_v54  ;;  %v426_v8 = vmul.f32 %v2647_v41, %v2308_v45  ;;  %v453_v54 = vadd.f32 %v446_v13, %v2360_v6 }
  0x72   :  { %v242_v38 = vadd.f32 %v235_v21, %v226_v28  ;;  %v1845_v28 = vld [vmem:[%s4041_s0 + $0x54] sm:$0xf]  ;;  %v440_v13 = vmul.f32 %v2659_v14, %v2326_v51 }
  0x73   :  { %v293_v20 = vadd.f32 %v286_v29, %v279_v30  ;;  %v2686_v29 = vmul.f32 %v508_v5, %v2644_v59  ;;  %v363_v30 = vadd.f32 %v356_v18, %v349_v61  ;;  %v1859_v5 = vld [vmem:[%s4041_s0 + $0x8c] sm:$0xf]  ;;  %v433_v53 = vadd.f32 %v426_v8, %v419_v10 }
  0x74   :  { %v251_v9 = vadd.f32 %v2360_v6, %v242_v38  ;;  %v460_v23 = vmax.f32 %v453_v54, 0.0  ;;  %v2712_v18 = vunpack.c.l.bf16 %v2491_v58  ;;  %v192_v38 = vmul.f32 %v2691_v32, %v2275_v34  ;;  %v1947_v8 = vld [vmem:[%s4044_s3 + $0x188] sm:$0xff] }
  0x75   :  { %4226 = vst [vmem:[#allocation45_spill] sm:$0xff] %v2686_v29  ;;  %v307_v21 = vadd.f32 %v300_v56, %v293_v20  ;;  %v397_v29 = vmax.f32 %v327_v4, %v390_v60  ;;  %v2701_v56 = vunpack.c.l.bf16 %v1845_v28  ;;  %v377_v61 = vadd.f32 %v370_v62, %v363_v30  ;;  %v1948_v20 = vld [vmem:[%s4044_s3 + $0x190] sm:$0xff] }
  0x76   :  { %1678 = vperm.xlu2 %2075, %v1941_v27   ;;  %4231 = vst [vmem:[#allocation50_spill] sm:$0xff] %v2712_v18  ;;  %v2723_v4 = vunpack.c.l.bf16 %v2508_v0  ;;  %v201_v58 = vmul.f32 %v2296_v40, %v2693_v52  ;;  %v447_v28 = vadd.f32 %v440_v13, %v433_v53  ;;  %v2737_v54 = vunpack.c.l.bf16 %v1873_v7 }
  0x77   :  { %1673 = vperm.xlu1 %2074, %v1940_v48   ;;  %1353 = vperm.xlu0 %2073, %v1932_v37   ;;  %v314_v27 = vadd.f32 %v307_v21, %v2360_v6  ;;  %4229 = vst [vmem:[#allocation48_spill] sm:$0xff] %v2701_v56  ;;  %v258_v48 = vmax.f32 %v251_v9, 0.0  ;;  %v2714_v37 = vunpack.c.l.bf16 %v1859_v5  ;;  %v384_v62 = vadd.f32 %v377_v61, %v2360_v6 }
  0x78   :  { %4233 = vst [vmem:[#allocation52_spill] sm:$0xff] %v2723_v4  ;;  %v217_v0 = vmul.f32 %v2308_v45, %v2701_v56  ;;  %v263_v9 = vmul.f32 %v2275_v34, %v2693_v52  ;;  %v208_v30 = vadd.f32 %v201_v58, %v192_v38  ;;  %v233_v10 = vmul.f32 %v2712_v18, %v2326_v51 }
  0x79   :  { %v321_v60 = vmax.f32 %v314_v27, 0.0  ;;  %4232 = vst [vmem:[#allocation51_spill] sm:$0xff] %v2714_v37  ;;  %v270_v5 = vmul.f32 %v2704_v19, %v2296_v40  ;;  %v391_v27 = vmax.f32 %v384_v62, 0.0  ;;  %v284_v13 = vmul.f32 %v2712_v18, %v2308_v45 }
  0x7a   :  { %4234 = vst [vmem:[#allocation53_spill] sm:$0xff] %v2737_v54  ;;  %v333_v61 = vmul.f32 %v2275_v34, %v2701_v56  ;;  %v2758_v53 = vunpack.c.l.bf16 %v2563_v3  ;;  %v224_v7 = vadd.f32 %v217_v0, %v208_v30  ;;  %v354_v38 = vmul.f32 %v2723_v4, %v2308_v45 }
  0x7b   :  { %v328_v21 = vmax.f32 %v258_v48, %v321_v60  ;;  %v340_v48 = vmul.f32 %v2712_v18, %v2296_v40  ;;  %v277_v60 = vadd.f32 %v270_v5, %v263_v9  ;;  %v368_v58 = vmul.f32 %v2326_v51, %v2737_v54 }
  0x7c   :  { %4235 = vst [vmem:[#allocation54_spill] sm:$0xff] %v2758_v53  ;;  %v2771_v3 = vadd.f32 %v447_v28, %v2360_v6  ;;  %v240_v0 = vadd.f32 %v233_v10, %v224_v7  ;;  %v438_v28 = vmul.f32 %v2758_v53, %v2326_v51  ;;  %v2786_v10 = vstv %s2709_s13  ;;  %s3511_s13 = sld [smem:[#allocation2 + $0x182]] }
  0x7d   :  { %v347_v62 = vadd.f32 %v340_v48, %v333_v61  ;;  %v291_v9 = vadd.f32 %v284_v13, %v277_v60  ;;  %v2773_v30 = vmax.f32 %v328_v21, %v391_v27  ;;  %v410_v61 = vmul.f32 %v2296_v40, %v2714_v37  ;;  %v1950_v21 = vld [vmem:[%s4044_s3 + $0x1a0] sm:$0xff]  ;;  %v2788_v27 = vpop.permute.xlu2 %544 }
  0x7e   :  { %1683 = vperm.xlu2 %2075, %v1942_v57   ;;  %v298_v57 = vmul.f32 %v2326_v51, %v2714_v37  ;;  %v424_v48 = vmul.f32 %v2308_v45, %v2737_v54  ;;  %4236 = vst [vmem:[#allocation55_spill] sm:$0xff] %v2788_v27  ;;  %v1943_v60 = vld [vmem:[%s4044_s3 + $0xc0] sm:$0xff]  ;;  %v2807_v27 = vstv %s2749_s20 }
  0x7f   :  { %1735 = vperm.xlu1 %2074, %v1948_v20   ;;  %1730 = vperm.xlu0 %2073, %v1947_v8   ;;  %v403_v20 = vmul.f32 %v2712_v18, %v2275_v34  ;;  %v2768_v8 = vmax.f32 %v397_v29, %v460_v23  ;;  %v361_v5 = vadd.f32 %v354_v38, %v347_v62  ;;  %v2797_v62 = vstv %s2716_s14  ;;  %s3517_s14 = sld [smem:[#allocation2 + $0x183]] }
  0x80   :  { %v249_v29 = vadd.f32 %v2360_v6, %v240_v0  ;;  %v305_v23 = vadd.f32 %v298_v57, %v291_v9  ;;  %v1949_v57 = vld [vmem:[%s4044_s3 + $0x198] sm:$0xff]  ;;  %v2800_v38 = vstv %s2729_s18  ;;  %s1791_s18 = sld [smem:[#allocation6]] }
  0x81   :  { %v375_v13 = vadd.f32 %v368_v58, %v361_v5  ;;  %v417_v7 = vadd.f32 %v410_v61, %v403_v20  ;;  %v588_v5 = vmul.f32 %v2691_v32, %v2786_v10  ;;  %v597_v61 = vmul.f32 %v2797_v62, %v2693_v52 }
  0x82   :  { %v256_v0 = vmax.f32 %v249_v29, 0.0  ;;  %v312_v9 = vadd.f32 %v305_v23, %v2360_v6  ;;  %v613_v29 = vmul.f32 %v2800_v38, %v2701_v56  ;;  %v629_v23 = vmul.f32 %v2712_v18, %v2804_v2 }
  0x83   :  { %v382_v58 = vadd.f32 %v375_v13, %v2360_v6  ;;  %v431_v20 = vadd.f32 %v424_v48, %v417_v7  ;;  %v659_v13 = vmul.f32 %v2786_v10, %v2693_v52  ;;  %v604_v7 = vadd.f32 %v597_v61, %v588_v5  ;;  %v1951_v5 = vld [vmem:[%s4044_s3 + $0x1a8] sm:$0xff] }
  0x84   :  { %v319_v50 = vmax.f32 %v312_v9, 0.0  ;;  %v666_v32 = vmul.f32 %v2704_v19, %v2797_v62  ;;  %v729_v9 = vmul.f32 %v2786_v10, %v2701_v56 }
  0x85   :  { %v389_v48 = vmax.f32 %v382_v58, 0.0  ;;  %v620_v24 = vadd.f32 %v613_v29, %v604_v7  ;;  %v806_v7 = vmul.f32 %v2797_v62, %v2714_v37 }
  0x86   :  { %1745 = vperm.xlu2 %2075, %v1950_v21   ;;  %v445_v21 = vadd.f32 %v438_v28, %v431_v20  ;;  %v326_v47 = vmax.f32 %v256_v0, %v319_v50  ;;  %v673_v52 = vadd.f32 %v666_v32, %v659_v13  ;;  %v736_v28 = vmul.f32 %v2712_v18, %v2797_v62 }
  0x87   :  { %1688 = vperm.xlu1 %2074, %v1943_v60   ;;  %1740 = vperm.xlu0 %2073, %v1949_v57   ;;  %v680_v60 = vmul.f32 %v2712_v18, %v2800_v38  ;;  %v694_v57 = vmul.f32 %v2804_v2, %v2714_v37  ;;  %v750_v50 = vmul.f32 %v2723_v4, %v2800_v38  ;;  %v2862_v37 = vunpack.c.l.bf16 %v2245_v26 }
  0x88   :  { %v452_v46 = vadd.f32 %v445_v21, %v2360_v6  ;;  %v396_v58 = vmax.f32 %v326_v47, %v389_v48  ;;  %v764_v0 = vmul.f32 %v2804_v2, %v2737_v54  ;;  %v799_v20 = vmul.f32 %v2712_v18, %v2786_v10  ;;  %v1944_v47 = vld [vmem:[%s4044_s3 + $0xc8] sm:$0xff]  ;;  %v1933_v48 = vld [vmem:[%s4044_s3 + $0x178] sm:$0xff] }
  0x89   :  { %v636_v29 = vadd.f32 %v629_v23, %v620_v24  ;;  %v687_v32 = vadd.f32 %v680_v60, %v673_v52  ;;  %v743_v13 = vadd.f32 %v736_v28, %v729_v9  ;;  %v820_v4 = vmul.f32 %v2800_v38, %v2737_v54  ;;  %4238 = vst [vmem:[#allocation57_spill] sm:$0xff] %v2862_v37 }
  0x8a   :  { %v459_v61 = vmax.f32 %v452_v46, 0.0  ;;  %v834_v24 = vmul.f32 %v2758_v53, %v2804_v2  ;;  %v2853_v46 = vpop.permute.xlu2 %559  ;;  %v2857_v9 = vunpack.c.h.bf16 %v2468_v49  ;;  %v813_v21 = vadd.f32 %v806_v7, %v799_v20 }
  0x8b   :  { %v645_v52 = vadd.f32 %v2807_v27, %v636_v29  ;;  %v701_v23 = vadd.f32 %v694_v57, %v687_v32  ;;  %v757_v60 = vadd.f32 %v750_v50, %v743_v13  ;;  %v2865_v54 = vunpack.c.l.bf16 %v2263_v31 }
  0x8c   :  { %4237 = vst [vmem:[#allocation56_spill] sm:$0xff] %v2857_v9  ;;  %v2859_v28 = vmax.f32 %v396_v58, %v459_v61  ;;  %v2869_v50 = vunpack.c.h.bf16 %v2577_v22  ;;  %v827_v49 = vadd.f32 %v820_v4, %v813_v21  ;;  %v2872_v58 = vunpack.c.h.bf16 %v2589_v43 }
  0x8d   :  { %4239 = vst [vmem:[#allocation58_spill] sm:$0xff] %v2865_v54  ;;  %v652_v53 = vmax.f32 %v645_v52, 0.0  ;;  %v708_v29 = vadd.f32 %v701_v23, %v2807_v27  ;;  %v771_v57 = vadd.f32 %v764_v0, %v757_v60  ;;  %v2875_v20 = vunpack.c.l.bf16 %v2273_v33  ;;  %v483_v23 = vpop.permute.xlu0 %482 }
  0x8e   :  { %1750 = vperm.xlu2 %2075, %v1951_v5   ;;  %4240 = vst [vmem:[#allocation59_spill] sm:$0xff] %v2869_v50  ;;  %v2878_v26 = vunpack.c.h.bf16 %v2603_v25  ;;  %v2882_v61 = vunpack.c.l.bf16 %v2294_v39  ;;  %v2885_v0 = vunpack.c.h.bf16 %v2636_v63  ;;  %v841_v22 = vadd.f32 %v834_v24, %v827_v49 }
  0x8f   :  { %1693 = vperm.xlu1 %2074, %v1944_v47   ;;  %1358 = vperm.xlu0 %2073, %v1933_v48   ;;  %4241 = vst [vmem:[#allocation60_spill] sm:$0xff] %v2872_v58  ;;  %v715_v31 = vmax.f32 %v708_v29, 0.0  ;;  %v778_v5 = vadd.f32 %v771_v57, %v2807_v27  ;;  %v195_v43 = vmul.f32 %v2857_v9, %v2275_v34 }
  0x90   :  { %4242 = vst [vmem:[#allocation61_spill] sm:$0xff] %v2875_v20  ;;  %v204_v33 = vmul.f32 %v2862_v37, %v2296_v40  ;;  %v220_v25 = vmul.f32 %v2865_v54, %v2308_v45  ;;  %v236_v13 = vmul.f32 %v2872_v58, %v2326_v51  ;;  %v266_v39 = vmul.f32 %v2862_v37, %v2275_v34 }
  0x91   :  { %4243 = vst [vmem:[#allocation62_spill] sm:$0xff] %v2878_v26  ;;  %v722_v4 = vmax.f32 %v652_v53, %v715_v31  ;;  %v785_v32 = vmax.f32 %v778_v5, 0.0  ;;  %v848_v63 = vadd.f32 %v841_v22, %v2807_v27  ;;  %v273_v48 = vmul.f32 %v2869_v50, %v2296_v40 }
  0x92   :  { %4244 = vst [vmem:[#allocation63_spill] sm:$0xff] %v2882_v61  ;;  %v211_v47 = vadd.f32 %v204_v33, %v195_v43  ;;  %v287_v21 = vmul.f32 %v2872_v58, %v2308_v45  ;;  %v301_v53 = vmul.f32 %v2875_v20, %v2326_v51  ;;  %v336_v24 = vmul.f32 %v2865_v54, %v2275_v34  ;;  %v880_v31 = vpop.permute.xlu2 %879 }
  0x93   :  { %4245 = vst [vmem:[#allocation64_spill] sm:$0xff] %v2885_v0  ;;  %v792_v7 = vmax.f32 %v722_v4, %v785_v32  ;;  %v343_v52 = vmul.f32 %v2872_v58, %v2296_v40  ;;  %v855_v60 = vmax.f32 %v848_v63, 0.0  ;;  %v280_v57 = vadd.f32 %v273_v48, %v266_v39  ;;  %v2920_v39 = vpop.permute.xlu1 %492 }
  0x94   :  { %v227_v29 = vadd.f32 %v220_v25, %v211_v47  ;;  %v357_v49 = vmul.f32 %v2878_v26, %v2308_v45  ;;  %v371_v22 = vmul.f32 %v2882_v61, %v2326_v51  ;;  %v406_v43 = vmul.f32 %v2872_v58, %v2275_v34 }
  0x95   :  { %v350_v5 = vadd.f32 %v343_v52, %v336_v24  ;;  %v413_v33 = vmul.f32 %v2875_v20, %v2296_v40  ;;  %v2916_v4 = vmax.f32 %v792_v7, %v855_v60  ;;  %v294_v63 = vadd.f32 %v287_v21, %v280_v57 }
  0x96   :  { %v243_v32 = vadd.f32 %v236_v13, %v227_v29  ;;  %v427_v25 = vmul.f32 %v2882_v61, %v2308_v45  ;;  %v515_v47 = vmul.f32 %v483_v23, %v2859_v28  ;;  %v441_v52 = vmul.f32 %v2885_v0, %v2326_v51 }
  0x97   :  { %4246 = vst [vmem:[#allocation65_spill] sm:$0xff] %v2916_v4  ;;  %v364_v48 = vadd.f32 %v357_v49, %v350_v5  ;;  %v420_v24 = vadd.f32 %v413_v33, %v406_v43  ;;  %v912_v19 = vmul.f32 %v880_v31, %v2916_v4  ;;  %v308_v7 = vadd.f32 %v301_v53, %v294_v63 }
  0x98   :  { %v252_v18 = vadd.f32 %v2360_v6, %v243_v32  ;;  %v591_v13 = vmul.f32 %v2857_v9, %v2786_v10  ;;  %v600_v29 = vmul.f32 %v2862_v37, %v2797_v62  ;;  %v616_v23 = vmul.f32 %v2865_v54, %v2800_v38  ;;  %v1952_v32 = vld [vmem:[%s4044_s3 + $0x1b0] sm:$0xff] }
  0x99   :  { %v378_v21 = vadd.f32 %v371_v22, %v364_v48  ;;  %v434_v60 = vadd.f32 %v427_v25, %v420_v24  ;;  %v2933_v57 = vadd.f32 %v912_v19, %v515_v47  ;;  %v315_v5 = vadd.f32 %v308_v7, %v2360_v6  ;;  %v1945_v19 = vld [vmem:[%s4044_s3 + $0xd0] sm:$0xff]  ;;  %1755 = vperm.xlu2 %2075, %v1952_v32  }
  0x9a   :  { %v259_v49 = vmax.f32 %v252_v18, 0.0  ;;  %v632_v31 = vmul.f32 %v2872_v58, %v2804_v2  ;;  %v607_v33 = vadd.f32 %v600_v29, %v591_v13  ;;  %v662_v22 = vmul.f32 %v2862_v37, %v2786_v10  ;;  %v1934_v18 = vld [vmem:[%s4044_s3 + $0x180] sm:$0x1]  ;;  %1698 = vperm.xlu1 %2074, %v1945_v19   ;;  %v1844_v19 = vld [vmem:[%s4041_s0 + $0x50] sm:$0x1] }
  0x9b   :  { %4247 = vst [vmem:[#allocation66_spill] sm:$0xff] %v2933_v57  ;;  %v385_v53 = vadd.f32 %v378_v21, %v2360_v6  ;;  %v448_v43 = vadd.f32 %v441_v52, %v434_v60  ;;  %v322_v63 = vmax.f32 %v315_v5, 0.0  ;;  %v669_v25 = vmul.f32 %v2869_v50, %v2797_v62  ;;  %1363 = vperm.xlu0 %2073, %v1934_v18  }
  0x9c   :  { %v683_v47 = vmul.f32 %v2872_v58, %v2800_v38  ;;  %v697_v48 = vmul.f32 %v2875_v20, %v2804_v2  ;;  %v623_v7 = vadd.f32 %v616_v23, %v607_v33  ;;  %v732_v13 = vmul.f32 %v2865_v54, %v2786_v10 }
  0x9d   :  { %v392_v24 = vmax.f32 %v385_v53, 0.0  ;;  %v455_v52 = vadd.f32 %v448_v43, %v2360_v6  ;;  %v329_v21 = vmax.f32 %v259_v49, %v322_v63  ;;  %v676_v60 = vadd.f32 %v669_v25, %v662_v22  ;;  %v62_v22 = vld [vmem:[%s4041_s0 + $0x18] sm:$0x1]  ;;  %v498_v25 = vpop.permute.xlu1 %497 }
  0x9e   :  { %v739_v29 = vmul.f32 %v2872_v58, %v2797_v62  ;;  %v753_v5 = vmul.f32 %v2878_v26, %v2800_v38  ;;  %v639_v50 = vadd.f32 %v632_v31, %v623_v7  ;;  %v767_v53 = vmul.f32 %v2882_v61, %v2804_v2  ;;  %v1837_v31 = vld [vmem:[%s4041_s0 + $0x34] sm:$0x1]  ;;  %v1851_v7 = vld [vmem:[%s4041_s0 + $0x6c] sm:$0x1] }
  0x9f   :  { %v462_v57 = vmax.f32 %v455_v52, 0.0  ;;  %v802_v23 = vmul.f32 %v2872_v58, %v2786_v10  ;;  %v399_v43 = vmax.f32 %v329_v21, %v392_v24  ;;  %v690_v33 = vadd.f32 %v683_v47, %v676_v60 }
  0xa0   :  { %v746_v32 = vadd.f32 %v739_v29, %v732_v13  ;;  %v809_v49 = vmul.f32 %v2875_v20, %v2797_v62  ;;  %v4248_v18 = vmax.f32 %v2771_v3, 0.0  ;;  %v648_v47 = vadd.f32 %v2807_v27, %v639_v50  ;;  %v1865_v50 = vld [vmem:[%s4041_s0 + $0xa4] sm:$0x1]  ;;  %v1872_v29 = vld [vmem:[%s4041_s0 + $0xc0] sm:$0x1] }
  0xa1   :  { %v823_v24 = vmul.f32 %v2882_v61, %v2800_v38  ;;  %v837_v52 = vmul.f32 %v2885_v0, %v2804_v2  ;;  %v2991_v13 = vmax.f32 %v399_v43, %v462_v57  ;;  %v704_v21 = vadd.f32 %v697_v48, %v690_v33 }
  0xa2   :  { %v2981_v63 = vmax.f32 %v2773_v30, %v4248_v18  ;;  %v760_v3 = vadd.f32 %v753_v5, %v746_v32  ;;  %v816_v60 = vadd.f32 %v809_v49, %v802_v23  ;;  %v1858_v30 = vld [vmem:[%s4041_s0 + $0x88] sm:$0x1]  ;;  %v3002_v18 = vpop.permute.xlu0 %487  ;;  %v655_v0 = vmax.f32 %v648_v47, 0.0  ;;  %v1879_v23 = vld [vmem:[%s4041_s0 + $0xdc] sm:$0x1] }
  0xa3   :  { %v3004_v57 = vunpack.c.l.bf16 %v62_v22  ;;  %v3006_v48 = vunpack.c.l.bf16 %v1837_v31  ;;  %v3008_v5 = vunpack.c.l.bf16 %v1844_v19  ;;  %v518_v43 = vmul.f32 %v498_v25, %v2991_v13  ;;  %v1886_v47 = vld [vmem:[%s4041_s0 + $0xf8] sm:$0x1] }
  0xa4   :  { %v711_v33 = vadd.f32 %v704_v21, %v2807_v27  ;;  %v774_v32 = vadd.f32 %v767_v53, %v760_v3  ;;  %v830_v49 = vadd.f32 %v823_v24, %v816_v60  ;;  %v3018_v22 = vunpack.c.l.bf16 %v1851_v7  ;;  %v1953_v3 = vld [vmem:[%s4044_s3 + $0x1b8] sm:$0x1] }
  0xa5   :  { %4249 = vst [vmem:[#allocation67_spill] sm:$0xff] %v3004_v57  ;;  %v3020_v31 = vunpack.c.l.bf16 %v1858_v30  ;;  %v3022_v19 = vunpack.c.l.bf16 %v1865_v50  ;;  %v3024_v61 = vunpack.c.l.bf16 %v1872_v29  ;;  %v3027_v58 = vunpack.c.l.bf16 %v1879_v23  ;;  %1760 = vperm.xlu1 %2074, %v1953_v3   ;;  %v3077_v56 = vpop.permute.xlu1 %539 }
  0xa6   :  { %4250 = vst [vmem:[#allocation68_spill] sm:$0xff] %v3006_v48  ;;  %v718_v26 = vmax.f32 %v711_v33, 0.0  ;;  %v781_v20 = vadd.f32 %v774_v32, %v2807_v27  ;;  %v844_v25 = vadd.f32 %v837_v52, %v830_v49  ;;  %v3029_v53 = vunpack.c.l.bf16 %v1886_v47  ;;  %v1946_v52 = vld [vmem:[%s4044_s3 + $0xd8] sm:$0x1]  ;;  %s3223_s3 = sld [smem:[#allocation2 + $0x100]] }
  0xa7   :  { %4251 = vst [vmem:[#allocation69_spill] sm:$0xff] %v3008_v5  ;;  %v198_v24 = vmul.f32 %v2275_v34, %v3004_v57  ;;  %v207_v7 = vmul.f32 %v2296_v40, %v3006_v48  ;;  %v223_v21 = vmul.f32 %v2308_v45, %v3018_v22  ;;  %v239_v29 = vmul.f32 %v2326_v51, %v3020_v31 }
  0xa8   :  { %4252 = vst [vmem:[#allocation70_spill] sm:$0xff] %v3018_v22  ;;  %v725_v60 = vmax.f32 %v655_v0, %v718_v26  ;;  %v788_v30 = vmax.f32 %v781_v20, 0.0  ;;  %v851_v50 = vadd.f32 %v844_v25, %v2807_v27  ;;  %1703 = vperm.xlu0 %2073, %v1946_v52   ;;  %v269_v33 = vmul.f32 %v2275_v34, %v3006_v48  ;;  %v895_v25 = vpop.permute.xlu2 %894 }
  0xa9   :  { %4253 = vst [vmem:[#allocation71_spill] sm:$0xff] %v3020_v31  ;;  %v214_v23 = vadd.f32 %v207_v7, %v198_v24  ;;  %v276_v32 = vmul.f32 %v2296_v40, %v3008_v5  ;;  %v290_v49 = vmul.f32 %v2308_v45, %v3020_v31  ;;  %v304_v20 = vmul.f32 %v2326_v51, %v3022_v19 }
  0xaa   :  { %4254 = vst [vmem:[#allocation72_spill] sm:$0xff] %v3022_v19  ;;  %v795_v47 = vmax.f32 %v725_v60, %v788_v30  ;;  %v858_v26 = vmax.f32 %v851_v50, 0.0  ;;  %v339_v0 = vmul.f32 %v2275_v34, %v3018_v22  ;;  %v346_v7 = vmul.f32 %v2296_v40, %v3020_v31  ;;  %v3068_v37 = vpop.permute.xlu0 %512 }
  0xab   :  { %4255 = vst [vmem:[#allocation73_spill] sm:$0xff] %v3024_v61  ;;  %v230_v3 = vadd.f32 %v223_v21, %v214_v23  ;;  %v283_v24 = vadd.f32 %v276_v32, %v269_v33  ;;  %v360_v52 = vmul.f32 %v2308_v45, %v3024_v61  ;;  %v374_v60 = vmul.f32 %v2326_v51, %v3027_v58 }
  0xac   :  { %4256 = vst [vmem:[#allocation74_spill] sm:$0xff] %v3027_v58  ;;  %v3060_v54 = vmax.f32 %v795_v47, %v858_v26  ;;  %v409_v30 = vmul.f32 %v2275_v34, %v3020_v31  ;;  %v416_v50 = vmul.f32 %v2296_v40, %v3022_v19  ;;  %v353_v33 = vadd.f32 %v346_v7, %v339_v0 }
  0xad   :  { %4257 = vst [vmem:[#allocation75_spill] sm:$0xff] %v3029_v53  ;;  %v246_v21 = vadd.f32 %v239_v29, %v230_v3  ;;  %v297_v23 = vadd.f32 %v290_v49, %v283_v24  ;;  %v430_v32 = vmul.f32 %v2308_v45, %v3027_v58  ;;  %v444_v9 = vmul.f32 %v2326_v51, %v3029_v53 }
  0xae   :  { %v915_v47 = vmul.f32 %v895_v25, %v3060_v54  ;;  %v423_v26 = vadd.f32 %v416_v50, %v409_v30  ;;  %v594_v34 = vmul.f32 %v2786_v10, %v3004_v57  ;;  %v367_v29 = vadd.f32 %v360_v52, %v353_v33 }
  0xaf   :  { %v255_v40 = vadd.f32 %v2360_v6, %v246_v21  ;;  %v311_v4 = vadd.f32 %v304_v20, %v297_v23  ;;  %v603_v49 = vmul.f32 %v2797_v62, %v3006_v48  ;;  %v619_v25 = vmul.f32 %v2800_v38, %v3018_v22 }
  0xb0   :  { %v3082_v0 = vadd.f32 %v915_v47, %v518_v43  ;;  %v437_v45 = vadd.f32 %v430_v32, %v423_v26  ;;  %v635_v51 = vmul.f32 %v2804_v2, %v3020_v31  ;;  %v381_v7 = vadd.f32 %v374_v60, %v367_v29 }
  0xb1   :  { %v262_v3 = vmax.f32 %v255_v40, 0.0  ;;  %v318_v24 = vadd.f32 %v311_v4, %v2360_v6  ;;  %v610_v30 = vadd.f32 %v603_v49, %v594_v34  ;;  %v665_v20 = vmul.f32 %v2786_v10, %v3006_v48 }
  0xb2   :  { %4258 = vst [vmem:[#allocation76_spill] sm:$0xff] %v3082_v0  ;;  %v451_v50 = vadd.f32 %v444_v9, %v437_v45  ;;  %v672_v43 = vmul.f32 %v2797_v62, %v3008_v5  ;;  %v686_v52 = vmul.f32 %v2800_v38, %v3020_v31  ;;  %v388_v23 = vadd.f32 %v381_v7, %v2360_v6 }
  0xb3   :  { %v325_v21 = vmax.f32 %v318_v24, 0.0  ;;  %v626_v33 = vadd.f32 %v619_v25, %v610_v30  ;;  %v700_v32 = vmul.f32 %v2804_v2, %v3022_v19  ;;  %v735_v9 = vmul.f32 %v2786_v10, %v3018_v22 }
  0xb4   :  { %v458_v4 = vadd.f32 %v451_v50, %v2360_v6  ;;  %v679_v60 = vadd.f32 %v672_v43, %v665_v20  ;;  %v742_v47 = vmul.f32 %v2797_v62, %v3020_v31  ;;  %v395_v34 = vmax.f32 %v388_v23, 0.0  ;;  %v550_v50 = vpop.permute.xlu0 %549 }
  0xb5   :  { %v332_v26 = vmax.f32 %v262_v3, %v325_v21  ;;  %v642_v40 = vadd.f32 %v635_v51, %v626_v33  ;;  %v756_v29 = vmul.f32 %v2800_v38, %v3024_v61  ;;  %v770_v24 = vmul.f32 %v2804_v2, %v3027_v58 }
  0xb6   :  { %v465_v49 = vmax.f32 %v458_v4, 0.0  ;;  %v693_v45 = vadd.f32 %v686_v52, %v679_v60  ;;  %v749_v25 = vadd.f32 %v742_v47, %v735_v9  ;;  %v805_v30 = vmul.f32 %v2786_v10, %v3020_v31  ;;  %v3126_v60 = vpop.permute.xlu1 %554 }
  0xb7   :  { %v402_v6 = vmax.f32 %v332_v26, %v395_v34  ;;  %v651_v7 = vadd.f32 %v2807_v27, %v642_v40  ;;  %v812_v3 = vmul.f32 %v2797_v62, %v3022_v19  ;;  %v3114_v51 = vmul.f32 %v2920_v39, %v2981_v63 }
  0xb8   :  { %v707_v20 = vadd.f32 %v700_v32, %v693_v45  ;;  %v763_v43 = vadd.f32 %v756_v29, %v749_v25  ;;  %v826_v52 = vmul.f32 %v2800_v38, %v3027_v58  ;;  %v3120_v21 = vmul.f32 %v3002_v18, %v2768_v8 }
  0xb9   :  { %v3122_v23 = vmax.f32 %v402_v6, %v465_v49  ;;  %v819_v33 = vadd.f32 %v812_v3, %v805_v30  ;;  %v840_v4 = vmul.f32 %v2804_v2, %v3029_v53  ;;  %v658_v9 = vmax.f32 %v651_v7, 0.0 }
  0xba   :  { %v714_v39 = vadd.f32 %v707_v20, %v2807_v27  ;;  %v777_v32 = vadd.f32 %v770_v24, %v763_v43  ;;  %v590_v47 = vmul.f32 %v2511_v1, %v2786_v10  ;;  %v3132_v34 = vmul.f32 %v550_v50, %v2981_v63 }
  0xbb   :  { %v833_v26 = vadd.f32 %v826_v52, %v819_v33  ;;  %v599_v18 = vmul.f32 %v2584_v55, %v2797_v62  ;;  %v615_v40 = vmul.f32 %v2598_v11, %v2800_v38  ;;  %v631_v45 = vmul.f32 %v2618_v36, %v2804_v2 }
  0xbc   :  { %v721_v29 = vmax.f32 %v714_v39, 0.0  ;;  %v784_v49 = vadd.f32 %v777_v32, %v2807_v27  ;;  %v661_v25 = vmul.f32 %v2584_v55, %v2786_v10  ;;  %v668_v63 = vmul.f32 %v2612_v15, %v2797_v62 }
  0xbd   :  { %v847_v24 = vadd.f32 %v840_v4, %v833_v26  ;;  %v606_v6 = vadd.f32 %v599_v18, %v590_v47  ;;  %v682_v7 = vmul.f32 %v2618_v36, %v2800_v38  ;;  %v696_v50 = vmul.f32 %v2621_v35, %v2804_v2 }
  0xbe   :  { %v728_v30 = vmax.f32 %v658_v9, %v721_v29  ;;  %v791_v3 = vmax.f32 %v784_v49, 0.0  ;;  %v731_v20 = vmul.f32 %v2598_v11, %v2786_v10  ;;  %v675_v33 = vadd.f32 %v668_v63, %v661_v25  ;;  %v910_v25 = vpop.permute.xlu2 %909 }
  0xbf   :  { %v854_v43 = vadd.f32 %v847_v24, %v2807_v27  ;;  %v622_v52 = vadd.f32 %v615_v40, %v606_v6  ;;  %v738_v4 = vmul.f32 %v2618_v36, %v2797_v62  ;;  %v752_v32 = vmul.f32 %v2624_v42, %v2800_v38  ;;  %v565_v24 = vpop.permute.xlu0 %564 }
  0xc0   :  { %v798_v39 = vmax.f32 %v728_v30, %v791_v3  ;;  %v766_v9 = vmul.f32 %v2647_v41, %v2804_v2  ;;  %v801_v47 = vmul.f32 %v2618_v36, %v2786_v10  ;;  %v689_v29 = vadd.f32 %v682_v7, %v675_v33 }
  0xc1   :  { %v861_v26 = vmax.f32 %v854_v43, 0.0  ;;  %v638_v18 = vadd.f32 %v631_v45, %v622_v52  ;;  %v745_v49 = vadd.f32 %v738_v4, %v731_v20  ;;  %v521_v40 = vmul.f32 %v3068_v37, %v3122_v23  ;;  %v3171_v43 = vpop.permute.xlu1 %569 }
  0xc2   :  { %v808_v6 = vmul.f32 %v2621_v35, %v2797_v62  ;;  %v822_v63 = vmul.f32 %v2647_v41, %v2800_v38  ;;  %v836_v30 = vmul.f32 %v2659_v14, %v2804_v2  ;;  %v703_v7 = vadd.f32 %v696_v50, %v689_v29 }
  0xc3   :  { %v3168_v3 = vmax.f32 %v798_v39, %v861_v26  ;;  %v647_v45 = vadd.f32 %v2807_v27, %v638_v18  ;;  %v759_v20 = vadd.f32 %v752_v32, %v745_v49  ;;  %v3174_v37 = vmul.f32 %v565_v24, %v2644_v59 }
  0xc4   :  { %v815_v52 = vadd.f32 %v808_v6, %v801_v47  ;;  %v593_v33 = vmul.f32 %v2364_v12, %v2786_v10  ;;  %v602_v4 = vmul.f32 %v2797_v62, %v2371_v16  ;;  %v710_v26 = vadd.f32 %v703_v7, %v2807_v27 }
  0xc5   :  { %v918_v53 = vmul.f32 %v910_v25, %v3168_v3  ;;  %v654_v39 = vmax.f32 %v647_v45, 0.0  ;;  %v773_v18 = vadd.f32 %v766_v9, %v759_v20  ;;  %v618_v47 = vmul.f32 %v2800_v38, %v2373_v17  ;;  %v4260_v9 = vld [vmem:[#allocation21_spill] sm:$0xff] }
  0xc6   :  { %v829_v50 = vadd.f32 %v822_v63, %v815_v52  ;;  %v609_v32 = vadd.f32 %v602_v4, %v593_v33  ;;  %v634_v59 = vmul.f32 %v2393_v44, %v2804_v2  ;;  %v717_v49 = vmax.f32 %v710_v26, 0.0  ;;  %v4261_v33 = vld [vmem:[#allocation23_spill] sm:$0xff] }
  0xc7   :  { %v3186_v29 = vadd.f32 %v918_v53, %v521_v40  ;;  %v780_v24 = vadd.f32 %v773_v18, %v2807_v27  ;;  %v664_v25 = vmul.f32 %v2786_v10, %v2371_v16  ;;  %v671_v63 = vmul.f32 %v4260_v9, %v2797_v62 }
  0xc8   :  { %v843_v6 = vadd.f32 %v836_v30, %v829_v50  ;;  %v625_v45 = vadd.f32 %v618_v47, %v609_v32  ;;  %v685_v7 = vmul.f32 %v2393_v44, %v2800_v38  ;;  %v724_v20 = vmax.f32 %v654_v39, %v717_v49  ;;  %v4262_v32 = vld [vmem:[#allocation24_spill] sm:$0xff] }
  0xc9   :  { %4259 = vst [vmem:[#allocation77_spill] sm:$0xff] %v3186_v29  ;;  %v787_v52 = vmax.f32 %v780_v24, 0.0  ;;  %v699_v53 = vmul.f32 %v2804_v2, %v4261_v33  ;;  %v734_v40 = vmul.f32 %v2786_v10, %v2373_v17  ;;  %v678_v18 = vadd.f32 %v671_v63, %v664_v25  ;;  %v4263_v29 = vld [vmem:[#allocation25_spill] sm:$0xff]  ;;  %v4264_v63 = vld [vmem:[#allocation26_spill] sm:$0xff] }
  0xca   :  { %v850_v4 = vadd.f32 %v843_v6, %v2807_v27  ;;  %v641_v26 = vadd.f32 %v634_v59, %v625_v45  ;;  %v741_v30 = vmul.f32 %v2393_v44, %v2797_v62  ;;  %v755_v47 = vmul.f32 %v4262_v32, %v2800_v38  ;;  %v947_v59 = vpop.permute.xlu2 %946  ;;  %v4265_v32 = vld [vmem:[#allocation27_spill] sm:$0xff] }
  0xcb   :  { %v794_v50 = vmax.f32 %v724_v20, %v787_v52  ;;  %v769_v39 = vmul.f32 %v2804_v2, %v4263_v29  ;;  %v804_v49 = vmul.f32 %v2393_v44, %v2786_v10  ;;  %v692_v17 = vadd.f32 %v685_v7, %v678_v18  ;;  %v890_v52 = vpop.permute.xlu1 %889 }
  0xcc   :  { %v857_v24 = vmax.f32 %v850_v4, 0.0  ;;  %v650_v9 = vadd.f32 %v2807_v27, %v641_v26  ;;  %v748_v6 = vadd.f32 %v741_v30, %v734_v40  ;;  %v811_v25 = vmul.f32 %v2797_v62, %v4261_v33  ;;  %v4266_v40 = vld [vmem:[#allocation28_spill] sm:$0xff]  ;;  %v4267_v30 = vld [vmem:[#allocation29_spill] sm:$0xff] }
  0xcd   :  { %v825_v45 = vmul.f32 %v2800_v38, %v4263_v29  ;;  %v839_v20 = vmul.f32 %v4264_v63, %v2804_v2  ;;  %v589_v0 = vmul.f32 %v4265_v32, %v2786_v10  ;;  %v706_v16 = vadd.f32 %v699_v53, %v692_v17  ;;  %v4268_v29 = vld [vmem:[#allocation31_spill] sm:$0xff] }
  0xce   :  { %v864_v44 = vmax.f32 %v794_v50, %v857_v24  ;;  %v657_v4 = vmax.f32 %v650_v9, 0.0  ;;  %v762_v26 = vadd.f32 %v755_v47, %v748_v6  ;;  %v818_v7 = vadd.f32 %v811_v25, %v804_v49  ;;  %v4269_v47 = vld [vmem:[#allocation30_spill] sm:$0xff] }
  0xcf   :  { %v598_v18 = vmul.f32 %v4266_v40, %v2797_v62  ;;  %v614_v33 = vmul.f32 %v4267_v30, %v2800_v38  ;;  %v630_v12 = vmul.f32 %v4268_v29, %v2804_v2  ;;  %v713_v58 = vadd.f32 %v706_v16, %v2807_v27 }
  0xd0   :  { %v971_v63 = vmul.f32 %v947_v59, %v864_v44  ;;  %v776_v61 = vadd.f32 %v769_v39, %v762_v26  ;;  %v914_v50 = vmul.f32 %v890_v52, %v864_v44  ;;  %v832_v17 = vadd.f32 %v825_v45, %v818_v7  ;;  %v4273_v7 = vld [vmem:[#allocation33_spill] sm:$0xff] }
  0xd1   :  { %v605_v9 = vadd.f32 %v598_v18, %v589_v0  ;;  %v660_v53 = vmul.f32 %v4266_v40, %v2786_v10  ;;  %v667_v49 = vmul.f32 %v4269_v47, %v2797_v62  ;;  %v720_v6 = vmax.f32 %v713_v58, 0.0 }
  0xd2   :  { %v3235_v24 = vadd.f32 %v971_v63, %v3132_v34  ;;  %v783_v16 = vadd.f32 %v776_v61, %v2807_v27  ;;  %v3239_v44 = vadd.f32 %v914_v50, %v3114_v51  ;;  %v846_v0 = vadd.f32 %v839_v20, %v832_v17  ;;  %v4272_v34 = vld [vmem:[#allocation32_spill] sm:$0xff] }
  0xd3   :  { %v621_v39 = vadd.f32 %v614_v33, %v605_v9  ;;  %v674_v59 = vadd.f32 %v667_v49, %v660_v53  ;;  %v681_v25 = vmul.f32 %v4268_v29, %v2800_v38  ;;  %v727_v45 = vmax.f32 %v657_v4, %v720_v6  ;;  %v4274_v4 = vld [vmem:[#allocation34_spill] sm:$0xff]  ;;  %v962_v6 = vpop.permute.xlu2 %961 }
  0xd4   :  { %4270 = vst [vmem:[#allocation27_spill] sm:$0xff] %v3235_v24  ;;  %v790_v52 = vmax.f32 %v783_v16, 0.0  ;;  %v695_v58 = vmul.f32 %v4272_v34, %v2804_v2  ;;  %v730_v61 = vmul.f32 %v4267_v30, %v2786_v10  ;;  %v853_v51 = vadd.f32 %v846_v0, %v2807_v27 }
  0xd5   :  { %4271 = vst [vmem:[#allocation28_spill] sm:$0xff] %v3239_v44  ;;  %v637_v63 = vadd.f32 %v630_v12, %v621_v39  ;;  %v688_v20 = vadd.f32 %v681_v25, %v674_v59  ;;  %v737_v33 = vmul.f32 %v4268_v29, %v2797_v62  ;;  %v751_v18 = vmul.f32 %v4273_v7, %v2800_v38  ;;  %v4275_v39 = vld [vmem:[#allocation35_spill] sm:$0xff] }
  0xd6   :  { %v797_v26 = vmax.f32 %v727_v45, %v790_v52  ;;  %v765_v50 = vmul.f32 %v4274_v4, %v2804_v2  ;;  %v800_v17 = vmul.f32 %v4268_v29, %v2786_v10  ;;  %v860_v9 = vmax.f32 %v853_v51, 0.0 }
  0xd7   :  { %v646_v12 = vadd.f32 %v2807_v27, %v637_v63  ;;  %v702_v53 = vadd.f32 %v695_v58, %v688_v20  ;;  %v744_v49 = vadd.f32 %v737_v33, %v730_v61  ;;  %v807_v16 = vmul.f32 %v4272_v34, %v2797_v62 }
  0xd8   :  { %v821_v0 = vmul.f32 %v4274_v4, %v2800_v38  ;;  %v835_v59 = vmul.f32 %v4275_v39, %v2804_v2  ;;  %v3268_v25 = vstv %s3223_s3  ;;  %v867_v45 = vmax.f32 %v797_v26, %v860_v9 }
  0xd9   :  { %v653_v52 = vmax.f32 %v646_v12, 0.0  ;;  %v709_v51 = vadd.f32 %v702_v53, %v2807_v27  ;;  %v758_v63 = vadd.f32 %v751_v18, %v744_v49  ;;  %v814_v58 = vadd.f32 %v807_v16, %v800_v17 }
  0xda   :  { %v3272_v61 = vstv %s3226_s8  ;;  %v3275_v20 = vstv %s3232_s4  ;;  %v3278_v33 = vstv %s3241_s9  ;;  %v974_v24 = vmul.f32 %v962_v6, %v867_v45 }
  0xdb   :  { %v716_v44 = vmax.f32 %v709_v51, 0.0  ;;  %v772_v19 = vadd.f32 %v765_v50, %v758_v63  ;;  %v3281_v5 = vstv %s3245_s10  ;;  %v828_v31 = vadd.f32 %v821_v0, %v814_v58 }
  0xdc   :  { %v986_v26 = vmul.f32 %v4265_v32, %v3268_v25  ;;  %v995_v9 = vmul.f32 %v4266_v40, %v3272_v61  ;;  %v1011_v18 = vmul.f32 %v4267_v30, %v3275_v20  ;;  %v3290_v17 = vadd.f32 %v974_v24, %v3174_v37 }
  0xdd   :  { %v723_v12 = vmax.f32 %v653_v52, %v716_v44  ;;  %v779_v53 = vadd.f32 %v772_v19, %v2807_v27  ;;  %v1027_v50 = vmul.f32 %v4268_v29, %v3278_v33  ;;  %v842_v49 = vadd.f32 %v835_v59, %v828_v31  ;;  %v905_v52 = vpop.permute.xlu1 %904 }
  0xde   :  { %4276 = vst [vmem:[#allocation29_spill] sm:$0xff] %v3290_v17  ;;  %v1002_v6 = vadd.f32 %v995_v9, %v986_v26  ;;  %v1057_v16 = vmul.f32 %v4266_v40, %v3268_v25  ;;  %v1064_v0 = vmul.f32 %v4269_v47, %v3272_v61  ;;  %v1078_v63 = vmul.f32 %v4268_v29, %v3275_v20 }
  0xdf   :  { %v786_v51 = vmax.f32 %v779_v53, 0.0  ;;  %v1092_v37 = vmul.f32 %v4272_v34, %v3278_v33  ;;  %v1127_v19 = vmul.f32 %v4267_v30, %v3268_v25  ;;  %v849_v24 = vadd.f32 %v842_v49, %v2807_v27 }
  0xe0   :  { %v1018_v31 = vadd.f32 %v1011_v18, %v1002_v6  ;;  %v1071_v44 = vadd.f32 %v1064_v0, %v1057_v16  ;;  %v1134_v59 = vmul.f32 %v4268_v29, %v3272_v61  ;;  %v1148_v26 = vmul.f32 %v4273_v7, %v3275_v20  ;;  %v885_v18 = vpop.permute.xlu0 %884 }
  0xe1   :  { %v793_v58 = vmax.f32 %v723_v12, %v786_v51  ;;  %v1162_v9 = vmul.f32 %v4274_v4, %v3278_v33  ;;  %v1197_v53 = vmul.f32 %v4268_v29, %v3268_v25  ;;  %v856_v17 = vmax.f32 %v849_v24, 0.0 }
  0xe2   :  { %v1034_v22 = vadd.f32 %v1027_v50, %v1018_v31  ;;  %v1085_v48 = vadd.f32 %v1078_v63, %v1071_v44  ;;  %v1141_v49 = vadd.f32 %v1134_v59, %v1127_v19  ;;  %v1204_v6 = vmul.f32 %v4272_v34, %v3272_v61  ;;  %v4277_v63 = vld [vmem:[#allocation45_spill] sm:$0xff]  ;;  %v4280_v59 = vld [vmem:[#allocation10_spill] sm:$0xff] }
  0xe3   :  { %v1218_v12 = vmul.f32 %v4274_v4, %v3275_v20  ;;  %v1232_v16 = vmul.f32 %v4275_v39, %v3278_v33  ;;  %v917_v0 = vmul.f32 %v905_v52, %v867_v45  ;;  %v3320_v51 = vmax.f32 %v793_v58, %v856_v17  ;;  %v4279_v31 = vld [vmem:[#allocation9_spill] sm:$0xff] }
  0xe4   :  { %v1043_v57 = vadd.f32 %v3281_v5, %v1034_v22  ;;  %v1099_v14 = vadd.f32 %v1092_v37, %v1085_v48  ;;  %v1155_v24 = vadd.f32 %v1148_v26, %v1141_v49  ;;  %v1211_v50 = vadd.f32 %v1204_v6, %v1197_v53  ;;  %v4281_v48 = vld [vmem:[#allocation12_spill] sm:$0xff]  ;;  %v4282_v58 = vld [vmem:[#allocation13_spill] sm:$0xff] }
  0xe5   :  { %v3324_v19 = vadd.f32 %v917_v0, %v4277_v63  ;;  %v592_v44 = vmul.f32 %v4279_v31, %v2786_v10  ;;  %v601_v41 = vmul.f32 %v4280_v59, %v2797_v62  ;;  %v913_v42 = vmul.f32 %v885_v18, %v3320_v51  ;;  %v4284_v63 = vld [vmem:[#allocation14_spill] sm:$0xff] }
  0xe6   :  { %v1050_v35 = vmax.f32 %v1043_v57, 0.0  ;;  %v1106_v45 = vadd.f32 %v1099_v14, %v3281_v5  ;;  %v1169_v17 = vadd.f32 %v1162_v9, %v1155_v24  ;;  %v1225_v52 = vadd.f32 %v1218_v12, %v1211_v50  ;;  %v4283_v14 = vld [vmem:[#allocation11_spill] sm:$0xff] }
  0xe7   :  { %4278 = vst [vmem:[#allocation31_spill] sm:$0xff] %v3324_v19  ;;  %v608_v22 = vadd.f32 %v601_v41, %v592_v44  ;;  %v617_v37 = vmul.f32 %v4281_v48, %v2800_v38  ;;  %v633_v26 = vmul.f32 %v4282_v58, %v2804_v2  ;;  %v3337_v53 = vadd.f32 %v913_v42, %v3120_v21  ;;  %v4287_v19 = vld [vmem:[#allocation55_spill] sm:$0xff] }
  0xe8   :  { %v1113_v49 = vmax.f32 %v1106_v45, 0.0  ;;  %v1176_v6 = vadd.f32 %v1169_v17, %v3281_v5  ;;  %v663_v57 = vmul.f32 %v4280_v59, %v2786_v10  ;;  %v670_v9 = vmul.f32 %v4283_v14, %v2797_v62  ;;  %v4285_v17 = vld [vmem:[#allocation36_spill] sm:$0xff] }
  0xe9   :  { %v624_v18 = vadd.f32 %v617_v37, %v608_v22  ;;  %v684_v41 = vmul.f32 %v4282_v58, %v2800_v38  ;;  %v1239_v24 = vadd.f32 %v1232_v16, %v1225_v52  ;;  %v733_v42 = vmul.f32 %v4281_v48, %v2786_v10  ;;  %v4286_v22 = vld [vmem:[#allocation37_spill] sm:$0xff]  ;;  %v4288_v16 = vld [vmem:[#allocation15_spill] sm:$0xff] }
  0xea   :  { %v1120_v12 = vmax.f32 %v1050_v35, %v1113_v49  ;;  %v1183_v0 = vmax.f32 %v1176_v6, 0.0  ;;  %v677_v50 = vadd.f32 %v670_v9, %v663_v57  ;;  %v698_v44 = vmul.f32 %v4284_v63, %v2804_v2  ;;  %v3364_v49 = vpop.permute.xlu0 %899  ;;  %v4289_v9 = vld [vmem:[#allocation16_spill] sm:$0xff] }
  0xeb   :  { %v640_v21 = vadd.f32 %v633_v26, %v624_v18  ;;  %v740_v45 = vmul.f32 %v4282_v58, %v2797_v62  ;;  %v3354_v37 = vmul.f32 %v4286_v22, %v4285_v17  ;;  %v3358_v35 = vmul.f32 %v4287_v19, %v2768_v8 }
  0xec   :  { %v754_v52 = vmul.f32 %v4288_v16, %v2800_v38  ;;  %v803_v26 = vmul.f32 %v4282_v58, %v2786_v10  ;;  %v691_v57 = vadd.f32 %v684_v41, %v677_v50  ;;  %v768_v22 = vmul.f32 %v4289_v9, %v2804_v2  ;;  %v4290_v41 = vld [vmem:[#allocation17_spill] sm:$0xff] }
  0xed   :  { %v649_v6 = vadd.f32 %v2807_v27, %v640_v21  ;;  %v747_v18 = vadd.f32 %v740_v45, %v733_v42  ;;  %v1246_v15 = vadd.f32 %v1239_v24, %v3281_v5  ;;  %v810_v8 = vmul.f32 %v4284_v63, %v2797_v62 }
  0xee   :  { %v824_v19 = vmul.f32 %v4289_v9, %v2800_v38  ;;  %v989_v10 = vmul.f32 %v4279_v31, %v3268_v25  ;;  %v1190_v36 = vmax.f32 %v1120_v12, %v1183_v0  ;;  %v705_v11 = vadd.f32 %v698_v44, %v691_v57 }
  0xef   :  { %v761_v39 = vadd.f32 %v754_v52, %v747_v18  ;;  %v838_v42 = vmul.f32 %v4290_v41, %v2804_v2  ;;  %v656_v21 = vmax.f32 %v649_v6, 0.0  ;;  %v817_v50 = vadd.f32 %v810_v8, %v803_v26 }
  0xf0   :  { %v998_v24 = vmul.f32 %v4280_v59, %v3272_v61  ;;  %v1014_v62 = vmul.f32 %v4281_v48, %v3275_v20  ;;  %v712_v45 = vadd.f32 %v705_v11, %v2807_v27  ;;  %v1030_v31 = vmul.f32 %v4282_v58, %v3278_v33 }
  0xf1   :  { %v775_v38 = vadd.f32 %v768_v22, %v761_v39  ;;  %v1060_v12 = vmul.f32 %v4280_v59, %v3268_v25  ;;  %v831_v0 = vadd.f32 %v824_v19, %v817_v50  ;;  %v1067_v2 = vmul.f32 %v4283_v14, %v3272_v61 }
  0xf2   :  { %v1005_v44 = vadd.f32 %v998_v24, %v989_v10  ;;  %v1081_v52 = vmul.f32 %v4282_v58, %v3275_v20  ;;  %v1253_v26 = vmax.f32 %v1246_v15, 0.0  ;;  %v719_v6 = vmax.f32 %v712_v45, 0.0 }
  0xf3   :  { %v782_v57 = vadd.f32 %v775_v38, %v2807_v27  ;;  %v1095_v11 = vmul.f32 %v4284_v63, %v3278_v33  ;;  %v845_v39 = vadd.f32 %v838_v42, %v831_v0  ;;  %v1074_v22 = vadd.f32 %v1067_v2, %v1060_v12  ;;  %v942_v38 = vpop.permute.xlu1 %941  ;;  %v937_v2 = vpop.permute.xlu0 %936 }
  0xf4   :  { %v1021_v18 = vadd.f32 %v1014_v62, %v1005_v44  ;;  %v1130_v8 = vmul.f32 %v4281_v48, %v3268_v25  ;;  %v726_v19 = vmax.f32 %v656_v21, %v719_v6  ;;  %v1137_v50 = vmul.f32 %v4282_v58, %v3272_v61 }
  0xf5   :  { %v789_v10 = vmax.f32 %v782_v57, 0.0  ;;  %v1151_v15 = vmul.f32 %v4288_v16, %v3275_v20  ;;  %v3402_v24 = vmul.f32 %v2853_v46, %v4285_v17  ;;  %v852_v45 = vadd.f32 %v845_v39, %v2807_v27 }
  0xf6   :  { %v1037_v42 = vadd.f32 %v1030_v31, %v1021_v18  ;;  %v1088_v62 = vadd.f32 %v1081_v52, %v1074_v22  ;;  %v1144_v0 = vadd.f32 %v1137_v50, %v1130_v8  ;;  %v1200_v21 = vmul.f32 %v4282_v58, %v3268_v25  ;;  %v1282_v22 = vpop.permute.xlu2 %1281 }
  0xf7   :  { %v796_v12 = vmax.f32 %v726_v19, %v789_v10  ;;  %v1207_v44 = vmul.f32 %v4284_v63, %v3272_v61  ;;  %v572_v6 = vmul.f32 %v3077_v56, %v2859_v28  ;;  %v3413_v46 = vmul.f32 %v3126_v60, %v2991_v13  ;;  %v4291_v13 = vld [vmem:[#allocation65_spill] sm:$0xff]  ;;  %v4294_v10 = vld [vmem:[#allocation47_spill] sm:$0xff] }
  0xf8   :  { %v859_v27 = vmax.f32 %v852_v45, 0.0  ;;  %v1102_v31 = vadd.f32 %v1095_v11, %v1088_v62  ;;  %v3415_v17 = vmax.f32 %v1190_v36, %v1253_v26  ;;  %v1158_v52 = vadd.f32 %v1151_v15, %v1144_v0  ;;  %v4293_v11 = vld [vmem:[#allocation46_spill] sm:$0xff] }
  0xf9   :  { %v1165_v57 = vmul.f32 %v4289_v9, %v3278_v33  ;;  %v970_v39 = vmul.f32 %v942_v38, %v3320_v51  ;;  %v3422_v18 = vmul.f32 %v3171_v43, %v3122_v23  ;;  %v1046_v28 = vadd.f32 %v3281_v5, %v1037_v42  ;;  %v4295_v42 = vld [vmem:[#allocation48_spill] sm:$0xff] }
  0xfa   :  { %v866_v56 = vmax.f32 %v796_v12, %v859_v27  ;;  %v969_v60 = vmul.f32 %v937_v2, %v4291_v13  ;;  %v1214_v8 = vadd.f32 %v1207_v44, %v1200_v21  ;;  %v1221_v36 = vmul.f32 %v4289_v9, %v3275_v20  ;;  %v4296_v12 = vld [vmem:[#allocation50_spill] sm:$0xff] }
  0xfb   :  { %v3429_v26 = vadd.f32 %v970_v39, %v3358_v35  ;;  %v985_v51 = vmul.f32 %v4293_v11, %v3268_v25  ;;  %v1109_v23 = vadd.f32 %v1102_v31, %v3281_v5  ;;  %v994_v50 = vmul.f32 %v3272_v61, %v4294_v10 }
  0xfc   :  { %v916_v19 = vmul.f32 %v3364_v49, %v866_v56  ;;  %v3435_v43 = vadd.f32 %v969_v60, %v572_v6  ;;  %v3440_v15 = vmul.f32 %v1282_v22, %v3415_v17  ;;  %v1172_v45 = vadd.f32 %v1165_v57, %v1158_v52  ;;  %v4297_v6 = vld [vmem:[#allocation49_spill] sm:$0xff]  ;;  %v4298_v60 = vld [vmem:[#allocation51_spill] sm:$0xff] }
  0xfd   :  { %4292 = vst [vmem:[#allocation30_spill] sm:$0xff] %v3429_v26  ;;  %v1235_v35 = vmul.f32 %v4290_v41, %v3278_v33  ;;  %v1010_v62 = vmul.f32 %v3275_v20, %v4295_v42  ;;  %v1001_v49 = vadd.f32 %v994_v50, %v985_v51  ;;  %v1026_v0 = vmul.f32 %v4296_v12, %v3278_v33  ;;  %v957_v51 = vpop.permute.xlu1 %956  ;;  %v952_v26 = vpop.permute.xlu0 %951 }
  0xfe   :  { %v3447_v38 = vadd.f32 %v916_v19, %v3354_v37  ;;  %v1056_v21 = vmul.f32 %v3268_v25, %v4294_v10  ;;  %v1053_v44 = vmax.f32 %v1046_v28, 0.0  ;;  %v1228_v2 = vadd.f32 %v1221_v36, %v1214_v8  ;;  %v4299_v8 = vld [vmem:[#allocation52_spill] sm:$0xff]  ;;  %v4301_v10 = vld [vmem:[#allocation54_spill] sm:$0xff] }
  0xff   :  { %v1063_v27 = vmul.f32 %v4297_v6, %v3272_v61  ;;  %v1077_v31 = vmul.f32 %v4296_v12, %v3275_v20  ;;  %v1116_v52 = vmax.f32 %v1109_v23, 0.0  ;;  %v1017_v57 = vadd.f32 %v1010_v62, %v1001_v49  ;;  %v4300_v23 = vld [vmem:[#allocation53_spill] sm:$0xff] }
 0x100   :  { %v1126_v37 = vmul.f32 %v3268_v25, %v4295_v42  ;;  %v1133_v39 = vmul.f32 %v4296_v12, %v3272_v61  ;;  %v1179_v22 = vadd.f32 %v1172_v45, %v3281_v5  ;;  %v1091_v28 = vmul.f32 %v3278_v33, %v4298_v60 }
 0x101   :  { %v1070_v13 = vadd.f32 %v1063_v27, %v1056_v21  ;;  %v1147_v36 = vmul.f32 %v4299_v8, %v3275_v20  ;;  %v1033_v19 = vadd.f32 %v1026_v0, %v1017_v57  ;;  %v1161_v62 = vmul.f32 %v3278_v33, %v4300_v23 }
 0x102   :  { %v1140_v50 = vadd.f32 %v1133_v39, %v1126_v37  ;;  %v1196_v49 = vmul.f32 %v4296_v12, %v3268_v25  ;;  %v1242_v6 = vadd.f32 %v1235_v35, %v1228_v2  ;;  %v1203_v45 = vmul.f32 %v3272_v61, %v4298_v60 }
 0x103   :  { %v1084_v42 = vadd.f32 %v1077_v31, %v1070_v13  ;;  %v1217_v21 = vmul.f32 %v3275_v20, %v4300_v23  ;;  %v1123_v27 = vmax.f32 %v1053_v44, %v1116_v52  ;;  %v1042_v8 = vadd.f32 %v3281_v5, %v1033_v19  ;;  %v4303_v13 = vld [vmem:[#allocation56_spill] sm:$0xff] }
 0x104   :  { %v1154_v0 = vadd.f32 %v1147_v36, %v1140_v50  ;;  %v973_v57 = vmul.f32 %v957_v51, %v866_v56  ;;  %v1210_v39 = vadd.f32 %v1203_v45, %v1196_v49  ;;  %v1231_v41 = vmul.f32 %v4301_v10, %v3278_v33  ;;  %v4306_v50 = vld [vmem:[#allocation59_spill] sm:$0xff] }
 0x105   :  { %v1098_v37 = vadd.f32 %v1091_v28, %v1084_v42  ;;  %v972_v12 = vmul.f32 %v952_v26, %v3060_v54  ;;  %v1186_v35 = vmax.f32 %v1179_v22, 0.0  ;;  %v988_v23 = vmul.f32 %v4303_v13, %v3268_v25  ;;  %v4304_v54 = vld [vmem:[#allocation57_spill] sm:$0xff] }
 0x106   :  { %v1168_v2 = vadd.f32 %v1161_v62, %v1154_v0  ;;  %v3479_v31 = vadd.f32 %v973_v57, %v3402_v24  ;;  %v1049_v44 = vmax.f32 %v1042_v8, 0.0  ;;  %v1224_v36 = vadd.f32 %v1217_v21, %v1210_v39  ;;  %v4305_v24 = vld [vmem:[#allocation58_spill] sm:$0xff]  ;;  %v3505_v21 = vpop.permute.xlu2 %1296  ;;  %v4308_v57 = vld [vmem:[#allocation61_spill] sm:$0xff] }
 0x107   :  { %v1105_v52 = vadd.f32 %v1098_v37, %v3281_v5  ;;  %v3485_v56 = vadd.f32 %v972_v12, %v3413_v46  ;;  %v1249_v42 = vadd.f32 %v1242_v6, %v3281_v5  ;;  %v997_v26 = vmul.f32 %v4304_v54, %v3272_v61  ;;  %v4307_v6 = vld [vmem:[#allocation60_spill] sm:$0xff] }
 0x108   :  { %4302 = vst [vmem:[#allocation32_spill] sm:$0xff] %v3479_v31  ;;  %v1175_v28 = vadd.f32 %v1168_v2, %v3281_v5  ;;  %v1013_v22 = vmul.f32 %v4305_v24, %v3275_v20  ;;  %v1238_v19 = vadd.f32 %v1231_v41, %v1224_v36  ;;  %v1059_v8 = vmul.f32 %v4304_v54, %v3268_v25  ;;  %v4309_v36 = vld [vmem:[#allocation62_spill] sm:$0xff] }
 0x109   :  { %v1112_v51 = vmax.f32 %v1105_v52, 0.0  ;;  %v1066_v62 = vmul.f32 %v4306_v50, %v3272_v61  ;;  %v1004_v12 = vadd.f32 %v997_v26, %v988_v23  ;;  %v1029_v49 = vmul.f32 %v4307_v6, %v3278_v33  ;;  %v967_v26 = vpop.permute.xlu0 %966 }
 0x10a   :  { %v1182_v46 = vmax.f32 %v1175_v28, 0.0  ;;  %v1080_v45 = vmul.f32 %v4307_v6, %v3275_v20  ;;  %v1094_v37 = vmul.f32 %v4308_v57, %v3278_v33  ;;  %v1129_v39 = vmul.f32 %v4305_v24, %v3268_v25 }
 0x10b   :  { %v1119_v41 = vmax.f32 %v1049_v44, %v1112_v51  ;;  %v1073_v0 = vadd.f32 %v1066_v62, %v1059_v8  ;;  %v1193_v23 = vmax.f32 %v1123_v27, %v1186_v35  ;;  %v1020_v2 = vadd.f32 %v1013_v22, %v1004_v12  ;;  %v4310_v8 = vld [vmem:[#allocation63_spill] sm:$0xff] }
 0x10c   :  { %v1136_v52 = vmul.f32 %v4307_v6, %v3272_v61  ;;  %v1150_v28 = vmul.f32 %v4309_v36, %v3275_v20  ;;  %v1245_v44 = vadd.f32 %v1238_v19, %v3281_v5  ;;  %v1164_v62 = vmul.f32 %v4310_v8, %v3278_v33 }
 0x10d   :  { %v1087_v51 = vadd.f32 %v1080_v45, %v1073_v0  ;;  %v1199_v31 = vmul.f32 %v4307_v6, %v3268_v25  ;;  %v1036_v27 = vadd.f32 %v1029_v49, %v1020_v2  ;;  %v1206_v22 = vmul.f32 %v4308_v57, %v3272_v61  ;;  %v4311_v49 = vld [vmem:[#allocation64_spill] sm:$0xff] }
 0x10e   :  { %v1143_v35 = vadd.f32 %v1136_v52, %v1129_v39  ;;  %v1220_v12 = vmul.f32 %v4310_v8, %v3275_v20  ;;  %v1256_v10 = vmax.f32 %v1249_v42, 0.0  ;;  %v1189_v60 = vmax.f32 %v1119_v41, %v1182_v46 }
 0x10f   :  { %v1101_v19 = vadd.f32 %v1094_v37, %v1087_v51  ;;  %v975_v45 = vmul.f32 %v967_v26, %v3168_v3  ;;  %v1045_v0 = vadd.f32 %v3281_v5, %v1036_v27  ;;  %v1213_v9 = vadd.f32 %v1206_v22, %v1199_v31 }
 0x110   :  { %v1157_v11 = vadd.f32 %v1150_v28, %v1143_v35  ;;  %v1234_v39 = vmul.f32 %v4311_v49, %v3278_v33  ;;  %v1252_v2 = vmax.f32 %v1245_v44, 0.0  ;;  %v3537_v42 = vstv %s3497_s11  ;;  %v1334_v35 = vpop.permute.xlu2 %1333 }
 0x111   :  { %v1108_v52 = vadd.f32 %v1101_v19, %v3281_v5  ;;  %v3534_v16 = vadd.f32 %v975_v45, %v3422_v18  ;;  %v1052_v46 = vmax.f32 %v1045_v0, 0.0  ;;  %v1227_v37 = vadd.f32 %v1220_v12, %v1213_v9 }
 0x112   :  { %v1171_v41 = vadd.f32 %v1164_v62, %v1157_v11  ;;  %v3540_v3 = vstv %s3503_s12  ;;  %v3544_v31 = vadd.f32 %v3440_v15, %v3337_v53  ;;  %v3547_v26 = vstv %s3511_s13 }
 0x113   :  { %4312 = vst [vmem:[#allocation33_spill] sm:$0xff] %v3534_v16  ;;  %v1115_v28 = vmax.f32 %v1108_v52, 0.0  ;;  %v3549_v44 = vmax.f32 %v1193_v23, %v1256_v10  ;;  %v1241_v18 = vadd.f32 %v1234_v39, %v1227_v37  ;;  %v3553_v27 = vstv %s3517_s14  ;;  %v1277_v52 = vpop.permute.xlu1 %1276 }
 0x114   :  { %v1178_v51 = vadd.f32 %v1171_v41, %v3281_v5  ;;  %v1383_v9 = vmul.f32 %v4265_v32, %v3537_v42  ;;  %v1392_v53 = vmul.f32 %v4266_v40, %v3540_v3  ;;  %v1408_v11 = vmul.f32 %v4267_v30, %v3547_v26 }
 0x115   :  { %v1122_v22 = vmax.f32 %v1052_v46, %v1115_v28  ;;  %v1259_v10 = vmax.f32 %v1189_v60, %v1252_v2  ;;  %v1248_v23 = vadd.f32 %v1241_v18, %v3281_v5  ;;  %v1454_v62 = vmul.f32 %v4266_v40, %v3537_v42 }
 0x116   :  { %v1185_v15 = vmax.f32 %v1178_v51, 0.0  ;;  %v1399_v12 = vadd.f32 %v1392_v53, %v1383_v9  ;;  %v1424_v19 = vmul.f32 %v4268_v29, %v3553_v27  ;;  %v1461_v32 = vmul.f32 %v4269_v47, %v3540_v3 }
 0x117   :  { %v1475_v45 = vmul.f32 %v4268_v29, %v3547_v26  ;;  %v1489_v60 = vmul.f32 %v4272_v34, %v3553_v27  ;;  %v1524_v39 = vmul.f32 %v4267_v30, %v3537_v42  ;;  %v1531_v40 = vmul.f32 %v4268_v29, %v3540_v3 }
 0x118   :  { %v1192_v0 = vmax.f32 %v1122_v22, %v1185_v15  ;;  %v1255_v2 = vmax.f32 %v1248_v23, 0.0  ;;  %v1415_v46 = vadd.f32 %v1408_v11, %v1399_v12  ;;  %v1468_v41 = vadd.f32 %v1461_v32, %v1454_v62 }
 0x119   :  { %v1545_v47 = vmul.f32 %v4273_v7, %v3547_v26  ;;  %v1538_v37 = vadd.f32 %v1531_v40, %v1524_v39  ;;  %v1559_v28 = vmul.f32 %v4274_v4, %v3553_v27  ;;  %v1594_v51 = vmul.f32 %v4268_v29, %v3537_v42  ;;  %v4316_v40 = vld [vmem:[#allocation38_spill] sm:$0xff] }
 0x11a   :  { %v1601_v30 = vmul.f32 %v4272_v34, %v3540_v3  ;;  %v1313_v18 = vmul.f32 %v3505_v21, %v3549_v44  ;;  %v1366_v22 = vmul.f32 %v1334_v35, %v1259_v10  ;;  %v1482_v9 = vadd.f32 %v1475_v45, %v1468_v41  ;;  %v4313_v45 = vld [vmem:[#allocation35_spill] sm:$0xff] }
 0x11b   :  { %v1615_v53 = vmul.f32 %v4274_v4, %v3547_v26  ;;  %v1309_v11 = vmul.f32 %v1277_v52, %v1259_v10  ;;  %v1431_v7 = vadd.f32 %v1424_v19, %v1415_v46  ;;  %v1552_v15 = vadd.f32 %v1545_v47, %v1538_v37 }
 0x11c   :  { %v1608_v23 = vadd.f32 %v1601_v30, %v1594_v51  ;;  %v3591_v62 = vstv %s3555_s15  ;;  %v1496_v12 = vadd.f32 %v1489_v60, %v1482_v9  ;;  %v987_v29 = vmul.f32 %v2511_v1, %v3268_v25  ;;  %v1349_v60 = vpop.permute.xlu2 %1348 }
 0x11d   :  { %v996_v34 = vmul.f32 %v2584_v55, %v3272_v61  ;;  %v3597_v32 = vmax.f32 %v1192_v0, %v1255_v2  ;;  %v1566_v21 = vadd.f32 %v1559_v28, %v1552_v15  ;;  %v1629_v4 = vmul.f32 %v4313_v45, %v3553_v27  ;;  %v4317_v2 = vld [vmem:[#allocation40_spill] sm:$0xff]  ;;  %v4320_v28 = vld [vmem:[#allocation39_spill] sm:$0xff]  ;;  %v4321_v15 = vld [vmem:[#allocation41_spill] sm:$0xff] }
 0x11e   :  { %v1622_v35 = vadd.f32 %v1615_v53, %v1608_v23  ;;  %v3602_v10 = vadd.f32 %v1313_v18, %v3447_v38  ;;  %v3605_v19 = vadd.f32 %v1366_v22, %v3435_v43  ;;  %v1012_v52 = vmul.f32 %v4316_v40, %v3275_v20  ;;  %v4318_v38 = vld [vmem:[#allocation66_spill] sm:$0xff] }
 0x11f   :  { %v1003_v39 = vadd.f32 %v996_v34, %v987_v29  ;;  %v1440_v46 = vadd.f32 %v3591_v62, %v1431_v7  ;;  %v1503_v0 = vadd.f32 %v1496_v12, %v3591_v62  ;;  %v1028_v41 = vmul.f32 %v4317_v2, %v3278_v33  ;;  %v4322_v45 = vld [vmem:[#allocation42_spill] sm:$0xff] }
 0x120   :  { %4314 = vst [vmem:[#allocation34_spill] sm:$0xff] %v3602_v10  ;;  %v1058_v47 = vmul.f32 %v2584_v55, %v3268_v25  ;;  %v3616_v37 = vadd.f32 %v1309_v11, %v4318_v38  ;;  %v1065_v51 = vmul.f32 %v4320_v28, %v3272_v61  ;;  %v1079_v30 = vmul.f32 %v4317_v2, %v3275_v20 }
 0x121   :  { %4315 = vst [vmem:[#allocation45_spill] sm:$0xff] %v3605_v19  ;;  %v1019_v43 = vadd.f32 %v1012_v52, %v1003_v39  ;;  %v3623_v18 = vmul.f32 %v1349_v60, %v3597_v32  ;;  %v3626_v22 = vadd.f32 %v1566_v21, %v3591_v62  ;;  %v1636_v9 = vadd.f32 %v1629_v4, %v1622_v35  ;;  %v4323_v52 = vld [vmem:[#allocation43_spill] sm:$0xff] }
 0x122   :  { %4319 = vst [vmem:[#allocation10_spill] sm:$0xff] %v3616_v37  ;;  %v1128_v53 = vmul.f32 %v4316_v40, %v3268_v25  ;;  %v1072_v11 = vadd.f32 %v1065_v51, %v1058_v47  ;;  %v1093_v23 = vmul.f32 %v4321_v15, %v3278_v33  ;;  %v1135_v12 = vmul.f32 %v4317_v2, %v3272_v61 }
 0x123   :  { %v1035_v7 = vadd.f32 %v1028_v41, %v1019_v43  ;;  %v1447_v29 = vmax.f32 %v1440_v46, 0.0  ;;  %v1510_v34 = vmax.f32 %v1503_v0, 0.0  ;;  %v1149_v60 = vmul.f32 %v4322_v45, %v3275_v20 }
 0x124   :  { %v1198_v21 = vmul.f32 %v4317_v2, %v3268_v25  ;;  %v1086_v4 = vadd.f32 %v1079_v30, %v1072_v11  ;;  %v1142_v39 = vadd.f32 %v1135_v12, %v1128_v53  ;;  %v1163_v41 = vmul.f32 %v4323_v52, %v3278_v33  ;;  %v4324_v53 = vld [vmem:[#allocation44_spill] sm:$0xff] }
 0x125   :  { %v1044_v35 = vadd.f32 %v3281_v5, %v1035_v7  ;;  %v1580_v47 = vmax.f32 %v3626_v22, 0.0  ;;  %v1205_v38 = vmul.f32 %v4321_v15, %v3272_v61  ;;  %v1219_v46 = vmul.f32 %v4323_v52, %v3275_v20 }
 0x126   :  { %v1384_v0 = vmul.f32 %v2511_v1, %v3537_v42  ;;  %v3649_v43 = vadd.f32 %v1636_v9, %v3591_v62  ;;  %v1100_v51 = vadd.f32 %v1093_v23, %v1086_v4  ;;  %v1156_v30 = vadd.f32 %v1149_v60, %v1142_v39 }
 0x127   :  { %v1233_v7 = vmul.f32 %v4324_v53, %v3278_v33  ;;  %v1051_v11 = vmax.f32 %v1044_v35, 0.0  ;;  %v1212_v12 = vadd.f32 %v1205_v38, %v1198_v21  ;;  %v1393_v22 = vmul.f32 %v2584_v55, %v3540_v3 }
 0x128   :  { %v1409_v16 = vmul.f32 %v4316_v40, %v3547_v26  ;;  %v1107_v10 = vadd.f32 %v1100_v51, %v3281_v5  ;;  %v1170_v19 = vadd.f32 %v1163_v41, %v1156_v30  ;;  %v1425_v1 = vmul.f32 %v4317_v2, %v3553_v27 }
 0x129   :  { %v1455_v9 = vmul.f32 %v2584_v55, %v3537_v42  ;;  %v1226_v23 = vadd.f32 %v1219_v46, %v1212_v12  ;;  %v1400_v60 = vadd.f32 %v1393_v22, %v1384_v0  ;;  %v1462_v21 = vmul.f32 %v4320_v28, %v3540_v3 }
 0x12a   :  { %v1476_v35 = vmul.f32 %v4317_v2, %v3547_v26  ;;  %v1517_v4 = vmax.f32 %v1447_v29, %v1510_v34  ;;  %v1114_v39 = vmax.f32 %v1107_v10, 0.0  ;;  %v1177_v38 = vadd.f32 %v1170_v19, %v3281_v5 }
 0x12b   :  { %v1490_v41 = vmul.f32 %v4321_v15, %v3553_v27  ;;  %v1240_v51 = vadd.f32 %v1233_v7, %v1226_v23  ;;  %v1416_v30 = vadd.f32 %v1409_v16, %v1400_v60  ;;  %v1469_v37 = vadd.f32 %v1462_v21, %v1455_v9  ;;  %v4325_v60 = vld [vmem:[#allocation67_spill] sm:$0xff] }
 0x12c   :  { %v1525_v55 = vmul.f32 %v4316_v40, %v3537_v42  ;;  %v1121_v46 = vmax.f32 %v1051_v11, %v1114_v39  ;;  %v1184_v0 = vmax.f32 %v1177_v38, 0.0  ;;  %v1532_v28 = vmul.f32 %v4317_v2, %v3540_v3 }
 0x12d   :  { %v1546_v29 = vmul.f32 %v4322_v45, %v3547_v26  ;;  %v1650_v10 = vmax.f32 %v3649_v43, 0.0  ;;  %v1247_v19 = vadd.f32 %v1240_v51, %v3281_v5  ;;  %v1432_v34 = vadd.f32 %v1425_v1, %v1416_v30 }
 0x12e   :  { %v1483_v12 = vadd.f32 %v1476_v35, %v1469_v37  ;;  %v1539_v7 = vadd.f32 %v1532_v28, %v1525_v55  ;;  %v1560_v16 = vmul.f32 %v4323_v52, %v3553_v27  ;;  %v1595_v40 = vmul.f32 %v4317_v2, %v3537_v42 }
 0x12f   :  { %v1602_v11 = vmul.f32 %v4321_v15, %v3540_v3  ;;  %v1191_v22 = vmax.f32 %v1121_v46, %v1184_v0  ;;  %v1441_v9 = vadd.f32 %v3591_v62, %v1432_v34  ;;  %v1616_v43 = vmul.f32 %v4323_v52, %v3547_v26  ;;  %v4326_v15 = vld [vmem:[#allocation68_spill] sm:$0xff]  ;;  %v4327_v52 = vld [vmem:[#allocation70_spill] sm:$0xff]  ;;  %v1679_v34 = vpop.permute.xlu2 %1678 }
 0x130   :  { %v1497_v45 = vadd.f32 %v1490_v41, %v1483_v12  ;;  %v1553_v23 = vadd.f32 %v1546_v29, %v1539_v7  ;;  %v1630_v37 = vmul.f32 %v4324_v53, %v3553_v27  ;;  %v991_v21 = vmul.f32 %v3268_v25, %v4325_v60  ;;  %v1292_v41 = vpop.permute.xlu1 %1291  ;;  %v4328_v53 = vld [vmem:[#allocation71_spill] sm:$0xff] }
 0x131   :  { %v1609_v1 = vadd.f32 %v1602_v11, %v1595_v40  ;;  %v1254_v35 = vmax.f32 %v1247_v19, 0.0  ;;  %v1448_v2 = vmax.f32 %v1441_v9, 0.0  ;;  %v1000_v38 = vmul.f32 %v3272_v61, %v4326_v15  ;;  %v4329_v40 = vld [vmem:[#allocation69_spill] sm:$0xff]  ;;  %v1287_v11 = vpop.permute.xlu0 %1286 }
 0x132   :  { %v1504_v39 = vadd.f32 %v1497_v45, %v3591_v62  ;;  %v1587_v51 = vmax.f32 %v1517_v4, %v1580_v47  ;;  %v1567_v30 = vadd.f32 %v1560_v16, %v1553_v23  ;;  %v1016_v46 = vmul.f32 %v3275_v20, %v4327_v52 }
 0x133   :  { %v1623_v55 = vadd.f32 %v1616_v43, %v1609_v1  ;;  %v1007_v28 = vadd.f32 %v1000_v38, %v991_v21  ;;  %v1032_v29 = vmul.f32 %v3278_v33, %v4328_v53  ;;  %v1062_v19 = vmul.f32 %v3268_v25, %v4326_v15  ;;  %v4331_v38 = vld [vmem:[#allocation72_spill] sm:$0xff] }
 0x134   :  { %v1511_v0 = vmax.f32 %v1504_v39, 0.0  ;;  %v1574_v12 = vadd.f32 %v1567_v30, %v3591_v62  ;;  %v1069_v47 = vmul.f32 %v3272_v61, %v4329_v40  ;;  %v1083_v4 = vmul.f32 %v3275_v20, %v4328_v53 }
 0x135   :  { %v1637_v7 = vadd.f32 %v1630_v37, %v1623_v55  ;;  %v1312_v16 = vmul.f32 %v1292_v41, %v3597_v32  ;;  %v3705_v9 = vmax.f32 %v1191_v22, %v1254_v35  ;;  %v1023_v43 = vadd.f32 %v1016_v46, %v1007_v28  ;;  %v4332_v22 = vld [vmem:[#allocation73_spill] sm:$0xff] }
 0x136   :  { %v1518_v45 = vmax.f32 %v1448_v2, %v1511_v0  ;;  %v1581_v23 = vmax.f32 %v1574_v12, 0.0  ;;  %v1076_v21 = vadd.f32 %v1069_v47, %v1062_v19  ;;  %v1132_v37 = vmul.f32 %v3268_v25, %v4327_v52  ;;  %v4334_v12 = vld [vmem:[#allocation74_spill] sm:$0xff] }
 0x137   :  { %v1644_v1 = vadd.f32 %v1637_v7, %v3591_v62  ;;  %v3712_v39 = vadd.f32 %v3623_v18, %v3485_v56  ;;  %v1097_v30 = vmul.f32 %v3278_v33, %v4331_v38  ;;  %v1139_v32 = vmul.f32 %v3272_v61, %v4328_v53 }
 0x138   :  { %v1153_v35 = vmul.f32 %v3275_v20, %v4332_v22  ;;  %v3720_v2 = vmax.f32 %v1587_v51, %v1650_v10  ;;  %v1039_v41 = vadd.f32 %v1032_v29, %v1023_v43  ;;  %v1090_v55 = vadd.f32 %v1083_v4, %v1076_v21  ;;  %v4335_v51 = vld [vmem:[#allocation18_spill] sm:$0xff]  ;;  %v4337_v21 = vld [vmem:[#allocation76_spill] sm:$0xff] }
 0x139   :  { %4330 = vst [vmem:[#allocation12_spill] sm:$0xff] %v3712_v39  ;;  %v1202_v46 = vmul.f32 %v3268_v25, %v4328_v53  ;;  %v1588_v0 = vmax.f32 %v1518_v45, %v1581_v23  ;;  %v1651_v28 = vmax.f32 %v1644_v1, 0.0  ;;  %v1146_v56 = vadd.f32 %v1139_v32, %v1132_v37  ;;  %v4336_v45 = vld [vmem:[#allocation19_spill] sm:$0xff]  ;;  %v4339_v32 = vld [vmem:[#allocation20_spill] sm:$0xff]  ;;  %v3762_v40 = vpop.permute.xlu0 %1301 }
 0x13a   :  { %4333 = vst [vmem:[#allocation13_spill] sm:$0xff] %v3720_v2  ;;  %v1209_v18 = vmul.f32 %v3272_v61, %v4331_v38  ;;  %v1311_v19 = vmul.f32 %v1287_v11, %v3705_v9  ;;  %v1167_v7 = vmul.f32 %v3278_v33, %v4334_v12  ;;  %v1223_v10 = vmul.f32 %v3275_v20, %v4334_v12  ;;  %v3746_v38 = vpop.permute.xlu1 %1306 }
 0x13b   :  { %v990_v29 = vmul.f32 %v4335_v51, %v3268_v25  ;;  %v1104_v47 = vadd.f32 %v1097_v30, %v1090_v55  ;;  %v1160_v4 = vadd.f32 %v1153_v35, %v1146_v56  ;;  %v999_v23 = vmul.f32 %v3272_v61, %v4336_v45  ;;  %4341 = vst [vmem:[#allocation36_spill] sm:$0xff] %v3746_v38  ;;  %v4342_v35 = vld [vmem:[#allocation22_spill] sm:$0xff] }
 0x13c   :  { %v1216_v43 = vadd.f32 %v1209_v18, %v1202_v46  ;;  %v3736_v1 = vmul.f32 %v1679_v34, %v3720_v2  ;;  %v3739_v11 = vadd.f32 %v1312_v16, %v4337_v21  ;;  %v1048_v37 = vadd.f32 %v3281_v5, %v1039_v41  ;;  %v4343_v46 = vld [vmem:[#allocation28_spill] sm:$0xff]  ;;  %v1684_v16 = vpop.permute.xlu2 %1683  ;;  %v4344_v18 = vld [vmem:[#allocation75_spill] sm:$0xff]  ;;  %v4345_v21 = vld [vmem:[#allocation21_spill] sm:$0xff] }
 0x13d   :  { %v1015_v12 = vmul.f32 %v3275_v20, %v4339_v32  ;;  %v3744_v22 = vmax.f32 %v1588_v0, %v1651_v28  ;;  %v1006_v30 = vadd.f32 %v999_v23, %v990_v29  ;;  %v1031_v55 = vmul.f32 %v4342_v35, %v3278_v33 }
 0x13e   :  { %4338 = vst [vmem:[#allocation11_spill] sm:$0xff] %v3739_v11  ;;  %v1061_v34 = vmul.f32 %v3268_v25, %v4336_v45  ;;  %v3753_v56 = vadd.f32 %v1311_v19, %v4343_v46  ;;  %v1237_v41 = vmul.f32 %v3278_v33, %v4344_v18  ;;  %v1068_v0 = vmul.f32 %v4345_v21, %v3272_v61  ;;  %v4346_v19 = vld [vmem:[#allocation23_spill] sm:$0xff] }
 0x13f   :  { %4340 = vst [vmem:[#allocation14_spill] sm:$0xff] %v3744_v22  ;;  %v1082_v28 = vmul.f32 %v4342_v35, %v3275_v20  ;;  %v1111_v29 = vadd.f32 %v1104_v47, %v3281_v5  ;;  %v1174_v23 = vadd.f32 %v1167_v7, %v1160_v4  ;;  %v1230_v38 = vadd.f32 %v1223_v10, %v1216_v43  ;;  %v4347_v7 = vld [vmem:[#allocation24_spill] sm:$0xff] }
 0x140   :  { %v1022_v53 = vadd.f32 %v1015_v12, %v1006_v30  ;;  %v1075_v52 = vadd.f32 %v1068_v0, %v1061_v34  ;;  %v1096_v46 = vmul.f32 %v3278_v33, %v4346_v19  ;;  %v1131_v18 = vmul.f32 %v3268_v25, %v4339_v32  ;;  %v4348_v12 = vld [vmem:[#allocation25_spill] sm:$0xff] }
 0x141   :  { %v1138_v15 = vmul.f32 %v4342_v35, %v3272_v61  ;;  %v1708_v60 = vmul.f32 %v1684_v16, %v3744_v22  ;;  %v1055_v39 = vmax.f32 %v1048_v37, 0.0  ;;  %v1152_v10 = vmul.f32 %v4347_v7, %v3275_v20 }
 0x142   :  { %v1038_v11 = vadd.f32 %v1031_v55, %v1022_v53  ;;  %v1089_v47 = vadd.f32 %v1082_v28, %v1075_v52  ;;  %v1166_v43 = vmul.f32 %v3278_v33, %v4348_v12  ;;  %v1201_v30 = vmul.f32 %v4342_v35, %v3268_v25  ;;  %v4349_v28 = vld [vmem:[#allocation26_spill] sm:$0xff] }
 0x143   :  { %v1145_v4 = vadd.f32 %v1138_v15, %v1131_v18  ;;  %v1118_v34 = vmax.f32 %v1111_v29, 0.0  ;;  %v1181_v0 = vadd.f32 %v1174_v23, %v3281_v5  ;;  %v1208_v37 = vmul.f32 %v3272_v61, %v4346_v19 }
 0x144   :  { %v1047_v2 = vadd.f32 %v3281_v5, %v1038_v11  ;;  %v1244_v53 = vadd.f32 %v1237_v41, %v1230_v38  ;;  %v1103_v55 = vadd.f32 %v1096_v46, %v1089_v47  ;;  %v1222_v15 = vmul.f32 %v3275_v20, %v4348_v12 }
 0x145   :  { %v1159_v16 = vadd.f32 %v1152_v10, %v1145_v4  ;;  %v1215_v18 = vadd.f32 %v1208_v37, %v1201_v30  ;;  %v1236_v22 = vmul.f32 %v4349_v28, %v3278_v33  ;;  %v1385_v25 = vmul.f32 %v4303_v13, %v3537_v42 }
 0x146   :  { %v1054_v52 = vmax.f32 %v1047_v2, 0.0  ;;  %v1110_v29 = vadd.f32 %v1103_v55, %v3281_v5  ;;  %v1394_v61 = vmul.f32 %v4304_v54, %v3540_v3  ;;  %v1410_v38 = vmul.f32 %v4305_v24, %v3547_v26  ;;  %v1344_v2 = vpop.permute.xlu1 %1343 }
 0x147   :  { %v1173_v11 = vadd.f32 %v1166_v43, %v1159_v16  ;;  %v1125_v41 = vmax.f32 %v1055_v39, %v1118_v34  ;;  %v1229_v23 = vadd.f32 %v1222_v15, %v1215_v18  ;;  %v1426_v20 = vmul.f32 %v4307_v6, %v3553_v27  ;;  %v1339_v34 = vpop.permute.xlu0 %1338 }
 0x148   :  { %v1456_v33 = vmul.f32 %v4304_v54, %v3537_v42  ;;  %v1117_v46 = vmax.f32 %v1110_v29, 0.0  ;;  %v1401_v10 = vadd.f32 %v1394_v61, %v1385_v25  ;;  %v1463_v47 = vmul.f32 %v4306_v50, %v3540_v3 }
 0x149   :  { %v1180_v13 = vadd.f32 %v1173_v11, %v3281_v5  ;;  %v1188_v4 = vmax.f32 %v1181_v0, 0.0  ;;  %v1243_v43 = vadd.f32 %v1236_v22, %v1229_v23  ;;  %v1477_v39 = vmul.f32 %v4307_v6, %v3547_v26 }
 0x14a   :  { %v1491_v30 = vmul.f32 %v4308_v57, %v3553_v27  ;;  %v1124_v37 = vmax.f32 %v1054_v52, %v1117_v46  ;;  %v1417_v54 = vadd.f32 %v1410_v38, %v1401_v10  ;;  %v1470_v16 = vadd.f32 %v1463_v47, %v1456_v33 }
 0x14b   :  { %v1187_v55 = vmax.f32 %v1180_v13, 0.0  ;;  %v1250_v15 = vadd.f32 %v1243_v43, %v3281_v5  ;;  %v1526_v18 = vmul.f32 %v4305_v24, %v3537_v42  ;;  %v1533_v50 = vmul.f32 %v4307_v6, %v3540_v3 }
 0x14c   :  { %v1547_v22 = vmul.f32 %v4309_v36, %v3547_v26  ;;  %v1433_v25 = vadd.f32 %v1426_v20, %v1417_v54  ;;  %v1484_v29 = vadd.f32 %v1477_v39, %v1470_v16  ;;  %v1561_v52 = vmul.f32 %v4310_v8, %v3553_v27 }
 0x14d   :  { %v1194_v0 = vmax.f32 %v1124_v37, %v1187_v55  ;;  %v1257_v11 = vmax.f32 %v1250_v15, 0.0  ;;  %v1540_v61 = vadd.f32 %v1533_v50, %v1526_v18  ;;  %v1596_v38 = vmul.f32 %v4307_v6, %v3537_v42 }
 0x14e   :  { %v1603_v24 = vmul.f32 %v4308_v57, %v3540_v3  ;;  %v3818_v23 = vadd.f32 %v3736_v1, %v3544_v31  ;;  %v1442_v36 = vadd.f32 %v3591_v62, %v1433_v25  ;;  %v1498_v33 = vadd.f32 %v1491_v30, %v1484_v29  ;;  %v4350_v1 = vld [vmem:[#allocation9_spill] sm:$0xff]  ;;  %v3838_v30 = vpop.permute.xlu1 %1673 }
 0x14f   :  { %v1617_v20 = vmul.f32 %v4310_v8, %v3547_v26  ;;  %v3824_v46 = vadd.f32 %v1708_v60, %v3753_v56  ;;  %v1554_v13 = vadd.f32 %v1547_v22, %v1540_v61  ;;  %v1631_v6 = vmul.f32 %v4311_v49, %v3553_v27  ;;  %v3849_v16 = vpop.permute.xlu0 %1353 }
 0x150   :  { %v1610_v10 = vadd.f32 %v1603_v24, %v1596_v38  ;;  %v3829_v57 = vadd.f32 %v1244_v53, %v3281_v5  ;;  %v1449_v47 = vmax.f32 %v1442_v36, 0.0  ;;  %v1505_v31 = vadd.f32 %v1498_v33, %v3591_v62  ;;  %v4352_v38 = vld [vmem:[#allocation16_spill] sm:$0xff] }
 0x151   :  { %v1386_v43 = vmul.f32 %v4350_v1, %v3537_v42  ;;  %v3834_v39 = vmax.f32 %v1125_v41, %v1188_v4  ;;  %v3836_v8 = vmax.f32 %v1194_v0, %v1257_v11  ;;  %v1568_v60 = vadd.f32 %v1561_v52, %v1554_v13 }
 0x152   :  { %v1624_v56 = vadd.f32 %v1617_v20, %v1610_v10  ;;  %v1512_v37 = vmax.f32 %v1505_v31, 0.0  ;;  %v1368_v49 = vmul.f32 %v1344_v2, %v3705_v9  ;;  %v1395_v5 = vmul.f32 %v4280_v59, %v3540_v3  ;;  %v4353_v10 = vld [vmem:[#allocation27_spill] sm:$0xff] }
 0x153   :  { %v1411_v53 = vmul.f32 %v4281_v48, %v3547_v26  ;;  %v1575_v55 = vadd.f32 %v1568_v60, %v3591_v62  ;;  %v1367_v41 = vmul.f32 %v1339_v34, %v3415_v17  ;;  %v1427_v4 = vmul.f32 %v4282_v58, %v3553_v27 }
 0x154   :  { %v1638_v54 = vadd.f32 %v1631_v6, %v1624_v56  ;;  %v1519_v15 = vmax.f32 %v1449_v47, %v1512_v37  ;;  %v1402_v18 = vadd.f32 %v1395_v5, %v1386_v43  ;;  %v1457_v9 = vmul.f32 %v4280_v59, %v3537_v42  ;;  %v4354_v56 = vld [vmem:[#allocation46_spill] sm:$0xff]  ;;  %v4355_v5 = vld [vmem:[#allocation17_spill] sm:$0xff] }
 0x155   :  { %v1464_v2 = vmul.f32 %v4283_v14, %v3540_v3  ;;  %v1582_v50 = vmax.f32 %v1575_v55, 0.0  ;;  %v1478_v0 = vmul.f32 %v4282_v58, %v3547_v26  ;;  %v1492_v17 = vmul.f32 %v4284_v63, %v3553_v27  ;;  %v4351_v14 = vld [vmem:[#allocation15_spill] sm:$0xff]  ;;  %v4357_v55 = vld [vmem:[#allocation48_spill] sm:$0xff] }
 0x156   :  { %v1645_v22 = vadd.f32 %v1638_v54, %v3591_v62  ;;  %v1418_v34 = vadd.f32 %v1411_v53, %v1402_v18  ;;  %v1527_v29 = vmul.f32 %v4281_v48, %v3537_v42  ;;  %v1534_v59 = vmul.f32 %v4282_v58, %v3540_v3  ;;  %v4356_v53 = vld [vmem:[#allocation47_spill] sm:$0xff]  ;;  %v3888_v54 = vpop.permute.xlu1 %1735 }
 0x157   :  { %v1471_v25 = vadd.f32 %v1464_v2, %v1457_v9  ;;  %v1589_v52 = vmax.f32 %v1519_v15, %v1582_v50  ;;  %v1548_v61 = vmul.f32 %v4351_v14, %v3547_v26  ;;  %v1562_v24 = vmul.f32 %v4352_v38, %v3553_v27 }
 0x158   :  { %v1652_v11 = vmax.f32 %v1645_v22, 0.0  ;;  %v1434_v36 = vadd.f32 %v1427_v4, %v1418_v34  ;;  %v1541_v20 = vadd.f32 %v1534_v59, %v1527_v29  ;;  %v1597_v13 = vmul.f32 %v4282_v58, %v3537_v42  ;;  %v4358_v22 = vld [vmem:[#allocation50_spill] sm:$0xff]  ;;  %v3897_v34 = vpop.permute.xlu0 %1730  ;;  %v4359_v59 = vld [vmem:[#allocation49_spill] sm:$0xff] }
 0x159   :  { %v1485_v33 = vadd.f32 %v1478_v0, %v1471_v25  ;;  %v1314_v48 = vmul.f32 %v3762_v40, %v3836_v8  ;;  %v3873_v6 = vadd.f32 %v1368_v49, %v4353_v10  ;;  %v1604_v47 = vmul.f32 %v4284_v63, %v3540_v3 }
 0x15a   :  { %v1618_v31 = vmul.f32 %v4352_v38, %v3547_v26  ;;  %v1443_v1 = vadd.f32 %v3591_v62, %v1434_v36  ;;  %v1555_v60 = vadd.f32 %v1548_v61, %v1541_v20  ;;  %v1382_v37 = vmul.f32 %v4354_v56, %v3537_v42  ;;  %v4360_v38 = vld [vmem:[#allocation51_spill] sm:$0xff]  ;;  %v4362_v56 = vld [vmem:[#allocation52_spill] sm:$0xff] }
 0x15b   :  { %v1499_v43 = vadd.f32 %v1492_v17, %v1485_v33  ;;  %v1611_v58 = vadd.f32 %v1604_v47, %v1597_v13  ;;  %v1632_v40 = vmul.f32 %v4355_v5, %v3553_v27  ;;  %v1391_v49 = vmul.f32 %v3540_v3, %v4356_v53  ;;  %v1746_v47 = vpop.permute.xlu2 %1745 }
 0x15c   :  { %v1407_v63 = vmul.f32 %v3547_v26, %v4357_v55  ;;  %v3890_v4 = vmax.f32 %v1589_v52, %v1652_v11  ;;  %v1450_v15 = vmax.f32 %v1443_v1, 0.0  ;;  %v1569_v9 = vadd.f32 %v1562_v24, %v1555_v60 }
 0x15d   :  { %v1506_v18 = vadd.f32 %v1499_v43, %v3591_v62  ;;  %v1625_v2 = vadd.f32 %v1618_v31, %v1611_v58  ;;  %v1398_v50 = vadd.f32 %v1391_v49, %v1382_v37  ;;  %v1423_v0 = vmul.f32 %v4358_v22, %v3553_v27  ;;  %v4361_v31 = vld [vmem:[#allocation30_spill] sm:$0xff] }
 0x15e   :  { %v1453_v17 = vmul.f32 %v3537_v42, %v4356_v53  ;;  %v1576_v29 = vadd.f32 %v1569_v9, %v3591_v62  ;;  %v1460_v52 = vmul.f32 %v4359_v59, %v3540_v3  ;;  %v1474_v11 = vmul.f32 %v4358_v22, %v3547_v26  ;;  %v1689_v59 = vpop.permute.xlu1 %1688 }
 0x15f   :  { %v1513_v25 = vmax.f32 %v1506_v18, 0.0  ;;  %v1639_v14 = vadd.f32 %v1632_v40, %v1625_v2  ;;  %v1414_v61 = vadd.f32 %v1407_v63, %v1398_v50  ;;  %v1488_v24 = vmul.f32 %v3553_v27, %v4360_v38  ;;  %v4363_v40 = vld [vmem:[#allocation53_spill] sm:$0xff] }
 0x160   :  { %v1523_v36 = vmul.f32 %v3537_v42, %v4357_v55  ;;  %v1583_v20 = vmax.f32 %v1576_v29, 0.0  ;;  %v1467_v13 = vadd.f32 %v1460_v52, %v1453_v17  ;;  %v1530_v10 = vmul.f32 %v4358_v22, %v3540_v3  ;;  %v4364_v55 = vld [vmem:[#allocation31_spill] sm:$0xff] }
 0x161   :  { %v1520_v33 = vmax.f32 %v1450_v15, %v1513_v25  ;;  %v3911_v1 = vadd.f32 %v1367_v41, %v4361_v31  ;;  %v1646_v43 = vadd.f32 %v1639_v14, %v3591_v62  ;;  %v1430_v60 = vadd.f32 %v1423_v0, %v1414_v61 }
 0x162   :  { %v1544_v37 = vmul.f32 %v4362_v56, %v3547_v26  ;;  %v1481_v58 = vadd.f32 %v1474_v11, %v1467_v13  ;;  %v1537_v5 = vadd.f32 %v1530_v10, %v1523_v36  ;;  %v1558_v53 = vmul.f32 %v3553_v27, %v4363_v40 }
 0x163   :  { %v1593_v49 = vmul.f32 %v4358_v22, %v3537_v42  ;;  %v3921_v63 = vadd.f32 %v1314_v48, %v4364_v55  ;;  %v1439_v41 = vadd.f32 %v3591_v62, %v1430_v60  ;;  %v1600_v15 = vmul.f32 %v3540_v3, %v4360_v38  ;;  %v4365_v22 = vld [vmem:[#allocation54_spill] sm:$0xff] }
 0x164   :  { %v1614_v18 = vmul.f32 %v3547_v26, %v4363_v40  ;;  %v3929_v9 = vmul.f32 %v1746_v47, %v3890_v4  ;;  %v1590_v2 = vmax.f32 %v1520_v33, %v1583_v20  ;;  %v1495_v50 = vadd.f32 %v1488_v24, %v1481_v58  ;;  %v1741_v20 = vpop.permute.xlu0 %1740 }
 0x165   :  { %v1551_v0 = vadd.f32 %v1544_v37, %v1537_v5  ;;  %v1653_v17 = vmax.f32 %v1646_v43, 0.0  ;;  %v1607_v25 = vadd.f32 %v1600_v15, %v1593_v49  ;;  %v1628_v48 = vmul.f32 %v4365_v22, %v3553_v27 }
 0x166   :  { %v1387_v29 = vmul.f32 %v4335_v51, %v3537_v42  ;;  %v1446_v52 = vmax.f32 %v1439_v41, 0.0  ;;  %v1502_v11 = vadd.f32 %v1495_v50, %v3591_v62  ;;  %v1396_v61 = vmul.f32 %v3540_v3, %v4336_v45 }
 0x167   :  { %v1565_v14 = vadd.f32 %v1558_v53, %v1551_v0  ;;  %v1621_v38 = vadd.f32 %v1614_v18, %v1607_v25  ;;  %v1370_v24 = vmul.f32 %v3849_v16, %v3549_v44  ;;  %v1412_v36 = vmul.f32 %v3547_v26, %v4339_v32  ;;  %v4366_v0 = vld [vmem:[#allocation32_spill] sm:$0xff] }
 0x168   :  { %v1428_v33 = vmul.f32 %v4342_v35, %v3553_v27  ;;  %v1509_v51 = vmax.f32 %v1502_v11, 0.0  ;;  %v1403_v10 = vadd.f32 %v1396_v61, %v1387_v29  ;;  %v1458_v47 = vmul.f32 %v3537_v42, %v4336_v45  ;;  %v4367_v11 = vld [vmem:[#allocation13_spill] sm:$0xff]  ;;  %v1694_v61 = vpop.permute.xlu1 %1693 }
 0x169   :  { %v1572_v13 = vadd.f32 %v1565_v14, %v3591_v62  ;;  %v1660_v31 = vmax.f32 %v1590_v2, %v1653_v17  ;;  %v1635_v43 = vadd.f32 %v1628_v48, %v1621_v38  ;;  %v1465_v60 = vmul.f32 %v4345_v21, %v3540_v3 }
 0x16a   :  { %v1479_v44 = vmul.f32 %v4342_v35, %v3547_v26  ;;  %v1516_v16 = vmax.f32 %v1446_v52, %v1509_v51  ;;  %v1419_v37 = vadd.f32 %v1412_v36, %v1403_v10  ;;  %v1493_v58 = vmul.f32 %v3553_v27, %v4346_v19  ;;  %v4368_v36 = vld [vmem:[#allocation14_spill] sm:$0xff] }
 0x16b   :  { %v1579_v56 = vmax.f32 %v1572_v13, 0.0  ;;  %v1642_v5 = vadd.f32 %v1635_v43, %v3591_v62  ;;  %v1472_v40 = vadd.f32 %v1465_v60, %v1458_v47  ;;  %v1528_v45 = vmul.f32 %v3537_v42, %v4339_v32 }
 0x16c   :  { %v1535_v53 = vmul.f32 %v4342_v35, %v3540_v3  ;;  %v1435_v21 = vadd.f32 %v1428_v33, %v1419_v37  ;;  %v1549_v55 = vmul.f32 %v4347_v7, %v3547_v26  ;;  %v1563_v41 = vmul.f32 %v3553_v27, %v4348_v12  ;;  %v1751_v7 = vpop.permute.xlu2 %1750  ;;  %v1359_v10 = vpop.permute.xlu0 %1358 }
 0x16d   :  { %v1586_v49 = vmax.f32 %v1516_v16, %v1579_v56  ;;  %v1649_v15 = vmax.f32 %v1642_v5, 0.0  ;;  %v1486_v18 = vadd.f32 %v1479_v44, %v1472_v40  ;;  %v1598_v50 = vmul.f32 %v4342_v35, %v3537_v42  ;;  %v4369_v44 = vld [vmem:[#allocation10_spill] sm:$0xff] }
 0x16e   :  { %v1542_v2 = vadd.f32 %v1535_v53, %v1528_v45  ;;  %v1377_v17 = vadd.f32 %v1370_v24, %v4366_v0  ;;  %v1444_v32 = vadd.f32 %v3591_v62, %v1435_v21  ;;  %v1605_v25 = vmul.f32 %v3540_v3, %v4346_v19  ;;  %v4375_v0 = vld [vmem:[#allocation67_spill] sm:$0xff] }
 0x16f   :  { %v1619_v22 = vmul.f32 %v3547_v26, %v4348_v12  ;;  %v1656_v48 = vmax.f32 %v1586_v49, %v1649_v15  ;;  %v1500_v29 = vadd.f32 %v1493_v58, %v1486_v18  ;;  %v1764_v14 = vmul.f32 %v3888_v54, %v4367_v11  ;;  %v4373_v18 = vld [vmem:[#allocation34_spill] sm:$0xff] }
 0x170   :  { %v1556_v52 = vadd.f32 %v1549_v55, %v1542_v2  ;;  %v1451_v38 = vmax.f32 %v1444_v32, 0.0  ;;  %v1612_v35 = vadd.f32 %v1605_v25, %v1598_v50  ;;  %v1633_v24 = vmul.f32 %v4349_v28, %v3553_v27  ;;  %v4374_v2 = vld [vmem:[#allocation29_spill] sm:$0xff]  ;;  %v4376_v25 = vld [vmem:[#allocation68_spill] sm:$0xff] }
 0x171   :  { %v1765_v33 = vmul.f32 %v1741_v20, %v4368_v36  ;;  %v1706_v19 = vmul.f32 %v3838_v30, %v1656_v48  ;;  %v1507_v51 = vadd.f32 %v1500_v29, %v3591_v62  ;;  %v1709_v13 = vmul.f32 %v1689_v59, %v3890_v4  ;;  %v4370_v30 = vld [vmem:[#allocation45_spill] sm:$0xff] }
 0x172   :  { %v1570_v12 = vadd.f32 %v1563_v41, %v1556_v52  ;;  %v1767_v47 = vmul.f32 %v1751_v7, %v1660_v31  ;;  %v1626_v43 = vadd.f32 %v1619_v22, %v1612_v35  ;;  %v1771_v54 = vadd.f32 %v1764_v14, %v3911_v1  ;;  %v4371_v1 = vld [vmem:[#allocation11_spill] sm:$0xff]  ;;  %v1699_v7 = vpop.permute.xlu1 %1698  ;;  %v4379_v35 = vld [vmem:[#allocation69_spill] sm:$0xff] }
 0x173   :  { %v1763_v60 = vmul.f32 %v3897_v34, %v1656_v48  ;;  %v1713_v16 = vadd.f32 %v1706_v19, %v4369_v44  ;;  %v1514_v56 = vmax.f32 %v1507_v51, 0.0  ;;  %v1710_v20 = vmul.f32 %v1694_v61, %v1660_v31  ;;  %v4372_v34 = vld [vmem:[#allocation12_spill] sm:$0xff]  ;;  %v4377_v48 = vld [vmem:[#allocation70_spill] sm:$0xff]  ;;  %v4378_v52 = vld [vmem:[#allocation71_spill] sm:$0xff] }
 0x174   :  { %v1577_v28 = vadd.f32 %v1570_v12, %v3591_v62  ;;  %v1640_v37 = vadd.f32 %v1633_v24, %v1626_v43  ;;  %v1772_v5 = vadd.f32 %v1765_v33, %v3873_v6  ;;  %v1371_v4 = vmul.f32 %v1359_v10, %v3836_v8  ;;  %v4380_v19 = vld [vmem:[#allocation72_spill] sm:$0xff]  ;;  %v4381_v44 = vld [vmem:[#allocation73_spill] sm:$0xff] }
 0x175   :  { %v1770_v58 = vadd.f32 %v1763_v60, %v4370_v30  ;;  %v1777_v59 = vadd.f32 %v3818_v23, %v1713_v16  ;;  %v1521_v40 = vmax.f32 %v1451_v38, %v1514_v56  ;;  %v1716_v53 = vadd.f32 %v1709_v13, %v4371_v1  ;;  %v4382_v56 = vld [vmem:[#allocation74_spill] sm:$0xff] }
 0x176   :  { %v1584_v45 = vmax.f32 %v1577_v28, 0.0  ;;  %v1773_v49 = vadd.f32 %v3929_v9, %v4372_v34  ;;  %v1774_v21 = vadd.f32 %v1767_v47, %v1377_v17  ;;  %v1647_v55 = vadd.f32 %v1640_v37, %v3591_v62  ;;  %v1756_v9 = vpop.permute.xlu2 %1755  ;;  %v1364_v34 = vpop.permute.xlu0 %1363 }
 0x177   :  { %v1794_v31 = vadd.f32 %v1771_v54, %v1770_v58  ;;  %v1778_v15 = vadd.f32 %v1777_v59, %v3824_v46  ;;  %v1717_v6 = vadd.f32 %v1710_v20, %v4373_v18  ;;  %v1378_v8 = vadd.f32 %v1371_v4, %v4374_v2 }
 0x178   :  { %v1591_v41 = vmax.f32 %v1521_v40, %v1584_v45  ;;  %v1654_v50 = vmax.f32 %v1647_v55, 0.0  ;;  %v1388_v32 = vmul.f32 %v3537_v42, %v4375_v0  ;;  %v1397_v22 = vmul.f32 %v3540_v3, %v4376_v25  ;;  %v4384_v0 = vld [vmem:[#allocation36_spill] sm:$0xff] }
 0x179   :  { %v1795_v23 = vadd.f32 %v1794_v31, %v1772_v5  ;;  %v1779_v17 = vadd.f32 %v1778_v15, %v1716_v53  ;;  %v1413_v29 = vmul.f32 %v3547_v26, %v4377_v48  ;;  %v1429_v46 = vmul.f32 %v3553_v27, %v4378_v52  ;;  %v4383_v31 = vld [vmem:[#allocation75_spill] sm:$0xff] }
 0x17a   :  { %v1459_v11 = vmul.f32 %v3537_v42, %v4376_v25  ;;  %v1661_v14 = vmax.f32 %v1591_v41, %v1654_v50  ;;  %v1404_v38 = vadd.f32 %v1397_v22, %v1388_v32  ;;  %v1466_v24 = vmul.f32 %v3540_v3, %v4379_v35 }
 0x17b   :  { %v1796_v61 = vadd.f32 %v1795_v23, %v1773_v49  ;;  %v1780_v36 = vadd.f32 %v1779_v17, %v1717_v6  ;;  %v1480_v33 = vmul.f32 %v3547_v26, %v4378_v52  ;;  %v1494_v51 = vmul.f32 %v3553_v27, %v4380_v19 }
 0x17c   :  { %v1529_v12 = vmul.f32 %v3537_v42, %v4377_v48  ;;  %v1768_v13 = vmul.f32 %v1756_v9, %v1661_v14  ;;  %v1711_v47 = vmul.f32 %v1699_v7, %v1661_v14  ;;  %v1420_v43 = vadd.f32 %v1413_v29, %v1404_v38  ;;  %v1761_v9 = vpop.permute.xlu1 %1760  ;;  %v4385_v48 = vld [vmem:[#allocation77_spill] sm:$0xff] }
 0x17d   :  { %v1797_v10 = vadd.f32 %v1796_v61, %v1774_v21  ;;  %v1473_v54 = vadd.f32 %v1466_v24, %v1459_v11  ;;  %v1536_v60 = vmul.f32 %v3540_v3, %v4378_v52  ;;  %v1550_v16 = vmul.f32 %v3547_v26, %v4381_v44 }
 0x17e   :  { %v1564_v28 = vmul.f32 %v3553_v27, %v4382_v56  ;;  %v1775_v20 = vadd.f32 %v1768_v13, %v1378_v8  ;;  %v1718_v37 = vadd.f32 %v1711_v47, %v3921_v63  ;;  %v1436_v30 = vadd.f32 %v1429_v46, %v1420_v43  ;;  %v1704_v17 = vpop.permute.xlu0 %1703 }
 0x17f   :  { %v1599_v58 = vmul.f32 %v3537_v42, %v4378_v52  ;;  %v1487_v5 = vadd.f32 %v1480_v33, %v1473_v54  ;;  %v1543_v4 = vadd.f32 %v1536_v60, %v1529_v12  ;;  %v1606_v59 = vmul.f32 %v3540_v3, %v4380_v19  ;;  %v4386_v52 = vld [vmem:[#allocation33_spill] sm:$0xff] }
 0x180   :  { %v1620_v40 = vmul.f32 %v3547_v26, %v4382_v56  ;;  %v1258_v45 = vmax.f32 %v3829_v57, 0.0  ;;  %v1798_v1 = vadd.f32 %v1797_v10, %v1775_v20  ;;  %v1781_v53 = vadd.f32 %v1780_v36, %v1718_v37 }
 0x181   :  { %v1445_v49 = vadd.f32 %v3591_v62, %v1436_v30  ;;  %v1501_v63 = vadd.f32 %v1494_v51, %v1487_v5  ;;  %v1557_v21 = vadd.f32 %v1550_v16, %v1543_v4  ;;  %v1613_v55 = vadd.f32 %v1606_v59, %v1599_v58 }
 0x182   :  { %v1634_v42 = vmul.f32 %v3553_v27, %v4383_v31  ;;  %v1265_v26 = vmax.f32 %v3834_v39, %v1258_v45  ;;  %v1808_v60 = vstv %s1954_s16  ;;  %v1792_v44 = vstv %s1791_s18 }
 0x183   :  { %v1452_v41 = vmax.f32 %v1445_v49, 0.0  ;;  %v1508_v15 = vadd.f32 %v1501_v63, %v3591_v62  ;;  %v1571_v3 = vadd.f32 %v1564_v28, %v1557_v21  ;;  %v1627_v18 = vadd.f32 %v1620_v40, %v1613_v55 }
 0x184   :  { %v1315_v32 = vmul.f32 %v4384_v0, %v1265_v26  ;;  %v1372_v25 = vmul.f32 %v1364_v34, %v1265_v26 }
 0x185   :  { %v1515_v6 = vmax.f32 %v1508_v15, 0.0  ;;  %v1578_v57 = vadd.f32 %v1571_v3, %v3591_v62  ;;  %v1641_v2 = vadd.f32 %v1634_v42, %v1627_v18 }
 0x186   :  { %v1322_v29 = vadd.f32 %v1315_v32, %v4385_v48  ;;  %v1379_v39 = vadd.f32 %v1372_v25, %v4386_v52 }
 0x187   :  { %v1522_v8 = vmax.f32 %v1452_v41, %v1515_v6  ;;  %v1585_v50 = vmax.f32 %v1578_v57, 0.0  ;;  %v1648_v23 = vadd.f32 %v1641_v2, %v3591_v62 }
 0x189   :  { %v1592_v22 = vmax.f32 %v1522_v8, %v1585_v50  ;;  %v1655_v27 = vmax.f32 %v1648_v23, 0.0 }
 0x18b   :  { %v1662_v7 = vmax.f32 %v1592_v22, %v1655_v27 }
 0x18d   :  { %v1769_v46 = vmul.f32 %v1761_v9, %v1662_v7  ;;  %v1712_v11 = vmul.f32 %v1704_v17, %v1662_v7 }
 0x18f   :  { %v1776_v14 = vadd.f32 %v1769_v46, %v1379_v39  ;;  %v1719_v61 = vadd.f32 %v1712_v11, %v1322_v29 }
 0x191   :  { %v1799_v38 = vsel %vm1782_vm0, %v1776_v14, 0.0  ;;  %v1783_v62 = vsel %vm1782_vm0, %v1719_v61, 0.0 }
 0x192   :  { %v1800_v35 = vadd.f32 %v1799_v38, %v1798_v1  ;;  %v1784_v24 = vadd.f32 %v1783_v62, %v1781_v53 }
 0x194   :  { %v1801_v36 = vrot.slane %v1800_v35, 4  ;;  %v1785_v33 = vrot.slane %v1784_v24, 4 }
 0x196   :  { %v1802_v19 = vadd.f32 %v1801_v36, %v1800_v35  ;;  %v1786_v51 = vadd.f32 %v1785_v33, %v1784_v24 }
 0x198   :  { %v1803_v12 = vrot.slane %v1802_v19, 2  ;;  %v1787_v13 = vrot.slane %v1786_v51, 2 }
 0x19a   :  { %v1804_v10 = vadd.f32 %v1803_v12, %v1802_v19  ;;  %v1788_v47 = vadd.f32 %v1787_v13, %v1786_v51 }
 0x19c   :  { %v1805_v43 = vrot.slane %v1804_v10, 1  ;;  %v1789_v54 = vrot.slane %v1788_v47, 1 }
 0x19e   :  { %v1806_v16 = vadd.f32 %v1805_v43, %v1804_v10  ;;  %v1790_v56 = vadd.f32 %v1789_v54, %v1788_v47 }
 0x1a0   :  { %v1809_v28 = vadd.f32 %v1808_v60, %v1806_v16  ;;  %v1793_v20 = vadd.f32 %v1792_v44, %v1790_v56 }
 0x1a2   :  { %v1810_v37 = vmax.f32 %v1793_v20, %v1809_v28 }
 0x1a4   :  { %v1811_v30 = vsub.f32 %v1793_v20, %v1810_v37  ;;  %v1814_v58 = vsub.f32 %v1809_v28, %v1810_v37 }
 0x1a6   :  { %v1812_v5 = vmul.f32 1.442695, %v1811_v30  ;;  %v1815_v4 = vmul.f32 1.442695, %v1814_v58 }
 0x1a8   :  { %2076 = vpow2.f32 %v1812_v5 }
 0x1a9   :  { %2078 = vpow2.f32 %v1815_v4 }
 0x1ae   :  { %v2077_v59 = vpop.eup %2076 }
 0x1af   :  { %v2079_v40 = vpop.eup %2078 }
 0x1b0   :  { %v1817_v45 = vadd.f32 %v2079_v40, %v2077_v59 }
 0x1b2   :  { %2080 = vlog2.f32 %v1817_v45 }
 0x1b8   :  { %v2081_v1 = vpop.eup %2080 }
 0x1b9   :  { %v1819_v53 = vmul.f32 0.6931472, %v2081_v1 }
 0x1bb   :  { %v1820_v34 = vadd.f32 %v1819_v53, %v1810_v37 }
 0x1bd   :  { %v1821_v49 = vsub.f32 %v1793_v20, %v1820_v34  ;;  %v1822_v63 = vsub.f32 %v1809_v28, %v1820_v34 }
 0x1bf   :  { %v1823_v21 = vsel %vm1782_vm0, %v1821_v49, %v1822_v63 }
 0x1c0   :  { %1824 = vst [vmem:[%s4046_s5] sm:$0x3] %v1823_v21 }
 0x1c1   :  { %1829 = vsyncpa [#allocation3], 1 }
 0x1c2   :  { %1830 = vsyncpa [#allocation5], 1 }

</bundles_post_ra>
